<compile_context>
chip_gen: v7x
topology: tpu7x:2x2x1
jax: 0.10.0
libtpu: 0.0.40
codegen_flags: <defaults>
</compile_context>

<pallas_src>
import functools
import math

import jax
import jax.numpy as jnp
from jax.experimental import pallas as pl
from jax.experimental.pallas import tpu as pltpu


def _round_up(x, m):
    return ((x + m - 1) // m) * m


# ---------------------------------------------------------------------------
# Kernel 1: fused matmul + folded-BN affine + ReLU  (1x1 convolutions)
#   Y[M,N] = relu((X @ W) * scale + shift)
#   bf16 inputs, f32 VMEM accumulator, bf16 output.
# ---------------------------------------------------------------------------
def _mm_affine_kernel(x_ref, w_ref, s_ref, b_ref, o_ref, acc_ref, *, relu):
    k = pl.program_id(2)

    @pl.when(k == 0)
    def _():
        acc_ref[...] = jnp.zeros_like(acc_ref)

    acc_ref[...] += jnp.dot(x_ref[...], w_ref[...],
                            preferred_element_type=jnp.float32)

    @pl.when(k == pl.num_programs(2) - 1)
    def _():
        y = acc_ref[...] * s_ref[...] + b_ref[...]
        if relu:
            y = jnp.maximum(y, 0.0)
        o_ref[...] = y.astype(o_ref.dtype)


def matmul_affine(x, w, scale, shift, relu=True, out_dtype=jnp.bfloat16):
    """relu((x[M,K] @ w[K,N]) * scale[N] + shift[N]) -> out_dtype[M,N]."""
    M, K = x.shape
    _, N = w.shape

    # Tiny matmuls: padding + per-call overhead dominates -> plain XLA.
    if M < 8 or K < 128 or N < 128:
        y = x.astype(jnp.float32) @ w.astype(jnp.float32)
        y = y * scale + shift
        if relu:
            y = jnp.maximum(y, 0.0)
        return y.astype(out_dtype)

    # Divisor-aware tiles (avoids padding activations through HBM).
    tm = next((t for t in (256, 128, 64, 32, 16, 8) if M % t == 0), None)
    if tm is None:
        tm = 128 if M >= 128 else _round_up(M, 8)
    Mp = _round_up(M, tm)
    Np = _round_up(N, 128)
    tn = 256 if Np % 256 == 0 else 128
    tk = next((t for t in (512, 256, 128) if K % t == 0), 128)
    Kp = _round_up(K, tk)
    # v7x megacore: keep >= 2 parallel grid steps so both TensorCores get work.
    while (Mp // tm) * (Np // tn) < 2:
        if tn > 128:
            tn //= 2
        elif tm >= 16 and (tm // 2) % 8 == 0:
            tm //= 2
        else:
            break

    xb = x.astype(jnp.bfloat16)
    wb = w.astype(jnp.bfloat16)
    if (Mp, Kp) != (M, K):
        xb = jnp.pad(xb, ((0, Mp - M), (0, Kp - K)))
    if (Kp, Np) != (K, N):
        wb = jnp.pad(wb, ((0, Kp - K), (0, Np - N)))
    sp = jnp.pad(scale.astype(jnp.float32), (0, Np - N)).reshape(1, Np)
    bp = jnp.pad(shift.astype(jnp.float32), (0, Np - N)).reshape(1, Np)

    out = pl.pallas_call(
        functools.partial(_mm_affine_kernel, relu=relu),
        out_shape=jax.ShapeDtypeStruct((Mp, Np), out_dtype),
        grid_spec=pltpu.PrefetchScalarGridSpec(
            num_scalar_prefetch=0,
            grid=(Mp // tm, Np // tn, Kp // tk),
            in_specs=[
                pl.BlockSpec((tm, tk), lambda i, j, k: (i, k)),
                pl.BlockSpec((tk, tn), lambda i, j, k: (k, j)),
                pl.BlockSpec((1, tn), lambda i, j, k: (0, j)),
                pl.BlockSpec((1, tn), lambda i, j, k: (0, j)),
            ],
            out_specs=pl.BlockSpec((tm, tn), lambda i, j, k: (i, j)),
            scratch_shapes=[pltpu.VMEM((tm, tn), jnp.float32)],
        ),
        compiler_params=pltpu.CompilerParams(
            dimension_semantics=("parallel", "parallel", "arbitrary")),
    )(xb, wb, sp, bp)
    if (Mp, Np) != (M, N):
        out = out[:M, :N]
    return out


def conv1x1_bn_relu(x_nhwc, w_oi11, scale, shift, relu=True):
    N, H, W, Cin = x_nhwc.shape
    Cout = w_oi11.shape[0]
    wm = w_oi11.reshape(Cout, Cin).T                       # (Cin, Cout)
    y = matmul_affine(x_nhwc.reshape(N * H * W, Cin), wm, scale, shift, relu)
    return y.reshape(N, H, W, Cout)


# ---------------------------------------------------------------------------
# Kernel 2: 3x3 dilated conv + folded-BN + ReLU, row-blocked, no im2col.
#   Padded bf16 input stays in HBM; per grid step (one (R, W, Cout) output
#   block), one row-window DMA per surviving dy tap is issued up-front, the
#   dx taps are static slices of the VMEM window, and the (up to) 9 tap
#   matmuls accumulate into an f32 VMEM scratch.  bf16 output.
# ---------------------------------------------------------------------------
def _conv3x3_kernel(xp_hbm, w_ref, s_ref, b_ref, o_ref, xbuf, acc_ref, sems,
                    *, taps, dys, d, P, R, W, Wd, Hp, col_lo, dx0, relu):
    n = pl.program_id(0)
    i = pl.program_id(1)
    row0 = n * Hp + i * R + P - d           # padded row of the dy=0 tap window

    def window_copy(j, dy):
        return pltpu.make_async_copy(
            xp_hbm.at[pl.ds(row0 + dy * d, R), pl.ds(col_lo, Wd), :],
            xbuf.at[j], sems.at[j])

    # Issue all row-window DMAs up front; they overlap the tap matmuls below.
    for j, dy in enumerate(dys):
        window_copy(j, dy).start()

    waited = set()
    for t, (dy, dx) in enumerate(taps):     # static unroll over surviving taps
        j = dys.index(dy)
        if j not in waited:
            window_copy(j, dy).wait()
            waited.add(j)
        off = (dx - dx0) * d                # static column offset in window
        lhs = xbuf[j, :, off:off + W, :].reshape(R * W, -1)
        part = jnp.dot(lhs, w_ref[t], preferred_element_type=jnp.float32)
        if t == 0:
            acc_ref[...] = part
        else:
            acc_ref[...] += part

    y = acc_ref[...] * s_ref[...] + b_ref[...]
    if relu:
        y = jnp.maximum(y, 0.0)
    o_ref[0] = y.reshape(R, W, -1).astype(o_ref.dtype)


def _pad_conv_input(x_nhwc, P):
    """Zero-pad spatially by P (plus 8 extra zero cols for aligned windows)."""
    N, H, W, C = x_nhwc.shape
    Hp = H + 2 * P
    xp = jnp.pad(x_nhwc.astype(jnp.bfloat16),
                 ((0, 0), (P, P), (P, P + 8), (0, 0)))
    return xp.reshape(N * Hp, W + 2 * P + 8, C), P, Hp


def _conv_vmem_bytes(R, W, Wd, Cin, Cout, n_dy, n_taps):
    win = n_dy * R * Wd * Cin * 2            # dy window buffers (bf16)
    acc = R * W * Cout * 4                   # f32 accumulator
    outb = 2 * R * W * Cout * 2              # double-buffered bf16 output block
    wgt = 2 * n_taps * Cin * Cout * 2        # double-buffered resident weights
    return win + acc + outb + wgt


def _pick_rows(H, W, Wd, Cin, Cout, n_dy, n_taps, budget=12 * 2**20):
    # Largest divisor of H (<=32) keeping R*W MXU-sized and VMEM under the
    # v5e 16-MiB scoped default (with margin) -> works on v5e/v6e/v7x.
    for r in range(min(H, 32), 0, -1):
        if H % r:
            continue
        if r * W <= 512 and _conv_vmem_bytes(r, W, Wd, Cin, Cout,
                                             n_dy, n_taps) <= budget:
            return r
    return 1


def conv3x3_bn_relu(x_nhwc, w_oikk, scale, shift, dilation, relu=True,
                    padded=None):
    N, H, W, Cin = x_nhwc.shape
    Cout = w_oikk.shape[0]
    d = int(dilation)

    # Statically drop taps whose receptive field is entirely zero padding.
    taps = tuple((dy, dx) for dy in range(3) for dx in range(3)
                 if (dy == 1 or d < H) and (dx == 1 or d < W))

    if taps == ((1, 1),):
        # Degenerates to a 1x1 conv (e.g. small ASPP maps, d >= H, W):
        # no padded copy, single fused matmul.
        wm = w_oikk[:, :, 1, 1].reshape(Cout, Cin).T
        y = matmul_affine(x_nhwc.reshape(N * H * W, Cin), wm, scale, shift,
                          relu)
        return y.reshape(N, H, W, Cout)

    if padded is None:
        padded = _pad_conv_input(x_nhwc, d)
    xp, P, Hp = padded

    dys = tuple(sorted({dy for dy, _ in taps}))
    dxs = tuple(sorted({dx for _, dx in taps}))
    dx0 = dxs[0]
    col_lo = P + (dx0 - 1) * d                       # static window col start
    Wd = (dxs[-1] - dx0) * d + W
    Wd += (-Wd) % 8                                  # 8-aligned window width

    wt = jnp.transpose(w_oikk, (2, 3, 1, 0))         # (3, 3, Cin, Cout)
    wsel = jnp.stack([wt[dy, dx] for dy, dx in taps]).astype(jnp.bfloat16)

    R = _pick_rows(H, W, Wd, Cin, Cout, len(dys), len(taps))
    sp = scale.astype(jnp.float32).reshape(1, Cout)
    bp = shift.astype(jnp.float32).reshape(1, Cout)

    return pl.pallas_call(
        functools.partial(_conv3x3_kernel, taps=taps, dys=dys, d=d, P=P, R=R,
                          W=W, Wd=Wd, Hp=Hp, col_lo=col_lo, dx0=dx0,
                          relu=relu),
        out_shape=jax.ShapeDtypeStruct((N, H, W, Cout), jnp.bfloat16),
        grid_spec=pltpu.PrefetchScalarGridSpec(
            num_scalar_prefetch=0,
            grid=(N, H // R),
            in_specs=[
                pl.BlockSpec(memory_space=pl.ANY),                  # padded x
                pl.BlockSpec((len(taps), Cin, Cout), lambda n, i: (0, 0, 0)),
                pl.BlockSpec((1, Cout), lambda n, i: (0, 0)),
                pl.BlockSpec((1, Cout), lambda n, i: (0, 0)),
            ],
            out_specs=pl.BlockSpec((1, R, W, Cout), lambda n, i: (n, i, 0, 0)),
            scratch_shapes=[
                pltpu.VMEM((len(dys), R, Wd, Cin), jnp.bfloat16),
                pltpu.VMEM((R * W, Cout), jnp.float32),
                pltpu.SemaphoreType.DMA((len(dys),)),
            ]),
        compiler_params=pltpu.CompilerParams(
            dimension_semantics=("parallel", "parallel")),
    )(xp, wsel, sp, bp)


# ---------------------------------------------------------------------------
# Kernel 3: fused ASSP conv1 — sum of 4 branch matmuls + per-batch bias
#   (pooled branch folded into the bias) + BN + ReLU.  No 1280-ch concat.
#   f32 VMEM accumulator, bf16 output, tm capped at 128 (VMEM/vreg safe).
# ---------------------------------------------------------------------------
def _aspp_fuse_kernel(x1, x2, x3, x4, w_ref, s_ref, b_ref, o_ref, acc_ref,
                      *, relu):
    acc_ref[...] = jnp.dot(x1[0], w_ref[0], preferred_element_type=jnp.float32)
    acc_ref[...] += jnp.dot(x2[0], w_ref[1], preferred_element_type=jnp.float32)
    acc_ref[...] += jnp.dot(x3[0], w_ref[2], preferred_element_type=jnp.float32)
    acc_ref[...] += jnp.dot(x4[0], w_ref[3], preferred_element_type=jnp.float32)
    y = acc_ref[...] * s_ref[...] + b_ref[0]
    if relu:
        y = jnp.maximum(y, 0.0)
    o_ref[0] = y.astype(o_ref.dtype)


def aspp_conv1_fused(x1, x2, x3, x4, w4, scale, bias_nb, relu=True):
    N, H, W, C = x1.shape
    Cout = w4.shape[-1]
    HW = H * W
    tm = 128 if HW >= 128 else _round_up(HW, 8)
    HWp = _round_up(HW, tm)                 # works for odd HW (e.g. 33*33)

    def prep(a):
        a = a.reshape(N, HW, C).astype(jnp.bfloat16)
        if HWp != HW:
            a = jnp.pad(a, ((0, 0), (0, HWp - HW), (0, 0)))
        return a

    xs = [prep(a) for a in (x1, x2, x3, x4)]
    wb = w4.astype(jnp.bfloat16)                           # (4, C, Cout)
    sp = scale.astype(jnp.float32).reshape(1, Cout)
    bp = bias_nb.astype(jnp.float32).reshape(N, 1, Cout)

    out = pl.pallas_call(
        functools.partial(_aspp_fuse_kernel, relu=relu),
        out_shape=jax.ShapeDtypeStruct((N, HWp, Cout), jnp.bfloat16),
        grid_spec=pltpu.PrefetchScalarGridSpec(
            num_scalar_prefetch=0,
            grid=(N, HWp // tm),
            in_specs=[pl.BlockSpec((1, tm, C), lambda n, i: (n, i, 0))] * 4 + [
                pl.BlockSpec((4, C, Cout), lambda n, i: (0, 0, 0)),
                pl.BlockSpec((1, Cout), lambda n, i: (0, 0)),
                pl.BlockSpec((1, 1, Cout), lambda n, i: (n, 0, 0)),
            ],
            out_specs=pl.BlockSpec((1, tm, Cout), lambda n, i: (n, i, 0)),
            scratch_shapes=[pltpu.VMEM((tm, Cout), jnp.float32)],
        ),
        compiler_params=pltpu.CompilerParams(
            dimension_semantics=("parallel", "parallel")),
    )(*xs, wb, sp, bp)
    return out[:, :HW].reshape(N, H, W, Cout)


# ---------------------------------------------------------------------------
# Bilinear resize (PyTorch F.interpolate semantics) — tiny glue in plain JAX
# ---------------------------------------------------------------------------
def _bilinear_matrix(in_size, out_size, align_corners):
    if align_corners:
        if out_size == 1:
            src = jnp.zeros((1,), jnp.float32)
        else:
            src = jnp.arange(out_size, dtype=jnp.float32) * (
                (in_size - 1) / (out_size - 1))
    else:
        scale = in_size / out_size
        src = (jnp.arange(out_size, dtype=jnp.float32) + 0.5) * scale - 0.5
        src = jnp.clip(src, 0.0, float(in_size - 1))
    i0 = jnp.clip(jnp.floor(src).astype(jnp.int32), 0, in_size - 1)
    i1 = jnp.minimum(i0 + 1, in_size - 1)
    w1 = src - i0.astype(jnp.float32)
    w0 = 1.0 - w1
    M = jnp.zeros((out_size, in_size), jnp.float32)
    r = jnp.arange(out_size)
    M = M.at[r, i0].add(w0)
    M = M.at[r, i1].add(w1)
    return M


def bilinear_resize(x_nhwc, out_h, out_w, align_corners):
    _, H, W, _ = x_nhwc.shape
    Mh = _bilinear_matrix(H, out_h, align_corners)
    Mw = _bilinear_matrix(W, out_w, align_corners)
    return jnp.einsum("ha,wb,nabc->nhwc", Mh, Mw, x_nhwc)


# ---------------------------------------------------------------------------
# Parameters (deterministic kaiming init, BN folded to scale/shift, eval mode)
# ---------------------------------------------------------------------------
_BN_EPS = 1e-5
_BN_SCALE = 1.0 / math.sqrt(1.0 + _BN_EPS)   # weight=1, running_var=1
_BN_SHIFT = 1e-4                             # bias=1e-4, running_mean=0


def _kaiming(key, cout, cin, kh, kw):
    std = math.sqrt(2.0 / (cin * kh * kw))
    return jax.random.normal(key, (cout, cin, kh, kw), jnp.float32) * std


def make_params(key, aspp_channels=512, low_level_channels=64, in_c=3):
    ks = jax.random.split(key, 12)
    return {
        # ASSP (aspp_stride=8 -> dilations [1, 12, 24, 36])
        "aspp1_w": _kaiming(ks[0], 256, aspp_channels, 1, 1),
        "aspp2_w": _kaiming(ks[1], 256, aspp_channels, 3, 3),
        "aspp3_w": _kaiming(ks[2], 256, aspp_channels, 3, 3),
        "aspp4_w": _kaiming(ks[3], 256, aspp_channels, 3, 3),
        "avgpool_w": _kaiming(ks[4], 256, aspp_channels, 1, 1),
        "assp_conv1_w": _kaiming(ks[5], 256, 256 * 5, 1, 1),
        # Decoder
        "dec_conv1_w": _kaiming(ks[6], 48, low_level_channels, 1, 1),
        "dec_out1_w": _kaiming(ks[7], 256, 48 + 256, 3, 3),
        "dec_out2_w": _kaiming(ks[8], 256, 256, 3, 3),
        # backbone stand-in (TODO(synk): real ResNet18 backbone not in module)
        "bb_feat1_w": _kaiming(ks[9], low_level_channels, in_c, 1, 1),
        "bb_feat4_w": _kaiming(ks[10], aspp_channels, in_c, 1, 1),
    }


def _bn(n):
    return (jnp.full((n,), _BN_SCALE, jnp.float32),
            jnp.full((n,), _BN_SHIFT, jnp.float32))


# ---------------------------------------------------------------------------
# Module forwards (NHWC internally)
# ---------------------------------------------------------------------------
def assp_forward(x, p, dilations=(1, 12, 24, 36)):
    Nb, H, W, Cin = x.shape
    s, b = _bn(256)
    x1 = conv1x1_bn_relu(x, p["aspp1_w"], s, b)

    # One shared padded copy (max dilation) reused by every dilated branch
    # that actually needs spatial taps; branches whose off-centre taps land
    # fully in zero padding degenerate to 1x1 and skip padding entirely.
    dil3 = dilations[1:]
    needs_pad = any((d < H) or (d < W) for d in dil3)
    shared = _pad_conv_input(x, max(dil3)) if needs_pad else None
    x2 = conv3x3_bn_relu(x, p["aspp2_w"], s, b, dil3[0], padded=shared)
    x3 = conv3x3_bn_relu(x, p["aspp3_w"], s, b, dil3[1], padded=shared)
    x4 = conv3x3_bn_relu(x, p["aspp4_w"], s, b, dil3[2], padded=shared)

    # avg_pool branch: AdaptiveAvgPool2d((1,1)) -> 1x1 conv -> BN -> ReLU.
    # Its bilinear upsample from 1x1 is a spatial broadcast, so it is folded
    # into a per-batch bias of the fused conv1 below (no 1280-ch concat).
    pooled = jnp.mean(x.astype(jnp.float32), axis=(1, 2))          # (Nb, Cin)
    w_avg = p["avgpool_w"].reshape(256, Cin).T                     # (Cin, 256)
    x5 = jnp.maximum(pooled @ w_avg * s + b, 0.0)                  # (Nb, 256)

    w1 = p["assp_conv1_w"].reshape(256, 256 * 5).T.reshape(5, 256, 256)
    bias_nb = (x5 @ w1[4]) * s + b                                 # (Nb, 256)

    y = aspp_conv1_fused(x1, x2, x3, x4, w1[:4], s, bias_nb, relu=True)
    # Dropout(0.5): eval-mode identity.
    return y


def decoder_forward(x, low_level, p):
    s48, b48 = _bn(48)
    s256, b256 = _bn(256)
    low = conv1x1_bn_relu(low_level, p["dec_conv1_w"], s48, b48)   # tiny -> XLA
    Hl, Wl = low.shape[1], low.shape[2]
    x_up = bilinear_resize(x, Hl, Wl, align_corners=True)
    cat = jnp.concatenate(
        [low.astype(jnp.bfloat16), x_up.astype(jnp.bfloat16)], axis=-1)  # 304
    y = conv3x3_bn_relu(cat, p["dec_out1_w"], s256, b256, dilation=1)
    y = conv3x3_bn_relu(y, p["dec_out2_w"], s256, b256, dilation=1)
    return y


def backbone_stub(x_nchw, p):
    """Deterministic stand-in producing ResNet18-shaped features.
    feat1: stride 4, 64 ch ; feat4: stride 16, 512 ch (NHWC)."""
    x = jnp.transpose(x_nchw, (0, 2, 3, 1))                        # NHWC

    def pool(v, st):
        n, h, w, c = v.shape
        return v.reshape(n, h // st, st, w // st, st, c).mean(axis=(2, 4))

    feat1 = conv1x1_bn_relu(pool(x, 4), p["bb_feat1_w"],
                            jnp.ones((64,), jnp.float32),
                            jnp.zeros((64,), jnp.float32))
    feat4 = conv1x1_bn_relu(pool(x, 16), p["bb_feat4_w"],
                            jnp.ones((512,), jnp.float32),
                            jnp.zeros((512,), jnp.float32))
    return [feat1, None, None, feat4]


def deeplab14_forward(x_nchw, p):
    feats = backbone_stub(x_nchw, p)
    feat1, feat4 = feats[0], feats[3]
    h_, w_ = feat4.shape[1], feat4.shape[2]
    feature = assp_forward(feat4, p)
    x_out = decoder_forward(feature, feat1, p)
    # F.interpolate(feat1, size=(h_, w_), mode='bilinear')  (align_corners=False)
    feat1_r = bilinear_resize(feat1, h_, w_, align_corners=False)
    feat = jnp.concatenate([feat1_r.astype(jnp.float32),
                            feat4.astype(jnp.float32)], axis=-1)
    # return in PyTorch NCHW convention (float32, like the reference module)
    return (jnp.transpose(x_out, (0, 3, 1, 2)).astype(jnp.float32),
            jnp.transpose(feat, (0, 3, 1, 2)))


# ---------------------------------------------------------------------------
# Reference (XLA) 3x3 dilated conv used only for a correctness spot-check.
# ---------------------------------------------------------------------------
def _conv3x3_reference(x, w, scale, shift, d, relu=True):
    y = jax.lax.conv_general_dilated(
        x.astype(jnp.float32),
        jnp.transpose(w, (2, 3, 1, 0)).astype(jnp.float32),
        window_strides=(1, 1), padding=[(d, d), (d, d)], rhs_dilation=(d, d),
        dimension_numbers=("NHWC", "HWIO", "NHWC"),
        precision=jax.lax.Precision.HIGHEST)
    y = y * scale + shift
    return jnp.maximum(y, 0.0) if relu else y


# ---------------------------------------------------------------------------
if __name__ == "__main__":
    # --- quick correctness check of the row-blocked conv3x3 kernel ---------
    kt1, kt2 = jax.random.split(jax.random.PRNGKey(1))
    xt = jax.random.normal(kt1, (1, 16, 16, 256), jnp.float32)
    wt = _kaiming(kt2, 256, 256, 3, 3)
    xt = xt.astype(jnp.bfloat16).astype(jnp.float32)      # bf16-representable
    wt = wt.astype(jnp.bfloat16).astype(jnp.float32)
    s_t, b_t = _bn(256)
    ref = _conv3x3_reference(xt, wt, s_t, b_t, 2)
    got = conv3x3_bn_relu(xt, wt, s_t, b_t, 2).astype(jnp.float32)
    err = float(jnp.max(jnp.abs(got - ref)))
    assert err < 5e-2, f"conv3x3 mismatch: {err}"
    # same conv through the shared-padding path (P > dilation)
    got2 = conv3x3_bn_relu(xt, wt, s_t, b_t, 2,
                           padded=_pad_conv_input(xt, 6)).astype(jnp.float32)
    err2 = float(jnp.max(jnp.abs(got2 - ref)))
    assert err2 < 5e-2, f"conv3x3 shared-pad mismatch: {err2}"

    # --- full forward pass ---------------------------------------------------
    key = jax.random.PRNGKey(0)
    kx, kp = jax.random.split(key)
    x = jax.random.normal(kx, (2, 3, 128, 128), jnp.float32)   # NCHW input
    params = make_params(kp)

    fwd = jax.jit(deeplab14_forward)
    out, feat = fwd(x, params)
    jax.block_until_ready(out)
    jax.block_until_ready(feat)

    assert out.shape == (2, 256, 32, 32), out.shape   # decoder out @ low-level
    assert feat.shape == (2, 64 + 512, 8, 8), feat.shape
    assert bool(jnp.all(jnp.isfinite(out))) and bool(jnp.all(jnp.isfinite(feat)))
    print("KERNEL_OK")
</pallas_src>

<mosaic_0001>
module attributes {stable_mosaic.version = 11 : i64} {
  func.func @_conv3x3_kernel(%arg0: i32, %arg1: i32, %arg2: memref<20x28x256xbf16, #tpu.memory_space<any>>, %arg3: memref<9x256x256xbf16, #tpu.memory_space<vmem>>, %arg4: memref<1x256xf32, #tpu.memory_space<vmem>>, %arg5: memref<1x256xf32, #tpu.memory_space<vmem>>, %arg6: memref<1x16x16x256xbf16, #tpu.memory_space<vmem>>, %arg7: memref<3x16x24x256xbf16, #tpu.memory_space<vmem>>, %arg8: memref<256x256xf32, #tpu.memory_space<vmem>>, %arg9: memref<3x!tpu.dma_semaphore, #tpu.memory_space<semaphore_mem>>) attributes {dimension_semantics = [#tpu.dimension_semantics<parallel>, #tpu.dimension_semantics<parallel>], iteration_bounds = array<i64: 1, 1>, scalar_prefetch = 0 : i64, scratch_operands = 3 : i64, tpu.core_type = #tpu.core_type<tc>, window_params = [{}, {pipeline_mode = #tpu.pipeline_mode<synchronous>, transform_indices = @transform_1, window_bounds = array<i64: 9, 256, 256>}, {pipeline_mode = #tpu.pipeline_mode<synchronous>, transform_indices = @transform_2, window_bounds = array<i64: 1, 256>}, {pipeline_mode = #tpu.pipeline_mode<synchronous>, transform_indices = @transform_3, window_bounds = array<i64: 1, 256>}, {transform_indices = @transform_4, window_bounds = array<i64: 1, 16, 16, 256>}]} {
    %c20_i32 = arith.constant 20 : i32
    %0 = arith.muli %arg0, %c20_i32 : i32
    %c16_i32 = arith.constant 16 : i32
    %1 = arith.muli %arg1, %c16_i32 : i32
    %2 = arith.addi %0, %1 : i32
    %c2_i32 = arith.constant 2 : i32
    %3 = arith.addi %2, %c2_i32 : i32
    %c2_i32_0 = arith.constant 2 : i32
    %4 = arith.subi %3, %c2_i32_0 : i32
    %c0_i32 = arith.constant 0 : i32
    %5 = arith.addi %4, %c0_i32 : i32
    %c0_i32_1 = arith.constant 0 : i32
    %c0_i32_2 = arith.constant 0 : i32
    %c0_i32_3 = arith.constant 0 : i32
    %c0_i32_4 = arith.constant 0 : i32
    %6 = tpu.memref_slice %arg2[%5, %c0_i32_3, %c0_i32_4] : memref<20x28x256xbf16, #tpu.memory_space<any>> -> memref<16x24x256xbf16, #tpu.memory_space<any>>
    %c0_i32_5 = arith.constant 0 : i32
    %c0_i32_6 = arith.constant 0 : i32
    %c0_i32_7 = arith.constant 0 : i32
    %7 = tpu.memref_slice %arg7[%c0_i32_1, %c0_i32_5, %c0_i32_6, %c0_i32_7] : memref<3x16x24x256xbf16, #tpu.memory_space<vmem>> -> memref<1x16x24x256xbf16, #tpu.memory_space<vmem>>
    %8 = tpu.memref_squeeze %7 : memref<1x16x24x256xbf16, #tpu.memory_space<vmem>> -> memref<16x24x256xbf16, #tpu.memory_space<vmem>>
    %9 = tpu.memref_slice %arg9[%c0_i32_2] : memref<3x!tpu.dma_semaphore, #tpu.memory_space<semaphore_mem>> -> memref<1x!tpu.dma_semaphore, #tpu.memory_space<semaphore_mem>>
    %10 = tpu.memref_squeeze %9 : memref<1x!tpu.dma_semaphore, #tpu.memory_space<semaphore_mem>> -> memref<!tpu.dma_semaphore, #tpu.memory_space<semaphore_mem>>
    tpu.enqueue_dma source(%6 : memref<16x24x256xbf16, #tpu.memory_space<any>>) target(%8 : memref<16x24x256xbf16, #tpu.memory_space<vmem>>) target_semaphore(%10 : memref<!tpu.dma_semaphore, #tpu.memory_space<semaphore_mem>>)
    %c2_i32_8 = arith.constant 2 : i32
    %11 = arith.addi %4, %c2_i32_8 : i32
    %c1_i32 = arith.constant 1 : i32
    %c1_i32_9 = arith.constant 1 : i32
    %c0_i32_10 = arith.constant 0 : i32
    %c0_i32_11 = arith.constant 0 : i32
    %12 = tpu.memref_slice %arg2[%11, %c0_i32_10, %c0_i32_11] : memref<20x28x256xbf16, #tpu.memory_space<any>> -> memref<16x24x256xbf16, #tpu.memory_space<any>>
    %c0_i32_12 = arith.constant 0 : i32
    %c0_i32_13 = arith.constant 0 : i32
    %c0_i32_14 = arith.constant 0 : i32
    %13 = tpu.memref_slice %arg7[%c1_i32, %c0_i32_12, %c0_i32_13, %c0_i32_14] : memref<3x16x24x256xbf16, #tpu.memory_space<vmem>> -> memref<1x16x24x256xbf16, #tpu.memory_space<vmem>>
    %14 = tpu.memref_squeeze %13 : memref<1x16x24x256xbf16, #tpu.memory_space<vmem>> -> memref<16x24x256xbf16, #tpu.memory_space<vmem>>
    %15 = tpu.memref_slice %arg9[%c1_i32_9] : memref<3x!tpu.dma_semaphore, #tpu.memory_space<semaphore_mem>> -> memref<1x!tpu.dma_semaphore, #tpu.memory_space<semaphore_mem>>
    %16 = tpu.memref_squeeze %15 : memref<1x!tpu.dma_semaphore, #tpu.memory_space<semaphore_mem>> -> memref<!tpu.dma_semaphore, #tpu.memory_space<semaphore_mem>>
    tpu.enqueue_dma source(%12 : memref<16x24x256xbf16, #tpu.memory_space<any>>) target(%14 : memref<16x24x256xbf16, #tpu.memory_space<vmem>>) target_semaphore(%16 : memref<!tpu.dma_semaphore, #tpu.memory_space<semaphore_mem>>)
    %c4_i32 = arith.constant 4 : i32
    %17 = arith.addi %4, %c4_i32 : i32
    %c2_i32_15 = arith.constant 2 : i32
    %c2_i32_16 = arith.constant 2 : i32
    %c0_i32_17 = arith.constant 0 : i32
    %c0_i32_18 = arith.constant 0 : i32
    %18 = tpu.memref_slice %arg2[%17, %c0_i32_17, %c0_i32_18] : memref<20x28x256xbf16, #tpu.memory_space<any>> -> memref<16x24x256xbf16, #tpu.memory_space<any>>
    %c0_i32_19 = arith.constant 0 : i32
    %c0_i32_20 = arith.constant 0 : i32
    %c0_i32_21 = arith.constant 0 : i32
    %19 = tpu.memref_slice %arg7[%c2_i32_15, %c0_i32_19, %c0_i32_20, %c0_i32_21] : memref<3x16x24x256xbf16, #tpu.memory_space<vmem>> -> memref<1x16x24x256xbf16, #tpu.memory_space<vmem>>
    %20 = tpu.memref_squeeze %19 : memref<1x16x24x256xbf16, #tpu.memory_space<vmem>> -> memref<16x24x256xbf16, #tpu.memory_space<vmem>>
    %21 = tpu.memref_slice %arg9[%c2_i32_16] : memref<3x!tpu.dma_semaphore, #tpu.memory_space<semaphore_mem>> -> memref<1x!tpu.dma_semaphore, #tpu.memory_space<semaphore_mem>>
    %22 = tpu.memref_squeeze %21 : memref<1x!tpu.dma_semaphore, #tpu.memory_space<semaphore_mem>> -> memref<!tpu.dma_semaphore, #tpu.memory_space<semaphore_mem>>
    tpu.enqueue_dma source(%18 : memref<16x24x256xbf16, #tpu.memory_space<any>>) target(%20 : memref<16x24x256xbf16, #tpu.memory_space<vmem>>) target_semaphore(%22 : memref<!tpu.dma_semaphore, #tpu.memory_space<semaphore_mem>>)
    %c0_i32_22 = arith.constant 0 : i32
    %23 = arith.addi %4, %c0_i32_22 : i32
    %c0_i32_23 = arith.constant 0 : i32
    %c0_i32_24 = arith.constant 0 : i32
    %c0_i32_25 = arith.constant 0 : i32
    %c0_i32_26 = arith.constant 0 : i32
    %24 = tpu.memref_slice %arg2[%23, %c0_i32_25, %c0_i32_26] : memref<20x28x256xbf16, #tpu.memory_space<any>> -> memref<16x24x256xbf16, #tpu.memory_space<any>>
    %c0_i32_27 = arith.constant 0 : i32
    %c0_i32_28 = arith.constant 0 : i32
    %c0_i32_29 = arith.constant 0 : i32
    %25 = tpu.memref_slice %arg7[%c0_i32_23, %c0_i32_27, %c0_i32_28, %c0_i32_29] : memref<3x16x24x256xbf16, #tpu.memory_space<vmem>> -> memref<1x16x24x256xbf16, #tpu.memory_space<vmem>>
    %26 = tpu.memref_squeeze %25 : memref<1x16x24x256xbf16, #tpu.memory_space<vmem>> -> memref<16x24x256xbf16, #tpu.memory_space<vmem>>
    %27 = tpu.memref_slice %arg9[%c0_i32_24] : memref<3x!tpu.dma_semaphore, #tpu.memory_space<semaphore_mem>> -> memref<1x!tpu.dma_semaphore, #tpu.memory_space<semaphore_mem>>
    %28 = tpu.memref_squeeze %27 : memref<1x!tpu.dma_semaphore, #tpu.memory_space<semaphore_mem>> -> memref<!tpu.dma_semaphore, #tpu.memory_space<semaphore_mem>>
    tpu.wait_dma2 semaphore(%28 : memref<!tpu.dma_semaphore, #tpu.memory_space<semaphore_mem>>) src(%24 : memref<16x24x256xbf16, #tpu.memory_space<any>>) dst(%26 : memref<16x24x256xbf16, #tpu.memory_space<vmem>>)
    %c0 = arith.constant 0 : index
    %c0_30 = arith.constant 0 : index
    %c0_31 = arith.constant 0 : index
    %c0_32 = arith.constant 0 : index
    %29 = vector.load %arg7[%c0, %c0_30, %c0_31, %c0_32] : memref<3x16x24x256xbf16, #tpu.memory_space<vmem>>, vector<1x16x16x256xbf16>
    %30 = vector.shape_cast %29 : vector<1x16x16x256xbf16> to vector<16x16x256xbf16>
    %31 = vector.shape_cast %30 : vector<16x16x256xbf16> to vector<256x256xbf16>
    %c0_33 = arith.constant 0 : index
    %c0_34 = arith.constant 0 : index
    %c0_35 = arith.constant 0 : index
    %32 = vector.load %arg3[%c0_33, %c0_34, %c0_35] : memref<9x256x256xbf16, #tpu.memory_space<vmem>>, vector<1x256x256xbf16>
    %33 = vector.shape_cast %32 : vector<1x256x256xbf16> to vector<256x256xbf16>
    %cst = arith.constant dense<0.000000e+00> : vector<256x256xf32>
    %34 = tpu.matmul %31, %33, %cst {dimension_numbers = #tpu.dot_dimension_numbers<[1], [0], [0], [1], [0, 0, 1, 1], [], []>} : vector<256x256xbf16>, vector<256x256xbf16>, vector<256x256xf32> -> vector<256x256xf32>
    %c0_36 = arith.constant 0 : index
    %c0_37 = arith.constant 0 : index
    %35 = vector.load %arg8[%c0_36, %c0_37] : memref<256x256xf32, #tpu.memory_space<vmem>>, vector<256x256xf32>
    tpu.vector_store %arg8[%c0_36, %c0_37], %34 {strides = array<i32>} : memref<256x256xf32, #tpu.memory_space<vmem>>, vector<256x256xf32>,
    %c0_38 = arith.constant 0 : index
    %c0_39 = arith.constant 0 : index
    %c2 = arith.constant 2 : index
    %c0_40 = arith.constant 0 : index
    %36 = vector.load %arg7[%c0_38, %c0_39, %c2, %c0_40] : memref<3x16x24x256xbf16, #tpu.memory_space<vmem>>, vector<1x16x16x256xbf16>
    %37 = vector.shape_cast %36 : vector<1x16x16x256xbf16> to vector<16x16x256xbf16>
    %38 = vector.shape_cast %37 : vector<16x16x256xbf16> to vector<256x256xbf16>
    %c1 = arith.constant 1 : index
    %c0_41 = arith.constant 0 : index
    %c0_42 = arith.constant 0 : index
    %39 = vector.load %arg3[%c1, %c0_41, %c0_42] : memref<9x256x256xbf16, #tpu.memory_space<vmem>>, vector<1x256x256xbf16>
    %40 = vector.shape_cast %39 : vector<1x256x256xbf16> to vector<256x256xbf16>
    %cst_43 = arith.constant dense<0.000000e+00> : vector<256x256xf32>
    %41 = tpu.matmul %38, %40, %cst_43 {dimension_numbers = #tpu.dot_dimension_numbers<[1], [0], [0], [1], [0, 0, 1, 1], [], []>} : vector<256x256xbf16>, vector<256x256xbf16>, vector<256x256xf32> -> vector<256x256xf32>
    %c0_44 = arith.constant 0 : index
    %c0_45 = arith.constant 0 : index
    %42 = vector.load %arg8[%c0_44, %c0_45] : memref<256x256xf32, #tpu.memory_space<vmem>>, vector<256x256xf32>
    %43 = arith.addf %42, %41 : vector<256x256xf32>
    %c0_46 = arith.constant 0 : index
    %c0_47 = arith.constant 0 : index
    %44 = vector.load %arg8[%c0_46, %c0_47] : memref<256x256xf32, #tpu.memory_space<vmem>>, vector<256x256xf32>
    tpu.vector_store %arg8[%c0_46, %c0_47], %43 {strides = array<i32>} : memref<256x256xf32, #tpu.memory_space<vmem>>, vector<256x256xf32>,
    %c0_48 = arith.constant 0 : index
    %c0_49 = arith.constant 0 : index
    %c4 = arith.constant 4 : index
    %c0_50 = arith.constant 0 : index
    %45 = vector.load %arg7[%c0_48, %c0_49, %c4, %c0_50] : memref<3x16x24x256xbf16, #tpu.memory_space<vmem>>, vector<1x16x16x256xbf16>
    %46 = vector.shape_cast %45 : vector<1x16x16x256xbf16> to vector<16x16x256xbf16>
    %47 = vector.shape_cast %46 : vector<16x16x256xbf16> to vector<256x256xbf16>
    %c2_51 = arith.constant 2 : index
    %c0_52 = arith.constant 0 : index
    %c0_53 = arith.constant 0 : index
    %48 = vector.load %arg3[%c2_51, %c0_52, %c0_53] : memref<9x256x256xbf16, #tpu.memory_space<vmem>>, vector<1x256x256xbf16>
    %49 = vector.shape_cast %48 : vector<1x256x256xbf16> to vector<256x256xbf16>
    %cst_54 = arith.constant dense<0.000000e+00> : vector<256x256xf32>
    %50 = tpu.matmul %47, %49, %cst_54 {dimension_numbers = #tpu.dot_dimension_numbers<[1], [0], [0], [1], [0, 0, 1, 1], [], []>} : vector<256x256xbf16>, vector<256x256xbf16>, vector<256x256xf32> -> vector<256x256xf32>
    %c0_55 = arith.constant 0 : index
    %c0_56 = arith.constant 0 : index
    %51 = vector.load %arg8[%c0_55, %c0_56] : memref<256x256xf32, #tpu.memory_space<vmem>>, vector<256x256xf32>
    %52 = arith.addf %51, %50 : vector<256x256xf32>
    %c0_57 = arith.constant 0 : index
    %c0_58 = arith.constant 0 : index
    %53 = vector.load %arg8[%c0_57, %c0_58] : memref<256x256xf32, #tpu.memory_space<vmem>>, vector<256x256xf32>
    tpu.vector_store %arg8[%c0_57, %c0_58], %52 {strides = array<i32>} : memref<256x256xf32, #tpu.memory_space<vmem>>, vector<256x256xf32>,
    %c2_i32_59 = arith.constant 2 : i32
    %54 = arith.addi %4, %c2_i32_59 : i32
    %c1_i32_60 = arith.constant 1 : i32
    %c1_i32_61 = arith.constant 1 : i32
    %c0_i32_62 = arith.constant 0 : i32
    %c0_i32_63 = arith.constant 0 : i32
    %55 = tpu.memref_slice %arg2[%54, %c0_i32_62, %c0_i32_63] : memref<20x28x256xbf16, #tpu.memory_space<any>> -> memref<16x24x256xbf16, #tpu.memory_space<any>>
    %c0_i32_64 = arith.constant 0 : i32
    %c0_i32_65 = arith.constant 0 : i32
    %c0_i32_66 = arith.constant 0 : i32
    %56 = tpu.memref_slice %arg7[%c1_i32_60, %c0_i32_64, %c0_i32_65, %c0_i32_66] : memref<3x16x24x256xbf16, #tpu.memory_space<vmem>> -> memref<1x16x24x256xbf16, #tpu.memory_space<vmem>>
    %57 = tpu.memref_squeeze %56 : memref<1x16x24x256xbf16, #tpu.memory_space<vmem>> -> memref<16x24x256xbf16, #tpu.memory_space<vmem>>
    %58 = tpu.memref_slice %arg9[%c1_i32_61] : memref<3x!tpu.dma_semaphore, #tpu.memory_space<semaphore_mem>> -> memref<1x!tpu.dma_semaphore, #tpu.memory_space<semaphore_mem>>
    %59 = tpu.memref_squeeze %58 : memref<1x!tpu.dma_semaphore, #tpu.memory_space<semaphore_mem>> -> memref<!tpu.dma_semaphore, #tpu.memory_space<semaphore_mem>>
    tpu.wait_dma2 semaphore(%59 : memref<!tpu.dma_semaphore, #tpu.memory_space<semaphore_mem>>) src(%55 : memref<16x24x256xbf16, #tpu.memory_space<any>>) dst(%57 : memref<16x24x256xbf16, #tpu.memory_space<vmem>>)
    %c1_67 = arith.constant 1 : index
    %c0_68 = arith.constant 0 : index
    %c0_69 = arith.constant 0 : index
    %c0_70 = arith.constant 0 : index
    %60 = vector.load %arg7[%c1_67, %c0_68, %c0_69, %c0_70] : memref<3x16x24x256xbf16, #tpu.memory_space<vmem>>, vector<1x16x16x256xbf16>
    %61 = vector.shape_cast %60 : vector<1x16x16x256xbf16> to vector<16x16x256xbf16>
    %62 = vector.shape_cast %61 : vector<16x16x256xbf16> to vector<256x256xbf16>
    %c3 = arith.constant 3 : index
    %c0_71 = arith.constant 0 : index
    %c0_72 = arith.constant 0 : index
    %63 = vector.load %arg3[%c3, %c0_71, %c0_72] : memref<9x256x256xbf16, #tpu.memory_space<vmem>>, vector<1x256x256xbf16>
    %64 = vector.shape_cast %63 : vector<1x256x256xbf16> to vector<256x256xbf16>
    %cst_73 = arith.constant dense<0.000000e+00> : vector<256x256xf32>
    %65 = tpu.matmul %62, %64, %cst_73 {dimension_numbers = #tpu.dot_dimension_numbers<[1], [0], [0], [1], [0, 0, 1, 1], [], []>} : vector<256x256xbf16>, vector<256x256xbf16>, vector<256x256xf32> -> vector<256x256xf32>
    %c0_74 = arith.constant 0 : index
    %c0_75 = arith.constant 0 : index
    %66 = vector.load %arg8[%c0_74, %c0_75] : memref<256x256xf32, #tpu.memory_space<vmem>>, vector<256x256xf32>
    %67 = arith.addf %66, %65 : vector<256x256xf32>
    %c0_76 = arith.constant 0 : index
    %c0_77 = arith.constant 0 : index
    %68 = vector.load %arg8[%c0_76, %c0_77] : memref<256x256xf32, #tpu.memory_space<vmem>>, vector<256x256xf32>
    tpu.vector_store %arg8[%c0_76, %c0_77], %67 {strides = array<i32>} : memref<256x256xf32, #tpu.memory_space<vmem>>, vector<256x256xf32>,
    %c1_78 = arith.constant 1 : index
    %c0_79 = arith.constant 0 : index
    %c2_80 = arith.constant 2 : index
    %c0_81 = arith.constant 0 : index
    %69 = vector.load %arg7[%c1_78, %c0_79, %c2_80, %c0_81] : memref<3x16x24x256xbf16, #tpu.memory_space<vmem>>, vector<1x16x16x256xbf16>
    %70 = vector.shape_cast %69 : vector<1x16x16x256xbf16> to vector<16x16x256xbf16>
    %71 = vector.shape_cast %70 : vector<16x16x256xbf16> to vector<256x256xbf16>
    %c4_82 = arith.constant 4 : index
    %c0_83 = arith.constant 0 : index
    %c0_84 = arith.constant 0 : index
    %72 = vector.load %arg3[%c4_82, %c0_83, %c0_84] : memref<9x256x256xbf16, #tpu.memory_space<vmem>>, vector<1x256x256xbf16>
    %73 = vector.shape_cast %72 : vector<1x256x256xbf16> to vector<256x256xbf16>
    %cst_85 = arith.constant dense<0.000000e+00> : vector<256x256xf32>
    %74 = tpu.matmul %71, %73, %cst_85 {dimension_numbers = #tpu.dot_dimension_numbers<[1], [0], [0], [1], [0, 0, 1, 1], [], []>} : vector<256x256xbf16>, vector<256x256xbf16>, vector<256x256xf32> -> vector<256x256xf32>
    %c0_86 = arith.constant 0 : index
    %c0_87 = arith.constant 0 : index
    %75 = vector.load %arg8[%c0_86, %c0_87] : memref<256x256xf32, #tpu.memory_space<vmem>>, vector<256x256xf32>
    %76 = arith.addf %75, %74 : vector<256x256xf32>
    %c0_88 = arith.constant 0 : index
    %c0_89 = arith.constant 0 : index
    %77 = vector.load %arg8[%c0_88, %c0_89] : memref<256x256xf32, #tpu.memory_space<vmem>>, vector<256x256xf32>
    tpu.vector_store %arg8[%c0_88, %c0_89], %76 {strides = array<i32>} : memref<256x256xf32, #tpu.memory_space<vmem>>, vector<256x256xf32>,
    %c1_90 = arith.constant 1 : index
    %c0_91 = arith.constant 0 : index
    %c4_92 = arith.constant 4 : index
    %c0_93 = arith.constant 0 : index
    %78 = vector.load %arg7[%c1_90, %c0_91, %c4_92, %c0_93] : memref<3x16x24x256xbf16, #tpu.memory_space<vmem>>, vector<1x16x16x256xbf16>
    %79 = vector.shape_cast %78 : vector<1x16x16x256xbf16> to vector<16x16x256xbf16>
    %80 = vector.shape_cast %79 : vector<16x16x256xbf16> to vector<256x256xbf16>
    %c5 = arith.constant 5 : index
    %c0_94 = arith.constant 0 : index
    %c0_95 = arith.constant 0 : index
    %81 = vector.load %arg3[%c5, %c0_94, %c0_95] : memref<9x256x256xbf16, #tpu.memory_space<vmem>>, vector<1x256x256xbf16>
    %82 = vector.shape_cast %81 : vector<1x256x256xbf16> to vector<256x256xbf16>
    %cst_96 = arith.constant dense<0.000000e+00> : vector<256x256xf32>
    %83 = tpu.matmul %80, %82, %cst_96 {dimension_numbers = #tpu.dot_dimension_numbers<[1], [0], [0], [1], [0, 0, 1, 1], [], []>} : vector<256x256xbf16>, vector<256x256xbf16>, vector<256x256xf32> -> vector<256x256xf32>
    %c0_97 = arith.constant 0 : index
    %c0_98 = arith.constant 0 : index
    %84 = vector.load %arg8[%c0_97, %c0_98] : memref<256x256xf32, #tpu.memory_space<vmem>>, vector<256x256xf32>
    %85 = arith.addf %84, %83 : vector<256x256xf32>
    %c0_99 = arith.constant 0 : index
    %c0_100 = arith.constant 0 : index
    %86 = vector.load %arg8[%c0_99, %c0_100] : memref<256x256xf32, #tpu.memory_space<vmem>>, vector<256x256xf32>
    tpu.vector_store %arg8[%c0_99, %c0_100], %85 {strides = array<i32>} : memref<256x256xf32, #tpu.memory_space<vmem>>, vector<256x256xf32>,
    %c4_i32_101 = arith.constant 4 : i32
    %87 = arith.addi %4, %c4_i32_101 : i32
    %c2_i32_102 = arith.constant 2 : i32
    %c2_i32_103 = arith.constant 2 : i32
    %c0_i32_104 = arith.constant 0 : i32
    %c0_i32_105 = arith.constant 0 : i32
    %88 = tpu.memref_slice %arg2[%87, %c0_i32_104, %c0_i32_105] : memref<20x28x256xbf16, #tpu.memory_space<any>> -> memref<16x24x256xbf16, #tpu.memory_space<any>>
    %c0_i32_106 = arith.constant 0 : i32
    %c0_i32_107 = arith.constant 0 : i32
    %c0_i32_108 = arith.constant 0 : i32
    %89 = tpu.memref_slice %arg7[%c2_i32_102, %c0_i32_106, %c0_i32_107, %c0_i32_108] : memref<3x16x24x256xbf16, #tpu.memory_space<vmem>> -> memref<1x16x24x256xbf16, #tpu.memory_space<vmem>>
    %90 = tpu.memref_squeeze %89 : memref<1x16x24x256xbf16, #tpu.memory_space<vmem>> -> memref<16x24x256xbf16, #tpu.memory_space<vmem>>
    %91 = tpu.memref_slice %arg9[%c2_i32_103] : memref<3x!tpu.dma_semaphore, #tpu.memory_space<semaphore_mem>> -> memref<1x!tpu.dma_semaphore, #tpu.memory_space<semaphore_mem>>
    %92 = tpu.memref_squeeze %91 : memref<1x!tpu.dma_semaphore, #tpu.memory_space<semaphore_mem>> -> memref<!tpu.dma_semaphore, #tpu.memory_space<semaphore_mem>>
    tpu.wait_dma2 semaphore(%92 : memref<!tpu.dma_semaphore, #tpu.memory_space<semaphore_mem>>) src(%88 : memref<16x24x256xbf16, #tpu.memory_space<any>>) dst(%90 : memref<16x24x256xbf16, #tpu.memory_space<vmem>>)
    %c2_109 = arith.constant 2 : index
    %c0_110 = arith.constant 0 : index
    %c0_111 = arith.constant 0 : index
    %c0_112 = arith.constant 0 : index
    %93 = vector.load %arg7[%c2_109, %c0_110, %c0_111, %c0_112] : memref<3x16x24x256xbf16, #tpu.memory_space<vmem>>, vector<1x16x16x256xbf16>
    %94 = vector.shape_cast %93 : vector<1x16x16x256xbf16> to vector<16x16x256xbf16>
    %95 = vector.shape_cast %94 : vector<16x16x256xbf16> to vector<256x256xbf16>
    %c6 = arith.constant 6 : index
    %c0_113 = arith.constant 0 : index
    %c0_114 = arith.constant 0 : index
    %96 = vector.load %arg3[%c6, %c0_113, %c0_114] : memref<9x256x256xbf16, #tpu.memory_space<vmem>>, vector<1x256x256xbf16>
    %97 = vector.shape_cast %96 : vector<1x256x256xbf16> to vector<256x256xbf16>
    %cst_115 = arith.constant dense<0.000000e+00> : vector<256x256xf32>
    %98 = tpu.matmul %95, %97, %cst_115 {dimension_numbers = #tpu.dot_dimension_numbers<[1], [0], [0], [1], [0, 0, 1, 1], [], []>} : vector<256x256xbf16>, vector<256x256xbf16>, vector<256x256xf32> -> vector<256x256xf32>
    %c0_116 = arith.constant 0 : index
    %c0_117 = arith.constant 0 : index
    %99 = vector.load %arg8[%c0_116, %c0_117] : memref<256x256xf32, #tpu.memory_space<vmem>>, vector<256x256xf32>
    %100 = arith.addf %99, %98 : vector<256x256xf32>
    %c0_118 = arith.constant 0 : index
    %c0_119 = arith.constant 0 : index
    %101 = vector.load %arg8[%c0_118, %c0_119] : memref<256x256xf32, #tpu.memory_space<vmem>>, vector<256x256xf32>
    tpu.vector_store %arg8[%c0_118, %c0_119], %100 {strides = array<i32>} : memref<256x256xf32, #tpu.memory_space<vmem>>, vector<256x256xf32>,
    %c2_120 = arith.constant 2 : index
    %c0_121 = arith.constant 0 : index
    %c2_122 = arith.constant 2 : index
    %c0_123 = arith.constant 0 : index
    %102 = vector.load %arg7[%c2_120, %c0_121, %c2_122, %c0_123] : memref<3x16x24x256xbf16, #tpu.memory_space<vmem>>, vector<1x16x16x256xbf16>
    %103 = vector.shape_cast %102 : vector<1x16x16x256xbf16> to vector<16x16x256xbf16>
    %104 = vector.shape_cast %103 : vector<16x16x256xbf16> to vector<256x256xbf16>
    %c7 = arith.constant 7 : index
    %c0_124 = arith.constant 0 : index
    %c0_125 = arith.constant 0 : index
    %105 = vector.load %arg3[%c7, %c0_124, %c0_125] : memref<9x256x256xbf16, #tpu.memory_space<vmem>>, vector<1x256x256xbf16>
    %106 = vector.shape_cast %105 : vector<1x256x256xbf16> to vector<256x256xbf16>
    %cst_126 = arith.constant dense<0.000000e+00> : vector<256x256xf32>
    %107 = tpu.matmul %104, %106, %cst_126 {dimension_numbers = #tpu.dot_dimension_numbers<[1], [0], [0], [1], [0, 0, 1, 1], [], []>} : vector<256x256xbf16>, vector<256x256xbf16>, vector<256x256xf32> -> vector<256x256xf32>
    %c0_127 = arith.constant 0 : index
    %c0_128 = arith.constant 0 : index
    %108 = vector.load %arg8[%c0_127, %c0_128] : memref<256x256xf32, #tpu.memory_space<vmem>>, vector<256x256xf32>
    %109 = arith.addf %108, %107 : vector<256x256xf32>
    %c0_129 = arith.constant 0 : index
    %c0_130 = arith.constant 0 : index
    %110 = vector.load %arg8[%c0_129, %c0_130] : memref<256x256xf32, #tpu.memory_space<vmem>>, vector<256x256xf32>
    tpu.vector_store %arg8[%c0_129, %c0_130], %109 {strides = array<i32>} : memref<256x256xf32, #tpu.memory_space<vmem>>, vector<256x256xf32>,
    %c2_131 = arith.constant 2 : index
    %c0_132 = arith.constant 0 : index
    %c4_133 = arith.constant 4 : index
    %c0_134 = arith.constant 0 : index
    %111 = vector.load %arg7[%c2_131, %c0_132, %c4_133, %c0_134] : memref<3x16x24x256xbf16, #tpu.memory_space<vmem>>, vector<1x16x16x256xbf16>
    %112 = vector.shape_cast %111 : vector<1x16x16x256xbf16> to vector<16x16x256xbf16>
    %113 = vector.shape_cast %112 : vector<16x16x256xbf16> to vector<256x256xbf16>
    %c8 = arith.constant 8 : index
    %c0_135 = arith.constant 0 : index
    %c0_136 = arith.constant 0 : index
    %114 = vector.load %arg3[%c8, %c0_135, %c0_136] : memref<9x256x256xbf16, #tpu.memory_space<vmem>>, vector<1x256x256xbf16>
    %115 = vector.shape_cast %114 : vector<1x256x256xbf16> to vector<256x256xbf16>
    %cst_137 = arith.constant dense<0.000000e+00> : vector<256x256xf32>
    %116 = tpu.matmul %113, %115, %cst_137 {dimension_numbers = #tpu.dot_dimension_numbers<[1], [0], [0], [1], [0, 0, 1, 1], [], []>} : vector<256x256xbf16>, vector<256x256xbf16>, vector<256x256xf32> -> vector<256x256xf32>
    %c0_138 = arith.constant 0 : index
    %c0_139 = arith.constant 0 : index
    %117 = vector.load %arg8[%c0_138, %c0_139] : memref<256x256xf32, #tpu.memory_space<vmem>>, vector<256x256xf32>
    %118 = arith.addf %117, %116 : vector<256x256xf32>
    %c0_140 = arith.constant 0 : index
    %c0_141 = arith.constant 0 : index
    %119 = vector.load %arg8[%c0_140, %c0_141] : memref<256x256xf32, #tpu.memory_space<vmem>>, vector<256x256xf32>
    tpu.vector_store %arg8[%c0_140, %c0_141], %118 {strides = array<i32>} : memref<256x256xf32, #tpu.memory_space<vmem>>, vector<256x256xf32>,
    %c0_142 = arith.constant 0 : index
    %c0_143 = arith.constant 0 : index
    %120 = vector.load %arg8[%c0_142, %c0_143] : memref<256x256xf32, #tpu.memory_space<vmem>>, vector<256x256xf32>
    %c0_144 = arith.constant 0 : index
    %c0_145 = arith.constant 0 : index
    %121 = vector.load %arg4[%c0_144, %c0_145] : memref<1x256xf32, #tpu.memory_space<vmem>>, vector<1x256xf32>
    %122 = vector.broadcast %121 : vector<1x256xf32> to vector<256x256xf32>
    %123 = arith.mulf %120, %122 : vector<256x256xf32>
    %c0_146 = arith.constant 0 : index
    %c0_147 = arith.constant 0 : index
    %124 = vector.load %arg5[%c0_146, %c0_147] : memref<1x256xf32, #tpu.memory_space<vmem>>, vector<1x256xf32>
    %125 = vector.broadcast %124 : vector<1x256xf32> to vector<256x256xf32>
    %126 = arith.addf %123, %125 : vector<256x256xf32>
    %cst_148 = arith.constant 0.000000e+00 : f32
    %127 = vector.broadcast %cst_148 : f32 to vector<256x256xf32>
    %128 = arith.maximumf %126, %127 : vector<256x256xf32>
    %129 = vector.shape_cast %128 : vector<256x256xf32> to vector<16x16x256xf32>
    %130 = arith.truncf %129 : vector<16x16x256xf32> to vector<16x16x256xbf16>
    %c0_149 = arith.constant 0 : index
    %c0_150 = arith.constant 0 : index
    %c0_151 = arith.constant 0 : index
    %c0_152 = arith.constant 0 : index
    %131 = vector.load %arg6[%c0_149, %c0_150, %c0_151, %c0_152] : memref<1x16x16x256xbf16, #tpu.memory_space<vmem>>, vector<1x16x16x256xbf16>
    %132 = vector.shape_cast %131 : vector<1x16x16x256xbf16> to vector<16x16x256xbf16>
    %133 = vector.shape_cast %130 : vector<16x16x256xbf16> to vector<1x16x16x256xbf16>
    tpu.vector_store %arg6[%c0_149, %c0_150, %c0_151, %c0_152], %133 {strides = array<i32>} : memref<1x16x16x256xbf16, #tpu.memory_space<vmem>>, vector<1x16x16x256xbf16>,
    return
  }
  func.func @transform_1(%arg0: i32, %arg1: i32) -> (i32, i32, i32) {
    %c0_i32 = arith.constant 0 : i32
    %c0_i32_0 = arith.constant 0 : i32
    %c0_i32_1 = arith.constant 0 : i32
    %c0_i32_2 = arith.constant 0 : i32
    return %c0_i32, %c0_i32_0, %c0_i32_1 : i32, i32, i32
  }
  func.func @transform_2(%arg0: i32, %arg1: i32) -> (i32, i32) {
    %c0_i32 = arith.constant 0 : i32
    %c0_i32_0 = arith.constant 0 : i32
    %c0_i32_1 = arith.constant 0 : i32
    return %c0_i32, %c0_i32_0 : i32, i32
  }
  func.func @transform_3(%arg0: i32, %arg1: i32) -> (i32, i32) {
    %c0_i32 = arith.constant 0 : i32
    %c0_i32_0 = arith.constant 0 : i32
    %c0_i32_1 = arith.constant 0 : i32
    return %c0_i32, %c0_i32_0 : i32, i32
  }
  func.func @transform_4(%arg0: i32, %arg1: i32) -> (i32, i32, i32, i32) {
    %c0_i32 = arith.constant 0 : i32
    %c0_i32_0 = arith.constant 0 : i32
    %c0_i32_1 = arith.constant 0 : i32
    return %arg0, %arg1, %c0_i32, %c0_i32_0 : i32, i32, i32, i32
  }
}

</mosaic_0001>

<bundles_post_ra>
// kernel: tpu_custom_call.1
= control target key start
LH: loop header
LB: loop body
LE: loop exit
PB: predicated region body
PF: predicated region fallthrough
CT: control target
= control target key end

     0   :  { %9 = vsyncpa [#allocation6], 0  ;;  %s11586_s0 = inlined_call_operand.hbm [shape: bf16[20,28,256], index: 0, kind: input, shape index: {}]   ;;  %s11587_s1 = inlined_call_operand.hbm [shape: bf16[9,256,256], index: 1, kind: input, shape index: {}]   ;;  %s11588_s2 = inlined_call_operand.hbm [shape: f32[1,256], index: 2, kind: input, shape index: {}]   ;;  %s11589_s3 = inlined_call_operand.hbm [shape: f32[1,256], index: 3, kind: input, shape index: {}]   ;;  %s11590_s4 = inlined_call_operand.hbm [shape: bf16[1,16,16,256], index: 4, kind: output, shape index: {}]  }
   0x1   :  { %10 = vsyncpa [#allocation9], 0 }
   0x2   :  { %11 = vsyncpa [#allocation7], 0  ;;  %s10307_s15 = smov [#allocation8]   ;;  %s10308_s17 = smov [#allocation5]  }
   0x3   :  { %s30_s16 = sshll.u32 %s10307_s15, 4  ;;  %s17_s18 = sshll.u32 %s10308_s17, 4  ;;  %s31_s16 = int_to_ptr.vmem [resolvable:$true] %s30_s16  ;;  %s10344_s18 = int_to_ptr.vmem [resolvable:$true] %s17_s18 }
   0x4   :  { %s10135_s21 = scalar_lea.hbm %s11588_s2, 32 }
   0x5   :  { %p10136_p0 = scmp.ne.s32.totalorder %s11588_s2, %s10135_s21  ;;  %p10139_p1 = scmp.lt.u32.totalorder %s10135_s21, %s11588_s2 }
   0x7   :  { %p10141_p2 = pnand %p10139_p1, %p10136_p0 }
   0x9   :  { %10144 = shalt.err (!%p10141_p2)
}
   0xa   :  { %s10145_s26 = scalar_lea.vmem %s31_s16, 32  ;;  %p10150_p4 = scmp.lt.s32.totalorder %s31_s16, %s31_s16 }
   0xb   :  { %p10146_p3 = scmp.ne.s32.totalorder %s31_s16, %s10145_s26  ;;  %p10151_p5 = scmp.lt.s32.totalorder %s10145_s26, %s10145_s26 }
   0xd   :  { %p10152_p6 = por %p10151_p5, %p10150_p4 }
   0xf   :  { %p10153_p7 = pnand %p10152_p6, %p10146_p3 }
  0x11   :  { %10156 = shalt.err (!%p10153_p7)
}
  0x12   :  { %33 = dma.hbm_to_vmem [thread:$0]  %s11588_s2, 32, %s31_s16, [#allocation9]  }
  0x13   :  { %s10157_s5 = scalar_lea.hbm %s11587_s1, 36864 }
  0x14   :  { %p10158_p8 = scmp.ne.s32.totalorder %s11587_s1, %s10157_s5  ;;  %p10161_p9 = scmp.lt.u32.totalorder %s10157_s5, %s11587_s1 }
  0x16   :  { %p10163_p10 = pnand %p10161_p9, %p10158_p8 }
  0x18   :  { %10166 = shalt.err (!%p10163_p10)
}
  0x19   :  { %s10167_s10 = scalar_lea.vmem %s10344_s18, 36864  ;;  %p10172_p12 = scmp.lt.s32.totalorder %s10344_s18, %s10344_s18 }
  0x1a   :  { %p10168_p11 = scmp.ne.s32.totalorder %s10344_s18, %s10167_s10  ;;  %p10173_p13 = scmp.lt.s32.totalorder %s10167_s10, %s10167_s10 }
  0x1c   :  { %p10174_p0 = por %p10173_p13, %p10172_p12 }
  0x1e   :  { %p10175_p1 = pnand %p10174_p0, %p10168_p11 }
  0x20   :  { %10178 = shalt.err (!%p10175_p1)
}
  0x21   :  { %s10309_s2 = smov 128   ;;  %s10310_s11 = smov 8  }
  0x22   :  { %23 = dma.hbm_to_vmem [thread:$0]  %s11587_s1, 36864, %s10344_s18, [#allocation6], %s10309_s2, %s10309_s2, %s10310_s11  }
  0x23   :  { %s10311_s14 = smov [#allocation10]   ;;  %s10179_s19 = scalar_lea.hbm %s11589_s3, 32 }
  0x24   :  { %s40_s15 = sshll.u32 %s10311_s14, 4  ;;  %p10180_p2 = scmp.ne.s32.totalorder %s11589_s3, %s10179_s19  ;;  %s41_s15 = int_to_ptr.vmem [resolvable:$true] %s40_s15 }
  0x25   :  { %p10183_p3 = scmp.lt.u32.totalorder %s10179_s19, %s11589_s3 }
  0x27   :  { %p10185_p4 = pnand %p10183_p3, %p10180_p2 }
  0x29   :  { %10188 = shalt.err (!%p10185_p4)
}
  0x2a   :  { %s10189_s24 = scalar_lea.vmem %s41_s15, 32  ;;  %p10194_p6 = scmp.lt.s32.totalorder %s41_s15, %s41_s15 }
  0x2b   :  { %p10190_p5 = scmp.ne.s32.totalorder %s41_s15, %s10189_s24  ;;  %p10195_p7 = scmp.lt.s32.totalorder %s10189_s24, %s10189_s24 }
  0x2d   :  { %p10196_p8 = por %p10195_p7, %p10194_p6 }
  0x2f   :  { %p10197_p9 = pnand %p10196_p8, %p10190_p5 }
  0x31   :  { %10200 = shalt.err (!%p10197_p9)
}
  0x32   :  { %43 = dma.hbm_to_vmem [thread:$0]  %s11589_s3, 32, %s41_s15, [#allocation9]  }
  0x33   :  { %10295 = dma.done.wait [#allocation6], 36864  }
  0x34   :  { %10296 = vsyncadd [#allocation6], 4294930432 }
  0x35   :  { %10297 = dma.done.wait [#allocation9], 64  }
  0x36   :  { %10298 = vsyncadd [#allocation9], 4294967232  ;;  %s10312_s25 = smov [#allocation2]   ;;  %s10201_s29 = scalar_lea.hbm %s11586_s0, 6144 }
  0x37   :  { %s61_s26 = sshll.u32 %s10312_s25, 4  ;;  %p10202_p10 = scmp.ne.s32.totalorder %s11586_s0, %s10201_s29  ;;  %s10390_s26 = int_to_ptr.vmem [resolvable:$true] %s61_s26 }
  0x38   :  { %s10401_s3 = scalar_lea.hbm %s11586_s0, 10240  ;;  %p10205_p12 = scmp.lt.u32.totalorder %s10201_s29, %s11586_s0 }
  0x39   :  { %p10204_p11 = scmp.lt.u32.totalorder %s10401_s3, %s10201_s29 }
  0x3b   :  { %p10206_p13 = por %p10205_p12, %p10204_p11 }
  0x3d   :  { %p10207_p0 = pnand %p10206_p13, %p10202_p10 }
  0x3f   :  { %10210 = shalt.err (!%p10207_p0)  }
  0x40   :  { %s10211_s10 = scalar_lea.vmem %s10390_s26, 6144  ;;  %s10410_s12 = scalar_lea.vmem %s10390_s26, 18432 }
  0x41   :  { %p10212_p1 = scmp.ne.s32.totalorder %s10390_s26, %s10211_s10  ;;  %p10216_p2 = scmp.lt.s32.totalorder %s10390_s26, %s10390_s26 }
  0x42   :  { %p10217_p3 = scmp.lt.s32.totalorder %s10410_s12, %s10211_s10 }
  0x44   :  { %p10218_p4 = por %p10217_p3, %p10216_p2 }
  0x46   :  { %p10219_p5 = pnand %p10218_p4, %p10212_p1 }
  0x48   :  { %10222 = shalt.err (!%p10219_p5)  }
  0x49   :  { %s10313_s13 = smov 512   ;;  %s10314_s14 = smov 384  }
  0x4a   :  { %s10315_s15 = smov 24   ;;  %s8308_s21 = scalar_lea.hbm %s11586_s0, 1024 }
  0x4b   :  { %64 = dma.hbm_to_vmem [thread:$0]  %s11586_s0, 6144, %s10390_s26, [#allocation4], %s10313_s13, %s10314_s14, %s10315_s15 }
  0x4c   :  { %s10316_s22 = smov [#allocation2 + $0x180]   ;;  %s10428_s18 = scalar_lea.hbm %s11586_s0, 2048 }
  0x4d   :  { %s71_s23 = sshll.u32 %s10316_s22, 4  ;;  %s10247_s28 = scalar_lea.hbm %s11586_s0, 7168  ;;  %s72_s23 = int_to_ptr.vmem [resolvable:$true] %s71_s23 }
  0x4e   :  { %p10224_p6 = scmp.ne.s32.totalorder %s8308_s21, %s10247_s28  ;;  %p10226_p7 = scmp.lt.u32.totalorder %s8308_s21, %s11586_s0 }
  0x4f   :  { %p10227_p8 = scmp.lt.u32.totalorder %s10401_s3, %s10247_s28  ;;  %p10229_p10 = scmp.lt.u32.totalorder %s10247_s28, %s8308_s21 }
  0x51   :  { %p10228_p9 = por %p10227_p8, %p10226_p7 }
  0x53   :  { %p10230_p11 = por %p10229_p10, %p10228_p9 }
  0x55   :  { %p10231_p12 = pnand %p10230_p11, %p10224_p6 }
  0x57   :  { %10234 = shalt.err (!%p10231_p12)  }
  0x58   :  { %s10235_s5 = scalar_lea.vmem %s72_s23, 6144  ;;  %p10240_p0 = scmp.lt.s32.totalorder %s72_s23, %s10390_s26 }
  0x59   :  { %p10236_p13 = scmp.ne.s32.totalorder %s72_s23, %s10235_s5  ;;  %p10241_p1 = scmp.lt.s32.totalorder %s10410_s12, %s10235_s5 }
  0x5b   :  { %p10242_p2 = por %p10241_p1, %p10240_p0 }
  0x5d   :  { %p10243_p3 = pnand %p10242_p2, %p10236_p13 }
  0x5f   :  { %10246 = shalt.err (!%p10243_p3)  }
  0x60   :  { %74 = dma.hbm_to_vmem [thread:$0]  %s8308_s21, 6144, %s72_s23, [#allocation4 + $0x1], %s10313_s13, %s10314_s14, %s10315_s15 }
  0x61   :  { %s10317_s6 = smov [#allocation2 + $0x300]   ;;  %s10272_s10 = scalar_lea.hbm %s11586_s0, 8192 }
  0x62   :  { %s82_s7 = sshll.u32 %s10317_s6, 4  ;;  %p10249_p4 = scmp.ne.s32.totalorder %s10428_s18, %s10272_s10  ;;  %s83_s7 = int_to_ptr.vmem [resolvable:$true] %s82_s7 }
  0x63   :  { %p10251_p5 = scmp.lt.u32.totalorder %s10428_s18, %s11586_s0  ;;  %p10252_p6 = scmp.lt.u32.totalorder %s10401_s3, %s10272_s10 }
  0x64   :  { %p10254_p8 = scmp.lt.u32.totalorder %s10272_s10, %s10428_s18 }
  0x65   :  { %p10253_p7 = por %p10252_p6, %p10251_p5 }
  0x67   :  { %p10255_p9 = por %p10254_p8, %p10253_p7 }
  0x69   :  { %p10256_p10 = pnand %p10255_p9, %p10249_p4 }
  0x6b   :  { %10259 = shalt.err (!%p10256_p10)  }
  0x6c   :  { %s10260_s19 = scalar_lea.vmem %s83_s7, 6144  ;;  %p10265_p12 = scmp.lt.s32.totalorder %s83_s7, %s10390_s26 }
  0x6d   :  { %p10261_p11 = scmp.ne.s32.totalorder %s83_s7, %s10260_s19  ;;  %p10266_p13 = scmp.lt.s32.totalorder %s10410_s12, %s10260_s19 }
  0x6f   :  { %p10267_p0 = por %p10266_p13, %p10265_p12 }
  0x71   :  { %p10268_p1 = pnand %p10267_p0, %p10261_p11 }
  0x73   :  { %10271 = shalt.err (!%p10268_p1)  }
  0x74   :  { %85 = dma.hbm_to_vmem [thread:$0]  %s10428_s18, 6144, %s83_s7, [#allocation4 + $0x2], %s10313_s13, %s10314_s14, %s10315_s15 }
  0x75   :  { %10299 = dma.done.wait [#allocation4], 6144 }
  0x76   :  { %10300 = vsyncadd [#allocation4], 4294961152  ;;  %v9605_v0 = vld [vmem:[#allocation5 + $0x4] ss:$8 sps:$4 sm:$0xff]   ;;  %v9607_v1 = vld [vmem:[#allocation5] ss:$8 sps:$4 sm:$0xff]  }
  0x77   :  { %475 = vmatprep.subr.bf16.mxu1 %v9605_v0  ;;  %v9608_v2 = vld [vmem:[#allocation5 + $0x14] ss:$8 sps:$4 sm:$0xff]   ;;  %v9610_v3 = vld [vmem:[#allocation5 + $0x10] ss:$8 sps:$4 sm:$0xff]   ;;  %v9611_v4 = vld [vmem:[#allocation5 + $0x24] ss:$8 sps:$4 sm:$0xff]  }
  0x78   :  { %476 = vmatpush1.bf16.msra.mxu1 %v9607_v1  ;;  %v9613_v5 = vld [vmem:[#allocation5 + $0x20] ss:$8 sps:$4 sm:$0xff]   ;;  %v9614_v6 = vld [vmem:[#allocation5 + $0x34] ss:$8 sps:$4 sm:$0xff]   ;;  %v9616_v7 = vld [vmem:[#allocation5 + $0x30] ss:$8 sps:$4 sm:$0xff]  }
  0x79   :  { %477 = vmatprep.subr.bf16.mxu1 %v9608_v2  ;;  %v9617_v8 = vld [vmem:[#allocation5 + $0x44] ss:$8 sps:$4 sm:$0xff]   ;;  %v9619_v9 = vld [vmem:[#allocation5 + $0x40] ss:$8 sps:$4 sm:$0xff]   ;;  %v9620_v10 = vld [vmem:[#allocation5 + $0x54] ss:$8 sps:$4 sm:$0xff]  }
  0x7a   :  { %v9622_v11 = vld [vmem:[#allocation5 + $0x50] ss:$8 sps:$4 sm:$0xff]   ;;  %v9623_v12 = vld [vmem:[#allocation5 + $0x64] ss:$8 sps:$4 sm:$0xff]   ;;  %v9625_v16 = vld [vmem:[#allocation5 + $0x60] ss:$8 sps:$4 sm:$0xff]  }
  0x7b   :  { %v91_v13 = vld [vmem:[#allocation2] sm:$0xff]  ;;  %v10458_v14 = vld [vmem:[#allocation2 + $0x8] sm:$0xff]  ;;  %v9626_v17 = vld [vmem:[#allocation5 + $0x74] ss:$8 sps:$4 sm:$0xff]   ;;  %vm828_vm0 = vcmask 1042432   ;;  %vm829_vm1 = vcmask 1046532  }
  0x7c   :  { %478 = vmatpush1.bf16.msra.mxu1 %v9610_v3  ;;  %v8311_v15 = vcombine.high %v91_v13, %v10458_v14  ;;  %v9628_v18 = vld [vmem:[#allocation5 + $0x70] ss:$8 sps:$4 sm:$0xff]   ;;  %v9629_v19 = vld [vmem:[#allocation5 + $0x84] ss:$8 sps:$4 sm:$0xff]   ;;  %v9631_v20 = vld [vmem:[#allocation5 + $0x80] ss:$8 sps:$4 sm:$0xff]   ;;  %v8310_v39 = vcombine.low %v91_v13, %v10458_v14 }
  0x7d   :  { %479 = vmatprep.subr.bf16.mxu1 %v9611_v4  ;;  %v9632_v21 = vld [vmem:[#allocation5 + $0x94] ss:$8 sps:$4 sm:$0xff]   ;;  %v9634_v22 = vld [vmem:[#allocation5 + $0x90] ss:$8 sps:$4 sm:$0xff]   ;;  %v9635_v23 = vld [vmem:[#allocation5 + $0xa4] ss:$8 sps:$4 sm:$0xff]  }
  0x7e   :  { %507 = vmatprep.mubr.bf16.mxu1 %v8311_v15  ;;  %v9637_v24 = vld [vmem:[#allocation5 + $0xa0] ss:$8 sps:$4 sm:$0xff]   ;;  %v9638_v25 = vld [vmem:[#allocation5 + $0xb4] ss:$8 sps:$4 sm:$0xff]   ;;  %v9640_v26 = vld [vmem:[#allocation5 + $0xb0] ss:$8 sps:$4 sm:$0xff]  }
  0x7f   :  { %v9641_v27 = vld [vmem:[#allocation5 + $0xc4] ss:$8 sps:$4 sm:$0xff]   ;;  %v9643_v28 = vld [vmem:[#allocation5 + $0xc0] ss:$8 sps:$4 sm:$0xff]   ;;  %v9644_v29 = vld [vmem:[#allocation5 + $0xd4] ss:$8 sps:$4 sm:$0xff]  }
  0x80   :  { %480 = vmatpush1.bf16.msra.mxu1 %v9613_v5  ;;  %v9646_v30 = vld [vmem:[#allocation5 + $0xd0] ss:$8 sps:$4 sm:$0xff]   ;;  %v9647_v31 = vld [vmem:[#allocation5 + $0xe4] ss:$8 sps:$4 sm:$0xff]   ;;  %v9649_v32 = vld [vmem:[#allocation5 + $0xe0] ss:$8 sps:$4 sm:$0xff]  }
  0x81   :  { %481 = vmatprep.subr.bf16.mxu1 %v9614_v6  ;;  %v9650_v33 = vld [vmem:[#allocation5 + $0xf4] ss:$8 sps:$4 sm:$0xff]   ;;  %v9652_v34 = vld [vmem:[#allocation5 + $0xf0] ss:$8 sps:$4 sm:$0xff]   ;;  %v9657_v35 = vld [vmem:[#allocation5 + $0x104] ss:$8 sps:$4 sm:$0xff]  }
  0x82   :  { %v93_v36 = vld [vmem:[#allocation2 + $0x18] sm:$0xff]  ;;  %v10461_v37 = vld [vmem:[#allocation2 + $0x20] sm:$0xff]  ;;  %v95_v43 = vld [vmem:[#allocation2 + $0x30] sm:$0xff]  ;;  %vm1745_vm3 = vcmask 1041408   ;;  %vm1746_vm4 = vcmask 1045508  }
  0x83   :  { %v9655_v38 = vld [vmem:[#allocation5 + $0x100] ss:$8 sps:$4 sm:$0xff]   ;;  %v9661_v40 = vld [vmem:[#allocation5 + $0x114] ss:$8 sps:$4 sm:$0xff]   ;;  %v8313_v41 = vcombine.high %v93_v36, %v10461_v37  ;;  %v9659_v42 = vld [vmem:[#allocation5 + $0x110] ss:$8 sps:$4 sm:$0xff]   ;;  %v8312_v46 = vcombine.low %v93_v36, %v10461_v37 }
  0x84   :  { %482 = vmatpush1.bf16.msra.mxu1 %v9616_v7  ;;  %v10465_v44 = vld [vmem:[#allocation2 + $0x38] sm:$0xff]  ;;  %v9666_v45 = vld [vmem:[#allocation5 + $0x124] ss:$8 sps:$4 sm:$0xff]   ;;  %v9664_v48 = vld [vmem:[#allocation5 + $0x120] ss:$8 sps:$4 sm:$0xff]  }
  0x85   :  { %483 = vmatprep.subr.bf16.mxu1 %v9617_v8  ;;  %v8315_v47 = vcombine.high %v95_v43, %v10465_v44  ;;  %v9671_v49 = vld [vmem:[#allocation5 + $0x134] ss:$8 sps:$4 sm:$0xff]   ;;  %v9669_v50 = vld [vmem:[#allocation5 + $0x130] ss:$8 sps:$4 sm:$0xff]   ;;  %v97_v51 = vld [vmem:[#allocation2 + $0x48] sm:$0xff]  ;;  %v8314_v54 = vcombine.low %v95_v43, %v10465_v44 }
  0x86   :  { %v10469_v52 = vld [vmem:[#allocation2 + $0x50] sm:$0xff]  ;;  %v9676_v53 = vld [vmem:[#allocation5 + $0x144] ss:$8 sps:$4 sm:$0xff]   ;;  %v9674_v56 = vld [vmem:[#allocation5 + $0x140] ss:$8 sps:$4 sm:$0xff]  }
  0x87   :  { %v8317_v55 = vcombine.high %v97_v51, %v10469_v52  ;;  %v9681_v57 = vld [vmem:[#allocation5 + $0x154] ss:$8 sps:$4 sm:$0xff]   ;;  %v9679_v58 = vld [vmem:[#allocation5 + $0x150] ss:$8 sps:$4 sm:$0xff]   ;;  %v99_v59 = vld [vmem:[#allocation2 + $0x60] sm:$0xff]  ;;  %v8316_v62 = vcombine.low %v97_v51, %v10469_v52 }
  0x88   :  { %484 = vmatpush1.bf16.msra.mxu1 %v9619_v9  ;;  %v10473_v60 = vld [vmem:[#allocation2 + $0x68] sm:$0xff]  ;;  %v9691_v1 = vld [vmem:[#allocation5 + $0x174] ss:$8 sps:$4 sm:$0xff]   ;;  %v9689_v2 = vld [vmem:[#allocation5 + $0x170] ss:$8 sps:$4 sm:$0xff]  }
  0x89   :  { %485 = vmatprep.subr.bf16.mxu1 %v9620_v10  ;;  %v9686_v61 = vld [vmem:[#allocation5 + $0x164] ss:$8 sps:$4 sm:$0xff]   ;;  %v8319_v63 = vcombine.high %v99_v59, %v10473_v60  ;;  %v9684_v0 = vld [vmem:[#allocation5 + $0x160] ss:$8 sps:$4 sm:$0xff]   ;;  %v101_v3 = vld [vmem:[#allocation2 + $0x78] sm:$0xff]  ;;  %v8318_v6 = vcombine.low %v99_v59, %v10473_v60 }
  0x8a   :  { %v10477_v4 = vld [vmem:[#allocation2 + $0x80] sm:$0xff]  ;;  %v9701_v9 = vld [vmem:[#allocation5 + $0x194] ss:$8 sps:$4 sm:$0xff]   ;;  %v9699_v10 = vld [vmem:[#allocation5 + $0x190] ss:$8 sps:$4 sm:$0xff]  }
  0x8b   :  { %v9696_v5 = vld [vmem:[#allocation5 + $0x184] ss:$8 sps:$4 sm:$0xff]   ;;  %v8321_v7 = vcombine.high %v101_v3, %v10477_v4  ;;  %v9694_v8 = vld [vmem:[#allocation5 + $0x180] ss:$8 sps:$4 sm:$0xff]   ;;  %v8320_v15 = vcombine.low %v101_v3, %v10477_v4  ;;  %v109_v36 = vld [vmem:[#allocation2 + $0xd8] sm:$0xff]  ;;  %v833_v3 = vrot.slane %v10458_v14, 5 }
  0x8c   :  { %486 = vmatpush1.bf16.msra.mxu1 %v9622_v11  ;;  %v103_v11 = vld [vmem:[#allocation2 + $0x90] sm:$0xff]  ;;  %v9706_v13 = vld [vmem:[#allocation5 + $0x1a4] ss:$8 sps:$4 sm:$0xff]   ;;  %v10497_v43 = vld [vmem:[#allocation2 + $0xf8] sm:$0xff] }
  0x8d   :  { %487 = vmatprep.subr.bf16.mxu1 %v9623_v12  ;;  %v10481_v12 = vld [vmem:[#allocation2 + $0x98] sm:$0xff]  ;;  %v115_v51 = vld [vmem:[#allocation2 + $0x120] sm:$0xff]  ;;  %vm10522_vm2 = vmor %vm828_vm0, %vm829_vm1 }
  0x8e   :  { %vm10606_vm5 = vmor %vm1745_vm3, %vm1746_vm4 }
  0x90   :  { %488 = vmatpush1.bf16.msra.mxu1 %v9625_v16  ;;  %v8323_v16 = vcombine.high %v103_v11, %v10481_v12 }
  0x91   :  { %489 = vmatprep.subr.bf16.mxu1 %v9626_v17  ;;  %v9704_v17 = vld [vmem:[#allocation5 + $0x1a0] ss:$8 sps:$4 sm:$0xff]  }
  0x94   :  { %490 = vmatpush1.bf16.msra.mxu1 %v9628_v18  ;;  %v9711_v18 = vld [vmem:[#allocation5 + $0x1b4] ss:$8 sps:$4 sm:$0xff]  }
  0x95   :  { %491 = vmatprep.subr.bf16.mxu1 %v9629_v19  ;;  %v9709_v19 = vld [vmem:[#allocation5 + $0x1b0] ss:$8 sps:$4 sm:$0xff]  }
  0x98   :  { %492 = vmatpush1.bf16.msra.mxu1 %v9631_v20  ;;  %v105_v20 = vld [vmem:[#allocation2 + $0xa8] sm:$0xff] }
  0x99   :  { %493 = vmatprep.subr.bf16.mxu1 %v9632_v21  ;;  %v10485_v21 = vld [vmem:[#allocation2 + $0xb0] sm:$0xff] }
  0x9c   :  { %494 = vmatpush1.bf16.msra.mxu1 %v9634_v22  ;;  %v9716_v22 = vld [vmem:[#allocation5 + $0x1c4] ss:$8 sps:$4 sm:$0xff]  }
  0x9d   :  { %495 = vmatprep.subr.bf16.mxu1 %v9635_v23  ;;  %v8322_v23 = vcombine.low %v103_v11, %v10481_v12 }
  0xa0   :  { %496 = vmatpush1.bf16.msra.mxu1 %v9637_v24  ;;  %v8325_v24 = vcombine.high %v105_v20, %v10485_v21 }
  0xa1   :  { %497 = vmatprep.subr.bf16.mxu1 %v9638_v25  ;;  %v9714_v25 = vld [vmem:[#allocation5 + $0x1c0] ss:$8 sps:$4 sm:$0xff]  }
  0xa4   :  { %498 = vmatpush1.bf16.msra.mxu1 %v9640_v26  ;;  %v9721_v26 = vld [vmem:[#allocation5 + $0x1d4] ss:$8 sps:$4 sm:$0xff]  }
  0xa5   :  { %499 = vmatprep.subr.bf16.mxu1 %v9641_v27  ;;  %v9719_v27 = vld [vmem:[#allocation5 + $0x1d0] ss:$8 sps:$4 sm:$0xff]  }
  0xa8   :  { %500 = vmatpush1.bf16.msra.mxu1 %v9643_v28  ;;  %v107_v28 = vld [vmem:[#allocation2 + $0xc0] sm:$0xff] }
  0xa9   :  { %501 = vmatprep.subr.bf16.mxu1 %v9644_v29  ;;  %v10489_v29 = vld [vmem:[#allocation2 + $0xc8] sm:$0xff] }
  0xac   :  { %502 = vmatpush1.bf16.msra.mxu1 %v9646_v30  ;;  %v9726_v30 = vld [vmem:[#allocation5 + $0x1e4] ss:$8 sps:$4 sm:$0xff]  }
  0xad   :  { %503 = vmatprep.subr.bf16.mxu1 %v9647_v31  ;;  %v8324_v31 = vcombine.low %v105_v20, %v10485_v21 }
  0xb0   :  { %504 = vmatpush1.bf16.msra.mxu1 %v9649_v32  ;;  %v8327_v32 = vcombine.high %v107_v28, %v10489_v29 }
  0xb1   :  { %505 = vmatprep.subr.bf16.mxu1 %v9650_v33  ;;  %v9724_v33 = vld [vmem:[#allocation5 + $0x1e0] ss:$8 sps:$4 sm:$0xff]  }
  0xb4   :  { %506 = vmatpush1.bf16.msra.mxu1 %v9652_v34  ;;  %v9731_v34 = vld [vmem:[#allocation5 + $0x1f4] ss:$8 sps:$4 sm:$0xff]  }
  0xb5   :  { %1264 = vmatprep.subr.bf16.mxu1 %v9657_v35  ;;  %v9729_v35 = vld [vmem:[#allocation5 + $0x1f0] ss:$8 sps:$4 sm:$0xff]  }
  0xb7   :  { %508 = vmatmul.mubr.bf16.vlgmr.msra.gmra.mrb[0].mxu1 %v8310_v39  ;;  %v9735_v39 = vld [vmem:[#allocation5 + $0x204] ss:$8 sps:$4 sm:$0xff]  }
  0xb8   :  { %1265 = vmatpush1.bf16.msra.mxu1 %v9655_v38  ;;  %517 = vmatprep.mubr.bf16.mxu1 %v8313_v41  ;;  %v10493_v38 = vld [vmem:[#allocation2 + $0xe0] sm:$0xff] }
  0xb9   :  { %1266 = vmatprep.subr.bf16.mxu1 %v9661_v40  ;;  %v8326_v40 = vcombine.low %v107_v28, %v10489_v29  ;;  %v8329_v41 = vcombine.high %v109_v36, %v10493_v38  ;;  %v738_v28 = vld [vmem:[#allocation2 + $0x30] sm:$0xee] }
  0xbc   :  { %1267 = vmatpush1.bf16.msra.mxu1 %v9659_v42  ;;  %v111_v42 = vld [vmem:[#allocation2 + $0xf0] sm:$0xff] }
  0xbd   :  { %1268 = vmatprep.subr.bf16.mxu1 %v9666_v45  ;;  %v8328_v45 = vcombine.low %v109_v36, %v10493_v38 }
  0xbf   :  { %518 = vmatmul.mubr.bf16.gmra.mrb[4].mxu1 %v8312_v46  ;;  %v8331_v46 = vcombine.high %v111_v42, %v10497_v43 }
  0xc0   :  { %527 = vmatprep.mubr.bf16.mxu1 %v8315_v47  ;;  %1269 = vmatpush1.bf16.msra.mxu1 %v9664_v48  ;;  %v113_v47 = vld [vmem:[#allocation2 + $0x108] sm:$0xff]  ;;  %v10501_v48 = vld [vmem:[#allocation2 + $0x110] sm:$0xff] }
  0xc1   :  { %1270 = vmatprep.subr.bf16.mxu1 %v9671_v49  ;;  %v8330_v49 = vcombine.low %v111_v42, %v10497_v43 }
  0xc4   :  { %1271 = vmatpush1.bf16.msra.mxu1 %v9669_v50  ;;  %v8333_v50 = vcombine.high %v113_v47, %v10501_v48 }
  0xc5   :  { %1272 = vmatprep.subr.bf16.mxu1 %v9676_v53  ;;  %v10505_v53 = vld [vmem:[#allocation2 + $0x128] sm:$0xff] }
  0xc7   :  { %528 = vmatmul.mubr.bf16.gmra.mrb[8].mxu1 %v8314_v54  ;;  %v8332_v54 = vcombine.low %v113_v47, %v10501_v48  ;;  %v741_v47 = vld [vmem:[#allocation2 + $0x48] sm:$0xee] }
  0xc8   :  { %537 = vmatprep.mubr.bf16.mxu1 %v8317_v55  ;;  %1273 = vmatpush1.bf16.msra.mxu1 %v9674_v56  ;;  %v8335_v55 = vcombine.high %v115_v51, %v10505_v53  ;;  %v117_v56 = vld [vmem:[#allocation2 + $0x138] sm:$0xff] }
  0xc9   :  { %1274 = vmatprep.subr.bf16.mxu1 %v9681_v57  ;;  %v10509_v57 = vld [vmem:[#allocation2 + $0x140] sm:$0xff] }
  0xca   :  { %v8337_v59 = vcombine.high %v117_v56, %v10509_v57 }
  0xcc   :  { %1275 = vmatpush1.bf16.msra.mxu1 %v9679_v58  ;;  %v8334_v58 = vcombine.low %v115_v51, %v10505_v53 }
  0xcd   :  { %1276 = vmatprep.subr.bf16.mxu1 %v9686_v61  ;;  %v119_v61 = vld [vmem:[#allocation2 + $0x150] sm:$0xff] }
  0xcf   :  { %538 = vmatmul.mubr.bf16.gmra.mrb[12].mxu1 %v8316_v62  ;;  %v10513_v62 = vld [vmem:[#allocation2 + $0x158] sm:$0xff] }
  0xd0   :  { %547 = vmatprep.mubr.bf16.mxu1 %v8319_v63  ;;  %1277 = vmatpush1.bf16.msra.mxu1 %v9684_v0  ;;  %v8336_v63 = vcombine.low %v117_v56, %v10509_v57  ;;  %v8339_v0 = vcombine.high %v119_v61, %v10513_v62 }
  0xd1   :  { %1278 = vmatprep.subr.bf16.mxu1 %v9691_v1  ;;  %v121_v1 = vld [vmem:[#allocation2 + $0x168] sm:$0xff] }
  0xd4   :  { %1279 = vmatpush1.bf16.msra.mxu1 %v9689_v2  ;;  %v10517_v2 = vld [vmem:[#allocation2 + $0x170] sm:$0xff] }
  0xd5   :  { %1280 = vmatprep.subr.bf16.mxu1 %v9696_v5  ;;  %v732_v5 = vld [vmem:[#allocation2] sm:$0xee] }
  0xd7   :  { %548 = vmatmul.mubr.bf16.gmra.mrb[16].mxu1 %v8318_v6  ;;  %v734_v6 = vld [vmem:[#allocation2 + $0x10] sm:$0x11] }
  0xd8   :  { %557 = vmatprep.mubr.bf16.mxu1 %v8321_v7  ;;  %1281 = vmatpush1.bf16.msra.mxu1 %v9694_v8  ;;  %v8338_v7 = vcombine.low %v119_v61, %v10513_v62  ;;  %v8341_v8 = vcombine.high %v121_v1, %v10517_v2  ;;  %v836_v11 = vrot.slane %v734_v6, 5  ;;  %v9742_v61 = vld [vmem:[#allocation5 + $0x230] ss:$8 sps:$4 sm:$0xff]  }
  0xd9   :  { %1282 = vmatprep.subr.bf16.mxu1 %v9701_v9  ;;  %v8374_v9 = vrot.slane %v732_v5, 9  ;;  %v744_v5 = vld [vmem:[#allocation2 + $0x60] sm:$0xee]  ;;  %v746_v6 = vld [vmem:[#allocation2 + $0x70] sm:$0x11] }
  0xdb   :  { %v834_v14 = vsel %vm10522_vm2, %v8374_v9, %v833_v3  ;;  %v9745_v9 = vld [vmem:[#allocation5 + $0x240] ss:$8 sps:$4 sm:$0xff]  }
  0xdc   :  { %1283 = vmatpush1.bf16.msra.mxu1 %v9699_v10  ;;  %v835_v10 = vrot.slane %v833_v3, 4  ;;  %v9747_v3 = vld [vmem:[#allocation5 + $0x244] ss:$8 sps:$4 sm:$0xff]  }
  0xdd   :  { %1284 = vmatprep.subr.bf16.mxu1 %v9706_v13 }
  0xdf   :  { %558 = vmatmul.mubr.bf16.gmra.mrb[20].mxu1 %v8320_v15  ;;  %v837_v15 = vsel %vm10522_vm2, %v835_v10, %v836_v11  ;;  %v8378_v10 = vrot.slane %v744_v5, 9 }
  0xe0   :  { %567 = vmatprep.mubr.bf16.mxu1 %v8323_v16  ;;  %1285 = vmatpush1.bf16.msra.mxu1 %v9704_v17  ;;  %v840_v16 = vrot.slane %v10461_v37, 5  ;;  %v735_v17 = vld [vmem:[#allocation2 + $0x18] sm:$0xee]  ;;  %v8391_v20 = vcombine.high %v834_v14, %v837_v15 }
  0xe1   :  { %1286 = vmatprep.subr.bf16.mxu1 %v9711_v18  ;;  %v737_v18 = vld [vmem:[#allocation2 + $0x28] sm:$0x11] }
  0xe4   :  { %1287 = vmatpush1.bf16.msra.mxu1 %v9709_v19  ;;  %v8340_v19 = vcombine.low %v121_v1, %v10517_v2  ;;  %v861_v1 = vrot.slane %v10473_v60, 5 }
  0xe5   :  { %1288 = vmatprep.subr.bf16.mxu1 %v9716_v22  ;;  %v8375_v22 = vrot.slane %v735_v17, 9 }
  0xe6   :  { %v863_v11 = vrot.slane %v861_v1, 4  ;;  %v862_v17 = vsel %vm10522_vm2, %v8378_v10, %v861_v1  ;;  %v9763_v1 = vld [vmem:[#allocation5 + $0x2a0] ss:$8 sps:$4 sm:$0xff]  }
  0xe7   :  { %568 = vmatmul.mubr.bf16.gmra.mrb[24].mxu1 %v8322_v23  ;;  %v842_v23 = vrot.slane %v840_v16, 4 }
  0xe8   :  { %577 = vmatprep.mubr.bf16.mxu1 %v8325_v24  ;;  %1289 = vmatpush1.bf16.msra.mxu1 %v9714_v25  ;;  %v843_v24 = vrot.slane %v737_v18, 5  ;;  %v841_v25 = vsel %vm10522_vm2, %v8375_v22, %v840_v16  ;;  %v9748_v16 = vld [vmem:[#allocation5 + $0x250] ss:$8 sps:$4 sm:$0xff]  }
  0xe9   :  { %1290 = vmatprep.subr.bf16.mxu1 %v9721_v26  ;;  %v747_v22 = vld [vmem:[#allocation2 + $0x78] sm:$0xee] }
  0xea   :  { %v844_v26 = vsel %vm10522_vm2, %v842_v23, %v843_v24  ;;  %v749_v23 = vld [vmem:[#allocation2 + $0x88] sm:$0x11] }
  0xec   :  { %1291 = vmatpush1.bf16.msra.mxu1 %v9719_v27  ;;  %v847_v27 = vrot.slane %v10465_v44, 5 }
  0xed   :  { %1292 = vmatprep.subr.bf16.mxu1 %v9726_v30  ;;  %v740_v30 = vld [vmem:[#allocation2 + $0x40] sm:$0x11] }
  0xee   :  { %v849_v36 = vrot.slane %v847_v27, 4 }
  0xef   :  { %578 = vmatmul.mubr.bf16.gmra.mrb[28].mxu1 %v8324_v31  ;;  %v8390_v31 = vcombine.low %v834_v14, %v837_v15  ;;  %v864_v14 = vrot.slane %v746_v6, 5  ;;  %v9750_v15 = vld [vmem:[#allocation5 + $0x254] ss:$8 sps:$4 sm:$0xff]  }
  0xf0   :  { %587 = vmatprep.mubr.bf16.mxu1 %v8327_v32  ;;  %1293 = vmatpush1.bf16.msra.mxu1 %v9724_v33  ;;  %v9733_v32 = vld [vmem:[#allocation5 + $0x200] ss:$8 sps:$4 sm:$0xff]   ;;  %v8393_v33 = vcombine.high %v841_v25, %v844_v26 }
  0xf1   :  { %1294 = vmatprep.subr.bf16.mxu1 %v9731_v34  ;;  %v9738_v34 = vld [vmem:[#allocation5 + $0x214] ss:$8 sps:$4 sm:$0xff]   ;;  %v865_v18 = vsel %vm10522_vm2, %v863_v11, %v864_v14  ;;  %v889_v11 = vrot.slane %v10489_v29, 5  ;;  %v9771_v14 = vld [vmem:[#allocation5 + $0x2c4] ss:$8 sps:$4 sm:$0xff]  }
  0xf4   :  { %1295 = vmatpush1.bf16.msra.mxu1 %v9729_v35  ;;  %v8376_v35 = vrot.slane %v738_v28, 9 }
  0xf5   :  { %2181 = vmatprep.subr.bf16.mxu1 %v9735_v39  ;;  %v850_v39 = vrot.slane %v740_v30, 5  ;;  %v871_v30 = vrot.slane %v749_v23, 5 }
  0xf7   :  { %588 = vmatmul.mubr.bf16.gmra.mrb[32].mxu1 %v8326_v40  ;;  %v9736_v40 = vld [vmem:[#allocation5 + $0x210] ss:$8 sps:$4 sm:$0xff]   ;;  %v851_v42 = vsel %vm10522_vm2, %v849_v36, %v850_v39  ;;  %v9759_v36 = vld [vmem:[#allocation5 + $0x284] ss:$8 sps:$4 sm:$0xff]  }
  0xf8   :  { %597 = vmatprep.mubr.bf16.mxu1 %v8329_v41  ;;  %v848_v41 = vsel %vm10522_vm2, %v8376_v35, %v847_v27  ;;  %v8379_v27 = vrot.slane %v747_v22, 9  ;;  %v875_v35 = vrot.slane %v10481_v12, 5  ;;  %v750_v39 = vld [vmem:[#allocation2 + $0x90] sm:$0xee]  ;;  %v891_v22 = vrot.slane %v889_v11, 4 }
  0xf9   :  { %v8395_v51 = vcombine.high %v848_v41, %v851_v42 }
  0xff   :  { %598 = vmatmul.mubr.bf16.gmra.mrb[36].mxu1 %v8328_v45  ;;  %v9741_v45 = vld [vmem:[#allocation5 + $0x224] ss:$8 sps:$4 sm:$0xff]  }
 0x100   :  { %607 = vmatprep.mubr.bf16.mxu1 %v8331_v46  ;;  %v854_v46 = vrot.slane %v10469_v52, 5 }
 0x102   :  { %v856_v56 = vrot.slane %v854_v46, 4 }
 0x107   :  { %608 = vmatmul.mubr.bf16.gmra.mrb[40].mxu1 %v8330_v49  ;;  %v743_v49 = vld [vmem:[#allocation2 + $0x58] sm:$0x11] }
 0x108   :  { %617 = vmatprep.mubr.bf16.mxu1 %v8333_v50  ;;  %v8392_v50 = vcombine.low %v841_v25, %v844_v26  ;;  %v8399_v25 = vcombine.high %v862_v17, %v865_v18  ;;  %v9751_v26 = vld [vmem:[#allocation5 + $0x260] ss:$8 sps:$4 sm:$0xff]  }
 0x10f   :  { %618 = vmatmul.mubr.bf16.gmra.mrb[44].mxu1 %v8332_v54  ;;  %v9739_v54 = vld [vmem:[#allocation5 + $0x220] ss:$8 sps:$4 sm:$0xff]  }
 0x110   :  { %627 = vmatprep.mubr.bf16.mxu1 %v8335_v55  ;;  %v8377_v55 = vrot.slane %v741_v47, 9  ;;  %v877_v47 = vrot.slane %v875_v35, 4 }
 0x117   :  { %628 = vmatmul.mubr.bf16.gmra.mrb[48].mxu1 %v8334_v58  ;;  %v857_v58 = vrot.slane %v743_v49, 5 }
 0x118   :  { %637 = vmatprep.mubr.bf16.mxu1 %v8337_v59  ;;  %v9744_v59 = vld [vmem:[#allocation5 + $0x234] ss:$8 sps:$4 sm:$0xff]  }
 0x11f   :  { %638 = vmatmul.mubr.bf16.gmra.mrb[52].mxu1 %v8336_v63  ;;  %v855_v63 = vsel %vm10522_vm2, %v8377_v55, %v854_v46  ;;  %v8380_v46 = vrot.slane %v750_v39, 9 }
 0x120   :  { %647 = vmatprep.mubr.bf16.mxu1 %v8339_v0  ;;  %v858_v0 = vsel %vm10522_vm2, %v856_v56, %v857_v58  ;;  %v882_v56 = vrot.slane %v10485_v21, 5  ;;  %v9765_v58 = vld [vmem:[#allocation5 + $0x2a4] ss:$8 sps:$4 sm:$0xff]  }
 0x121   :  { %v8396_v24 = vcombine.low %v855_v63, %v858_v0 }
 0x122   :  { %v884_v5 = vrot.slane %v882_v56, 4 }
 0x127   :  { %648 = vmatmul.mubr.bf16.gmra.mrb[56].mxu1 %v8338_v7  ;;  %v8394_v7 = vcombine.low %v848_v41, %v851_v42  ;;  %v8398_v41 = vcombine.low %v862_v17, %v865_v18 }
 0x128   :  { %657 = vmatprep.mubr.bf16.mxu1 %v8341_v8  ;;  %v8397_v8 = vcombine.high %v855_v63, %v858_v0 }
 0x12f   :  { %658 = vmatmul.mubr.bf16.gmra.mrb[60].mxu1 %v8340_v19  ;;  %v868_v19 = vrot.slane %v10477_v4, 5 }
 0x130   :  { %1296 = vmatprep.mubr.bf16.mxu1 %v8391_v20  ;;  %v9753_v20 = vld [vmem:[#allocation5 + $0x264] ss:$8 sps:$4 sm:$0xff]  }
 0x131   :  { %v870_v28 = vrot.slane %v868_v19, 4 }
 0x137   :  { %1297 = vmatmul.mubr.bf16.vlgmr.msra.gmra.mrb[0].mxu1 %v8390_v31  ;;  %v9756_v31 = vld [vmem:[#allocation5 + $0x274] ss:$8 sps:$4 sm:$0xff]  }
 0x138   :  { %2182 = vmatpush1.bf16.msra.mxu1 %v9733_v32  ;;  %1306 = vmatprep.mubr.bf16.mxu1 %v8393_v33  ;;  %v9754_v32 = vld [vmem:[#allocation5 + $0x270] ss:$8 sps:$4 sm:$0xff]   ;;  %v869_v33 = vsel %vm10522_vm2, %v8379_v27, %v868_v19  ;;  %v9769_v19 = vld [vmem:[#allocation5 + $0x2c0] ss:$8 sps:$4 sm:$0xff]  }
 0x139   :  { %2183 = vmatprep.subr.bf16.mxu1 %v9738_v34  ;;  %v872_v34 = vsel %vm10522_vm2, %v870_v28, %v871_v30  ;;  %v896_v28 = vrot.slane %v10493_v38, 5  ;;  %v9777_v30 = vld [vmem:[#allocation5 + $0x2e4] ss:$8 sps:$4 sm:$0xff]  }
 0x13a   :  { %v8401_v42 = vcombine.high %v869_v33, %v872_v34  ;;  %v8400_v63 = vcombine.low %v869_v33, %v872_v34 }
 0x13b   :  { %v898_v39 = vrot.slane %v896_v28, 4 }
 0x13c   :  { %2184 = vmatpush1.bf16.msra.mxu1 %v9736_v40  ;;  %v752_v40 = vld [vmem:[#allocation2 + $0xa0] sm:$0x11] }
 0x13d   :  { %2185 = vmatprep.subr.bf16.mxu1 %v9741_v45  ;;  %v9757_v45 = vld [vmem:[#allocation5 + $0x280] ss:$8 sps:$4 sm:$0xff]   ;;  %v878_v49 = vrot.slane %v752_v40, 5 }
 0x13f   :  { %1307 = vmatmul.mubr.bf16.gmra.mrb[4].mxu1 %v8392_v50  ;;  %v9762_v50 = vld [vmem:[#allocation5 + $0x294] ss:$8 sps:$4 sm:$0xff]   ;;  %v879_v55 = vsel %vm10522_vm2, %v877_v47, %v878_v49  ;;  %v903_v47 = vrot.slane %v10497_v43, 5 }
 0x140   :  { %1316 = vmatprep.mubr.bf16.mxu1 %v8395_v51  ;;  %2186 = vmatpush1.bf16.msra.mxu1 %v9739_v54  ;;  %v9760_v51 = vld [vmem:[#allocation5 + $0x290] ss:$8 sps:$4 sm:$0xff]   ;;  %v876_v54 = vsel %vm10522_vm2, %v8380_v46, %v875_v35  ;;  %v9775_v35 = vld [vmem:[#allocation5 + $0x2e0] ss:$8 sps:$4 sm:$0xff]  }
 0x141   :  { %2187 = vmatprep.subr.bf16.mxu1 %v9744_v59  ;;  %v753_v59 = vld [vmem:[#allocation2 + $0xa8] sm:$0xee]  ;;  %v8403_v0 = vcombine.high %v876_v54, %v879_v55  ;;  %v8402_v17 = vcombine.low %v876_v54, %v879_v55  ;;  %v762_v49 = vld [vmem:[#allocation2 + $0xf0] sm:$0xee] }
 0x142   :  { %v8384_v55 = vrot.slane %v762_v49, 9  ;;  %v779_v49 = vld [vmem:[#allocation2 + $0x178] sm:$0x11] }
 0x144   :  { %2188 = vmatpush1.bf16.msra.mxu1 %v9742_v61  ;;  %v755_v61 = vld [vmem:[#allocation2 + $0xb8] sm:$0x11] }
 0x145   :  { %2189 = vmatprep.subr.bf16.mxu1 %v9747_v3  ;;  %v8381_v3 = vrot.slane %v753_v59, 9  ;;  %v885_v6 = vrot.slane %v755_v61, 5  ;;  %v904_v59 = vsel %vm10522_vm2, %v8384_v55, %v903_v47  ;;  %v941_v55 = vrot.slane %v779_v49, 5 }
 0x147   :  { %1317 = vmatmul.mubr.bf16.gmra.mrb[8].mxu1 %v8394_v7  ;;  %v9768_v7 = vld [vmem:[#allocation5 + $0x2b4] ss:$8 sps:$4 sm:$0xff]   ;;  %v886_v10 = vsel %vm10522_vm2, %v884_v5, %v885_v6 }
 0x148   :  { %1326 = vmatprep.mubr.bf16.mxu1 %v8397_v8  ;;  %2190 = vmatpush1.bf16.msra.mxu1 %v9745_v9  ;;  %v9766_v8 = vld [vmem:[#allocation5 + $0x2b0] ss:$8 sps:$4 sm:$0xff]   ;;  %v883_v9 = vsel %vm10522_vm2, %v8381_v3, %v882_v56  ;;  %v905_v56 = vrot.slane %v903_v47, 4  ;;  %v777_v47 = vld [vmem:[#allocation2 + $0x168] sm:$0xee] }
 0x149   :  { %2191 = vmatprep.subr.bf16.mxu1 %v9750_v15  ;;  %v756_v15 = vld [vmem:[#allocation2 + $0xc0] sm:$0xee]  ;;  %v8405_v18 = vcombine.high %v883_v9, %v886_v10  ;;  %v8404_v33 = vcombine.low %v883_v9, %v886_v10 }
 0x14c   :  { %2192 = vmatpush1.bf16.msra.mxu1 %v9748_v16  ;;  %v758_v16 = vld [vmem:[#allocation2 + $0xd0] sm:$0x11] }
 0x14d   :  { %2193 = vmatprep.subr.bf16.mxu1 %v9753_v20  ;;  %v8382_v20 = vrot.slane %v756_v15, 9  ;;  %v892_v23 = vrot.slane %v758_v16, 5  ;;  %v770_v15 = vld [vmem:[#allocation2 + $0x130] sm:$0x11] }
 0x14f   :  { %1327 = vmatmul.mubr.bf16.gmra.mrb[12].mxu1 %v8396_v24  ;;  %v9774_v24 = vld [vmem:[#allocation5 + $0x2d4] ss:$8 sps:$4 sm:$0xff]   ;;  %v893_v27 = vsel %vm10522_vm2, %v891_v22, %v892_v23  ;;  %v924_v23 = vrot.slane %v10509_v57, 5 }
 0x150   :  { %1336 = vmatprep.mubr.bf16.mxu1 %v8399_v25  ;;  %2194 = vmatpush1.bf16.msra.mxu1 %v9751_v26  ;;  %v9772_v25 = vld [vmem:[#allocation5 + $0x2d0] ss:$8 sps:$4 sm:$0xff]   ;;  %v890_v26 = vsel %vm10522_vm2, %v8382_v20, %v889_v11  ;;  %v917_v11 = vrot.slane %v10505_v53, 5 }
 0x151   :  { %2195 = vmatprep.subr.bf16.mxu1 %v9756_v31  ;;  %v759_v31 = vld [vmem:[#allocation2 + $0xd8] sm:$0xee]  ;;  %v8407_v34 = vcombine.high %v890_v26, %v893_v27 }
 0x154   :  { %2196 = vmatpush1.bf16.msra.mxu1 %v9754_v32  ;;  %v761_v32 = vld [vmem:[#allocation2 + $0xe8] sm:$0x11] }
 0x155   :  { %2197 = vmatprep.subr.bf16.mxu1 %v9759_v36  ;;  %v8383_v36 = vrot.slane %v759_v31, 9  ;;  %v899_v40 = vrot.slane %v761_v32, 5 }
 0x157   :  { %1337 = vmatmul.mubr.bf16.gmra.mrb[16].mxu1 %v8398_v41  ;;  %v9780_v41 = vld [vmem:[#allocation5 + $0x2f4] ss:$8 sps:$4 sm:$0xff]   ;;  %v900_v46 = vsel %vm10522_vm2, %v898_v39, %v899_v40 }
 0x158   :  { %1346 = vmatprep.mubr.bf16.mxu1 %v8401_v42  ;;  %2198 = vmatpush1.bf16.msra.mxu1 %v9757_v45  ;;  %v9778_v42 = vld [vmem:[#allocation5 + $0x2f0] ss:$8 sps:$4 sm:$0xff]   ;;  %v897_v45 = vsel %vm10522_vm2, %v8383_v36, %v896_v28  ;;  %v926_v28 = vrot.slane %v924_v23, 4 }
 0x159   :  { %2199 = vmatprep.subr.bf16.mxu1 %v9762_v50  ;;  %v764_v50 = vld [vmem:[#allocation2 + $0x100] sm:$0x11]  ;;  %v8409_v54 = vcombine.high %v897_v45, %v900_v46  ;;  %v8408_v3 = vcombine.low %v897_v45, %v900_v46  ;;  %v938_v46 = vrot.slane %v10517_v2, 5 }
 0x15c   :  { %2200 = vmatpush1.bf16.msra.mxu1 %v9760_v51  ;;  %v8406_v51 = vcombine.low %v890_v26, %v893_v27 }
 0x15d   :  { %2201 = vmatprep.subr.bf16.mxu1 %v9765_v58  ;;  %v906_v58 = vrot.slane %v764_v50, 5 }
 0x15f   :  { %1347 = vmatmul.mubr.bf16.gmra.mrb[20].mxu1 %v8400_v63  ;;  %v907_v61 = vsel %vm10522_vm2, %v905_v56, %v906_v58  ;;  %v910_v63 = vrot.slane %v10501_v48, 5 }
 0x160   :  { %1356 = vmatprep.mubr.bf16.mxu1 %v8403_v0  ;;  %2202 = vmatpush1.bf16.msra.mxu1 %v9763_v1  ;;  %v765_v0 = vld [vmem:[#allocation2 + $0x108] sm:$0xee]  ;;  %v767_v1 = vld [vmem:[#allocation2 + $0x118] sm:$0x11]  ;;  %v8411_v5 = vcombine.high %v904_v59, %v907_v61  ;;  %v8410_v48 = vcombine.low %v904_v59, %v907_v61 }
 0x161   :  { %2203 = vmatprep.subr.bf16.mxu1 %v9768_v7  ;;  %v8385_v6 = vrot.slane %v765_v0, 9  ;;  %v912_v7 = vrot.slane %v910_v63, 4  ;;  %v9781_v59 = vld [vmem:[#allocation2 + $0x8] sm:$0xff]  ;;  %v1651_v0 = vld [vmem:[#allocation2 + $0x10] sm:$0x33] }
 0x162   :  { %v1750_v61 = vrot.slane %v9781_v59, 6 }
 0x163   :  { %v911_v9 = vsel %vm10522_vm2, %v8385_v6, %v910_v63  ;;  %v1649_v63 = vld [vmem:[#allocation2] sm:$0xcc]  ;;  %v1753_v6 = vrot.slane %v1651_v0, 6 }
 0x164   :  { %2204 = vmatpush1.bf16.msra.mxu1 %v9766_v8  ;;  %v913_v8 = vrot.slane %v767_v1, 5 }
 0x165   :  { %2205 = vmatprep.subr.bf16.mxu1 %v9771_v14  ;;  %v768_v14 = vld [vmem:[#allocation2 + $0x120] sm:$0xee] }
 0x166   :  { %v914_v10 = vsel %vm10522_vm2, %v912_v7, %v913_v8 }
 0x167   :  { %1357 = vmatmul.mubr.bf16.gmra.mrb[24].mxu1 %v8402_v17  ;;  %v8413_v16 = vcombine.high %v911_v9, %v914_v10  ;;  %v8386_v17 = vrot.slane %v768_v14, 9  ;;  %v8412_v53 = vcombine.low %v911_v9, %v914_v10  ;;  %v1757_v10 = vrot.slane %v10461_v37, 6  ;;  %v1654_v14 = vld [vmem:[#allocation2 + $0x28] sm:$0x33] }
 0x168   :  { %1366 = vmatprep.mubr.bf16.mxu1 %v8405_v18  ;;  %2206 = vmatpush1.bf16.msra.mxu1 %v9769_v19  ;;  %v919_v18 = vrot.slane %v917_v11, 4  ;;  %v920_v19 = vrot.slane %v770_v15, 5 }
 0x169   :  { %2207 = vmatprep.subr.bf16.mxu1 %v9774_v24  ;;  %v918_v20 = vsel %vm10522_vm2, %v8386_v17, %v917_v11  ;;  %v771_v24 = vld [vmem:[#allocation2 + $0x138] sm:$0xee]  ;;  %v1759_v17 = vrot.slane %v1757_v10, 4 }
 0x16a   :  { %v921_v22 = vsel %vm10522_vm2, %v919_v18, %v920_v19  ;;  %v8387_v27 = vrot.slane %v771_v24, 9  ;;  %v1652_v11 = vld [vmem:[#allocation2 + $0x18] sm:$0xcc]  ;;  %v1760_v18 = vrot.slane %v1654_v14, 6  ;;  %v1657_v24 = vld [vmem:[#allocation2 + $0x40] sm:$0x33] }
 0x16b   :  { %v8415_v26 = vcombine.high %v918_v20, %v921_v22  ;;  %v8414_v57 = vcombine.low %v918_v20, %v921_v22  ;;  %v1764_v22 = vrot.slane %v10465_v44, 6 }
 0x16c   :  { %2208 = vmatpush1.bf16.msra.mxu1 %v9772_v25  ;;  %v773_v25 = vld [vmem:[#allocation2 + $0x148] sm:$0x11]  ;;  %v925_v31 = vsel %vm10522_vm2, %v8387_v27, %v924_v23  ;;  %v1761_v20 = vsel %vm10606_vm5, %v1759_v17, %v1760_v18  ;;  %v1655_v23 = vld [vmem:[#allocation2 + $0x30] sm:$0xcc]  ;;  %v1767_v27 = vrot.slane %v1657_v24, 6  ;;  %v1806_v24 = vrot.slane %v10489_v29, 6 }
 0x16d   :  { %2209 = vmatprep.subr.bf16.mxu1 %v9777_v30  ;;  %v927_v30 = vrot.slane %v773_v25, 5 }
 0x16f   :  { %1367 = vmatmul.mubr.bf16.gmra.mrb[28].mxu1 %v8404_v33  ;;  %v928_v32 = vsel %vm10522_vm2, %v926_v28, %v927_v30  ;;  %v931_v33 = vrot.slane %v10513_v62, 5 }
 0x170   :  { %1376 = vmatprep.mubr.bf16.mxu1 %v8407_v34  ;;  %2210 = vmatpush1.bf16.msra.mxu1 %v9775_v35  ;;  %v774_v34 = vld [vmem:[#allocation2 + $0x150] sm:$0xee]  ;;  %v776_v35 = vld [vmem:[#allocation2 + $0x160] sm:$0x11]  ;;  %v8417_v36 = vcombine.high %v925_v31, %v928_v32  ;;  %v8416_v62 = vcombine.low %v925_v31, %v928_v32  ;;  %v1771_v31 = vrot.slane %v10469_v52, 6 }
 0x171   :  { %2211 = vmatprep.subr.bf16.mxu1 %v9780_v41  ;;  %v8388_v39 = vrot.slane %v774_v34, 9  ;;  %v933_v40 = vrot.slane %v931_v33, 4  ;;  %v934_v41 = vrot.slane %v776_v35, 5  ;;  %v1658_v32 = vld [vmem:[#allocation2 + $0x48] sm:$0xcc] }
 0x172   :  { %v8457_v35 = vrot.slane %v1658_v32, 10  ;;  %v1813_v32 = vrot.slane %v10493_v38, 6 }
 0x173   :  { %v935_v45 = vsel %vm10522_vm2, %v933_v40, %v934_v41  ;;  %v1778_v41 = vrot.slane %v10473_v60, 6 }
 0x174   :  { %2212 = vmatpush1.bf16.msra.mxu1 %v9778_v42  ;;  %v932_v42 = vsel %vm10522_vm2, %v8388_v39, %v931_v33  ;;  %v1660_v33 = vld [vmem:[#allocation2 + $0x58] sm:$0x33]  ;;  %v1772_v39 = vsel %vm10606_vm5, %v8457_v35, %v1771_v31 }
 0x175   :  { %v8419_v50 = vcombine.high %v932_v42, %v935_v45  ;;  %v8418_v2 = vcombine.low %v932_v42, %v935_v45  ;;  %v1661_v42 = vld [vmem:[#allocation2 + $0x60] sm:$0xcc]  ;;  %v1663_v45 = vld [vmem:[#allocation2 + $0x70] sm:$0x33]  ;;  %v1780_v49 = vrot.slane %v1778_v41, 4 }
 0x177   :  { %1377 = vmatmul.mubr.bf16.gmra.mrb[32].mxu1 %v8406_v51  ;;  %v8389_v51 = vrot.slane %v777_v47, 9  ;;  %v8458_v47 = vrot.slane %v1661_v42, 10  ;;  %v1679_v42 = vld [vmem:[#allocation2 + $0xf0] sm:$0xcc] }
 0x178   :  { %1386 = vmatprep.mubr.bf16.mxu1 %v8409_v54  ;;  %v940_v54 = vrot.slane %v938_v46, 4 }
 0x179   :  { %v939_v56 = vsel %vm10522_vm2, %v8389_v51, %v938_v46 }
 0x17a   :  { %v942_v58 = vsel %vm10522_vm2, %v940_v54, %v941_v55  ;;  %v1785_v54 = vrot.slane %v10477_v4, 6  ;;  %v1664_v55 = vld [vmem:[#allocation2 + $0x78] sm:$0xcc] }
 0x17b   :  { %v8421_v1 = vcombine.high %v939_v56, %v942_v58  ;;  %v8420_v15 = vcombine.low %v939_v56, %v942_v58  ;;  %v1666_v56 = vld [vmem:[#allocation2 + $0x88] sm:$0x33]  ;;  %v8459_v59 = vrot.slane %v1664_v55, 10  ;;  %v1682_v55 = vld [vmem:[#allocation2 + $0x108] sm:$0xcc] }
 0x17d   :  { %v1786_v0 = vsel %vm10606_vm5, %v8459_v59, %v1785_v54 }
 0x17f   :  { %1387 = vmatmul.mubr.bf16.gmra.mrb[36].mxu1 %v8408_v3  ;;  %v8454_v3 = vrot.slane %v1649_v63, 10  ;;  %v1788_v63 = vrot.slane %v1666_v56, 6  ;;  %v1684_v56 = vld [vmem:[#allocation2 + $0x118] sm:$0x33] }
 0x180   :  { %1396 = vmatprep.mubr.bf16.mxu1 %v8411_v5  ;;  %v1752_v5 = vrot.slane %v1750_v61, 4 }
 0x181   :  { %v1751_v8 = vsel %vm10606_vm5, %v8454_v3, %v1750_v61  ;;  %v1787_v61 = vrot.slane %v1785_v54, 4  ;;  %v1667_v3 = vld [vmem:[#allocation2 + $0x90] sm:$0xcc] }
 0x182   :  { %v1754_v9 = vsel %vm10606_vm5, %v1752_v5, %v1753_v6  ;;  %v1669_v5 = vld [vmem:[#allocation2 + $0xa0] sm:$0x33] }
 0x183   :  { %v8470_v37 = vcombine.low %v1751_v8, %v1754_v9 }
 0x187   :  { %1397 = vmatmul.mubr.bf16.gmra.mrb[40].mxu1 %v8410_v48  ;;  %v8471_v48 = vcombine.high %v1751_v8, %v1754_v9  ;;  %v8460_v8 = vrot.slane %v1667_v3, 10  ;;  %v1685_v3 = vld [vmem:[#allocation2 + $0x120] sm:$0xcc] }
 0x188   :  { %1406 = vmatprep.mubr.bf16.mxu1 %v8413_v16  ;;  %v8455_v16 = vrot.slane %v1652_v11, 10 }
 0x18a   :  { %v1758_v19 = vsel %vm10606_vm5, %v8455_v16, %v1757_v10  ;;  %v1795_v10 = vrot.slane %v1669_v5, 6  ;;  %v1672_v16 = vld [vmem:[#allocation2 + $0xb8] sm:$0x33]  ;;  %v1687_v5 = vld [vmem:[#allocation2 + $0x130] sm:$0x33] }
 0x18b   :  { %v8473_v25 = vcombine.high %v1758_v19, %v1761_v20  ;;  %v8472_v44 = vcombine.low %v1758_v19, %v1761_v20  ;;  %v1802_v20 = vrot.slane %v1672_v16, 6  ;;  %v1688_v16 = vld [vmem:[#allocation2 + $0x138] sm:$0xcc] }
 0x18f   :  { %1407 = vmatmul.mubr.bf16.gmra.mrb[44].mxu1 %v8412_v53  ;;  %v8456_v53 = vrot.slane %v1655_v23, 10 }
 0x190   :  { %1416 = vmatprep.mubr.bf16.mxu1 %v8415_v26  ;;  %v1766_v26 = vrot.slane %v1764_v22, 4 }
 0x191   :  { %v1765_v28 = vsel %vm10606_vm5, %v8456_v53, %v1764_v22 }
 0x192   :  { %v1768_v30 = vsel %vm10606_vm5, %v1766_v26, %v1767_v27  ;;  %v1808_v27 = vrot.slane %v1806_v24, 4 }
 0x193   :  { %v8475_v34 = vcombine.high %v1765_v28, %v1768_v30  ;;  %v8474_v52 = vcombine.low %v1765_v28, %v1768_v30 }
 0x197   :  { %1417 = vmatmul.mubr.bf16.gmra.mrb[48].mxu1 %v8414_v57  ;;  %v1773_v57 = vrot.slane %v1771_v31, 4 }
 0x198   :  { %1426 = vmatprep.mubr.bf16.mxu1 %v8417_v36  ;;  %v1774_v36 = vrot.slane %v1660_v33, 6  ;;  %v1676_v33 = vld [vmem:[#allocation2 + $0xd8] sm:$0xcc] }
 0x199   :  { %v8463_v35 = vrot.slane %v1676_v33, 10 }
 0x19a   :  { %v1775_v40 = vsel %vm10606_vm5, %v1773_v57, %v1774_v36  ;;  %v1815_v57 = vrot.slane %v1813_v32, 4 }
 0x19b   :  { %v8477_v46 = vcombine.high %v1772_v39, %v1775_v40  ;;  %v8476_v60 = vcombine.low %v1772_v39, %v1775_v40  ;;  %v1814_v39 = vsel %vm10606_vm5, %v8463_v35, %v1813_v32  ;;  %v1695_v32 = vld [vmem:[#allocation2 + $0x170] sm:$0xff]  ;;  %v1696_v35 = vld [vmem:[#allocation2 + $0x178] sm:$0x33] }
 0x19f   :  { %1427 = vmatmul.mubr.bf16.gmra.mrb[52].mxu1 %v8416_v62  ;;  %v1781_v62 = vrot.slane %v1663_v45, 6  ;;  %v1681_v45 = vld [vmem:[#allocation2 + $0x100] sm:$0x33] }
 0x1a0   :  { %1436 = vmatprep.mubr.bf16.mxu1 %v8419_v50  ;;  %v1779_v50 = vsel %vm10606_vm5, %v8458_v47, %v1778_v41  ;;  %v1820_v41 = vrot.slane %v10497_v43, 6 }
 0x1a1   :  { %v1782_v51 = vsel %vm10606_vm5, %v1780_v49, %v1781_v62  ;;  %v1823_v49 = vrot.slane %v1681_v45, 6  ;;  %v1683_v62 = vld [vmem:[#allocation2 + $0x110] sm:$0xff] }
 0x1a2   :  { %v8479_v58 = vcombine.high %v1779_v50, %v1782_v51  ;;  %v8478_v4 = vcombine.low %v1779_v50, %v1782_v51  ;;  %v1822_v47 = vrot.slane %v1820_v41, 4  ;;  %v1827_v54 = vrot.slane %v1683_v62, 6 }
 0x1a4   :  { %v1824_v51 = vsel %vm10606_vm5, %v1822_v47, %v1823_v49  ;;  %v1829_v59 = vrot.slane %v1827_v54, 4 }
 0x1a7   :  { %1437 = vmatmul.mubr.bf16.gmra.mrb[56].mxu1 %v8418_v2  ;;  %v1789_v2 = vsel %vm10606_vm5, %v1787_v61, %v1788_v63  ;;  %v1830_v61 = vrot.slane %v1684_v56, 6  ;;  %v1686_v63 = vld [vmem:[#allocation2 + $0x128] sm:$0xff] }
 0x1a8   :  { %1446 = vmatprep.mubr.bf16.mxu1 %v8421_v1  ;;  %v1792_v1 = vrot.slane %v10481_v12, 6  ;;  %v8481_v6 = vcombine.high %v1786_v0, %v1789_v2  ;;  %v8480_v12 = vcombine.low %v1786_v0, %v1789_v2 }
 0x1a9   :  { %v1831_v2 = vsel %vm10606_vm5, %v1829_v59, %v1830_v61 }
 0x1aa   :  { %v1794_v9 = vrot.slane %v1792_v1, 4  ;;  %v1793_v11 = vsel %vm10606_vm5, %v8460_v8, %v1792_v1  ;;  %v1834_v1 = vrot.slane %v1686_v63, 6  ;;  %v8466_v8 = vrot.slane %v1685_v3, 10 }
 0x1ac   :  { %v1796_v14 = vsel %vm10606_vm5, %v1794_v9, %v1795_v10  ;;  %v1836_v9 = vrot.slane %v1834_v1, 4  ;;  %v1837_v10 = vrot.slane %v1687_v5, 6 }
 0x1ad   :  { %v8483_v17 = vcombine.high %v1793_v11, %v1796_v14 }
 0x1af   :  { %1447 = vmatmul.mubr.bf16.gmra.mrb[60].mxu1 %v8420_v15  ;;  %v1799_v15 = vrot.slane %v10485_v21, 6  ;;  %v8482_v21 = vcombine.low %v1793_v11, %v1796_v14  ;;  %v1689_v11 = vld [vmem:[#allocation2 + $0x140] sm:$0xff]  ;;  %v1835_v14 = vsel %vm10606_vm5, %v8466_v8, %v1834_v1 }
 0x1b0   :  { %2213 = vmatprep.mubr.bf16.mxu1 %v8471_v48  ;;  %v1670_v48 = vld [vmem:[#allocation2 + $0xa8] sm:$0xcc] }
 0x1b1   :  { %v8461_v18 = vrot.slane %v1670_v48, 10  ;;  %v1801_v19 = vrot.slane %v1799_v15, 4  ;;  %v1841_v48 = vrot.slane %v1689_v11, 6 }
 0x1b3   :  { %v1800_v22 = vsel %vm10606_vm5, %v8461_v18, %v1799_v15  ;;  %v1803_v23 = vsel %vm10606_vm5, %v1801_v19, %v1802_v20  ;;  %v1838_v15 = vsel %vm10606_vm5, %v1836_v9, %v1837_v10  ;;  %v8467_v19 = vrot.slane %v1688_v16, 10 }
 0x1b4   :  { %v8485_v53 = vcombine.high %v1800_v22, %v1803_v23  ;;  %v8484_v29 = vcombine.low %v1800_v22, %v1803_v23  ;;  %v8495_v18 = vcombine.high %v1835_v14, %v1838_v15  ;;  %v1843_v20 = vrot.slane %v1841_v48, 4  ;;  %v1692_v23 = vld [vmem:[#allocation2 + $0x158] sm:$0xff] }
 0x1b7   :  { %2214 = vmatmul.mubr.bf16.vlgmr.msra.gmra.mrb[0].mxu1 %v8470_v37  ;;  %v1673_v37 = vld [vmem:[#allocation2 + $0xc0] sm:$0xcc] }
 0x1b8   :  { %2223 = vmatprep.mubr.bf16.mxu1 %v8473_v25  ;;  %v1675_v25 = vld [vmem:[#allocation2 + $0xd0] sm:$0x33]  ;;  %v8462_v26 = vrot.slane %v1673_v37, 10 }
 0x1b9   :  { %v1809_v28 = vrot.slane %v1675_v25, 6  ;;  %v1848_v25 = vrot.slane %v1692_v23, 6 }
 0x1ba   :  { %v1807_v30 = vsel %vm10606_vm5, %v8462_v26, %v1806_v24  ;;  %v1842_v24 = vsel %vm10606_vm5, %v8467_v19, %v1841_v48  ;;  %v8494_v26 = vcombine.low %v1835_v14, %v1838_v15 }
 0x1bb   :  { %v1810_v31 = vsel %vm10606_vm5, %v1808_v27, %v1809_v28 }
 0x1bc   :  { %v8486_v38 = vcombine.low %v1807_v30, %v1810_v31 }
 0x1bf   :  { %2224 = vmatmul.mubr.bf16.gmra.mrb[4].mxu1 %v8472_v44  ;;  %v1678_v44 = vld [vmem:[#allocation2 + $0xe8] sm:$0x33] }
 0x1c0   :  { %2233 = vmatprep.mubr.bf16.mxu1 %v8475_v34  ;;  %v8487_v34 = vcombine.high %v1807_v30, %v1810_v31  ;;  %v1816_v36 = vrot.slane %v1678_v44, 6  ;;  %v1850_v30 = vrot.slane %v1848_v25, 4 }
 0x1c2   :  { %v1817_v40 = vsel %vm10606_vm5, %v1815_v57, %v1816_v36 }
 0x1c3   :  { %v8488_v43 = vcombine.low %v1814_v39, %v1817_v40 }
 0x1c7   :  { %2234 = vmatmul.mubr.bf16.gmra.mrb[8].mxu1 %v8474_v52  ;;  %v8489_v52 = vcombine.high %v1814_v39, %v1817_v40 }
 0x1c8   :  { %2243 = vmatprep.mubr.bf16.mxu1 %v8477_v46  ;;  %v8464_v46 = vrot.slane %v1679_v42, 10 }
 0x1ca   :  { %v1821_v50 = vsel %vm10606_vm5, %v8464_v46, %v1820_v41  ;;  %v1858_v41 = vrot.slane %v1696_v35, 6 }
 0x1cf   :  { %2244 = vmatmul.mubr.bf16.gmra.mrb[12].mxu1 %v8476_v60  ;;  %v8491_v60 = vcombine.high %v1821_v50, %v1824_v51 }
 0x1d0   :  { %2253 = vmatprep.mubr.bf16.mxu1 %v8479_v58  ;;  %v8465_v58 = vrot.slane %v1682_v55, 10 }
 0x1d2   :  { %v1828_v0 = vsel %vm10606_vm5, %v8465_v58, %v1827_v54 }
 0x1d7   :  { %2254 = vmatmul.mubr.bf16.gmra.mrb[16].mxu1 %v8478_v4  ;;  %v8490_v4 = vcombine.low %v1821_v50, %v1824_v51 }
 0x1d8   :  { %2263 = vmatprep.mubr.bf16.mxu1 %v8481_v6  ;;  %v8493_v6 = vcombine.high %v1828_v0, %v1831_v2 }
 0x1df   :  { %2264 = vmatmul.mubr.bf16.gmra.mrb[20].mxu1 %v8480_v12  ;;  %v1690_v12 = vld [vmem:[#allocation2 + $0x148] sm:$0x33] }
 0x1e0   :  { %2273 = vmatprep.mubr.bf16.mxu1 %v8483_v17  ;;  %v8492_v17 = vcombine.low %v1828_v0, %v1831_v2  ;;  %v1844_v22 = vrot.slane %v1690_v12, 6 }
 0x1e2   :  { %v1845_v37 = vsel %vm10606_vm5, %v1843_v20, %v1844_v22 }
 0x1e3   :  { %v8497_v27 = vcombine.high %v1842_v24, %v1845_v37  ;;  %v8496_v57 = vcombine.low %v1842_v24, %v1845_v37 }
 0x1e7   :  { %2274 = vmatmul.mubr.bf16.gmra.mrb[24].mxu1 %v8482_v21  ;;  %v1691_v21 = vld [vmem:[#allocation2 + $0x150] sm:$0xcc] }
 0x1e8   :  { %2283 = vmatprep.mubr.bf16.mxu1 %v8485_v53  ;;  %v1693_v53 = vld [vmem:[#allocation2 + $0x160] sm:$0x33]  ;;  %v8468_v28 = vrot.slane %v1691_v21, 10 }
 0x1e9   :  { %v1851_v31 = vrot.slane %v1693_v53, 6 }
 0x1ea   :  { %v1849_v33 = vsel %vm10606_vm5, %v8468_v28, %v1848_v25 }
 0x1eb   :  { %v1852_v44 = vsel %vm10606_vm5, %v1850_v30, %v1851_v31 }
 0x1ec   :  { %v8499_v36 = vcombine.high %v1849_v33, %v1852_v44 }
 0x1ef   :  { %2284 = vmatmul.mubr.bf16.gmra.mrb[28].mxu1 %v8484_v29  ;;  %v1855_v29 = vrot.slane %v1695_v32, 6 }
 0x1f0   :  { %2293 = vmatprep.mubr.bf16.mxu1 %v8487_v34  ;;  %v1694_v34 = vld [vmem:[#allocation2 + $0x168] sm:$0xcc] }
 0x1f1   :  { %v8469_v39 = vrot.slane %v1694_v34, 10  ;;  %v1857_v40 = vrot.slane %v1855_v29, 4 }
 0x1f3   :  { %v1856_v42 = vsel %vm10606_vm5, %v8469_v39, %v1855_v29  ;;  %v1859_v45 = vsel %vm10606_vm5, %v1857_v40, %v1858_v41 }
 0x1f4   :  { %v8500_v46 = vcombine.low %v1856_v42, %v1859_v45 }
 0x1f7   :  { %2294 = vmatmul.mubr.bf16.gmra.mrb[32].mxu1 %v8486_v38  ;;  %v8498_v38 = vcombine.low %v1849_v33, %v1852_v44 }
 0x1f8   :  { %2303 = vmatprep.mubr.bf16.mxu1 %v8489_v52  ;;  %v8501_v52 = vcombine.high %v1856_v42, %v1859_v45 }
 0x1ff   :  { %2304 = vmatmul.mubr.bf16.gmra.mrb[36].mxu1 %v8488_v43 }
 0x200   :  { %2313 = vmatprep.mubr.bf16.mxu1 %v8491_v60 }
 0x207   :  { %2314 = vmatmul.mubr.bf16.gmra.mrb[40].mxu1 %v8490_v4 }
 0x208   :  { %2323 = vmatprep.mubr.bf16.mxu1 %v8493_v6 }
 0x20f   :  { %2324 = vmatmul.mubr.bf16.gmra.mrb[44].mxu1 %v8492_v17 }
 0x210   :  { %2333 = vmatprep.mubr.bf16.mxu1 %v8495_v18 }
 0x217   :  { %2334 = vmatmul.mubr.bf16.gmra.mrb[48].mxu1 %v8494_v26 }
 0x218   :  { %2343 = vmatprep.mubr.bf16.mxu1 %v8497_v27 }
 0x21f   :  { %2344 = vmatmul.mubr.bf16.gmra.mrb[52].mxu1 %v8496_v57 }
 0x220   :  { %2353 = vmatprep.mubr.bf16.mxu1 %v8499_v36 }
 0x227   :  { %2354 = vmatmul.mubr.bf16.gmra.mrb[56].mxu1 %v8498_v38 }
 0x228   :  { %2363 = vmatprep.mubr.bf16.mxu1 %v8501_v52 }
 0x22f   :  { %2364 = vmatmul.mubr.bf16.gmra.mrb[60].mxu1 %v8500_v46 }
 0x230   :  { %10301 = dma.done.wait [#allocation4 + $0x1], 6144 }
 0x231   :  { %10302 = vsyncadd [#allocation4 + $0x1], 4294961152  ;;  %v9782_v47 = vld [vmem:[#allocation5 + $0x304] ss:$8 sps:$4 sm:$0xff]   ;;  %v9784_v49 = vld [vmem:[#allocation5 + $0x300] ss:$8 sps:$4 sm:$0xff]  }
 0x232   :  { %2953 = vmatprep.subr.bf16.mxu1 %v9782_v47  ;;  %v9785_v62 = vld [vmem:[#allocation5 + $0x314] ss:$8 sps:$4 sm:$0xff]   ;;  %v9787_v50 = vld [vmem:[#allocation5 + $0x310] ss:$8 sps:$4 sm:$0xff]   ;;  %v9788_v51 = vld [vmem:[#allocation5 + $0x324] ss:$8 sps:$4 sm:$0xff]  }
 0x233   :  { %2954 = vmatpush1.bf16.msra.mxu1 %v9784_v49  ;;  %v9790_v54 = vld [vmem:[#allocation5 + $0x320] ss:$8 sps:$4 sm:$0xff]   ;;  %v9791_v55 = vld [vmem:[#allocation5 + $0x334] ss:$8 sps:$4 sm:$0xff]   ;;  %v9793_v56 = vld [vmem:[#allocation5 + $0x330] ss:$8 sps:$4 sm:$0xff]  }
 0x234   :  { %2955 = vmatprep.subr.bf16.mxu1 %v9785_v62  ;;  %v9794_v43 = vld [vmem:[#allocation5 + $0x344] ss:$8 sps:$4 sm:$0xff]   ;;  %v9796_v60 = vld [vmem:[#allocation5 + $0x340] ss:$8 sps:$4 sm:$0xff]   ;;  %v9797_v58 = vld [vmem:[#allocation5 + $0x354] ss:$8 sps:$4 sm:$0xff]  }
 0x235   :  { %v9799_v59 = vld [vmem:[#allocation5 + $0x350] ss:$8 sps:$4 sm:$0xff]   ;;  %v9800_v61 = vld [vmem:[#allocation5 + $0x364] ss:$8 sps:$4 sm:$0xff]   ;;  %v9802_v1 = vld [vmem:[#allocation5 + $0x360] ss:$8 sps:$4 sm:$0xff]  }
 0x236   :  { %v10684_v63 = vld [vmem:[#allocation2 + $0x180] sm:$0xff]  ;;  %v10686_v0 = vld [vmem:[#allocation2 + $0x188] sm:$0xff]  ;;  %v9803_v3 = vld [vmem:[#allocation5 + $0x374] ss:$8 sps:$4 sm:$0xff]  }
 0x237   :  { %2956 = vmatpush1.bf16.msra.mxu1 %v9787_v50  ;;  %v8535_v2 = vcombine.high %v10684_v63, %v10686_v0  ;;  %v10690_v5 = vld [vmem:[#allocation5 + $0x404] ss:$8 sps:$4 sm:$0xff]   ;;  %v10692_v4 = vld [vmem:[#allocation5 + $0x400] ss:$8 sps:$4 sm:$0xff]   ;;  %v10694_v6 = vld [vmem:[#allocation5 + $0x414] ss:$8 sps:$4 sm:$0xff]   ;;  %v8534_v45 = vcombine.low %v10684_v63, %v10686_v0 }
 0x238   :  { %2957 = vmatprep.subr.bf16.mxu1 %v9788_v51  ;;  %3867 = vmatprep.subr.bf16.mxu0 %v10690_v5  ;;  %v9805_v8 = vld [vmem:[#allocation5 + $0x370] ss:$8 sps:$4 sm:$0xff]   ;;  %v9806_v9 = vld [vmem:[#allocation5 + $0x384] ss:$8 sps:$4 sm:$0xff]   ;;  %v9808_v14 = vld [vmem:[#allocation5 + $0x380] ss:$8 sps:$4 sm:$0xff]  }
 0x239   :  { %2985 = vmatprep.mubr.bf16.mxu1 %v8535_v2  ;;  %3868 = vmatpush1.bf16.msra.mxu0 %v10692_v4  ;;  %v10699_v10 = vld [vmem:[#allocation5 + $0x410] ss:$8 sps:$4 sm:$0xff]   ;;  %v10701_v11 = vld [vmem:[#allocation5 + $0x424] ss:$8 sps:$4 sm:$0xff]   ;;  %v9809_v15 = vld [vmem:[#allocation5 + $0x394] ss:$8 sps:$4 sm:$0xff]  }
 0x23a   :  { %3869 = vmatprep.subr.bf16.mxu0 %v10694_v6  ;;  %v10705_v48 = vld [vmem:[#allocation5 + $0x420] ss:$8 sps:$4 sm:$0xff]   ;;  %v10707_v16 = vld [vmem:[#allocation5 + $0x434] ss:$8 sps:$4 sm:$0xff]   ;;  %v9811_v12 = vld [vmem:[#allocation5 + $0x390] ss:$8 sps:$4 sm:$0xff]  }
 0x23b   :  { %2958 = vmatpush1.bf16.msra.mxu1 %v9790_v54  ;;  %v9812_v17 = vld [vmem:[#allocation5 + $0x3a4] ss:$8 sps:$4 sm:$0xff]   ;;  %v10711_v18 = vld [vmem:[#allocation5 + $0x430] ss:$8 sps:$4 sm:$0xff]   ;;  %v9814_v20 = vld [vmem:[#allocation5 + $0x3a0] ss:$8 sps:$4 sm:$0xff]  }
 0x23c   :  { %2959 = vmatprep.subr.bf16.mxu1 %v9791_v55  ;;  %v10713_v19 = vld [vmem:[#allocation5 + $0x444] ss:$8 sps:$4 sm:$0xff]   ;;  %v9815_v22 = vld [vmem:[#allocation5 + $0x3b4] ss:$8 sps:$4 sm:$0xff]   ;;  %v10717_v23 = vld [vmem:[#allocation5 + $0x440] ss:$8 sps:$4 sm:$0xff]  }
 0x23d   :  { %3870 = vmatpush1.bf16.msra.mxu0 %v10699_v10  ;;  %v10719_v24 = vld [vmem:[#allocation5 + $0x454] ss:$8 sps:$4 sm:$0xff]   ;;  %v9817_v37 = vld [vmem:[#allocation5 + $0x3b0] ss:$8 sps:$4 sm:$0xff]   ;;  %v9818_v25 = vld [vmem:[#allocation5 + $0x3c4] ss:$8 sps:$4 sm:$0xff]  }
 0x23e   :  { %3871 = vmatprep.subr.bf16.mxu0 %v10701_v11  ;;  %v10723_v21 = vld [vmem:[#allocation5 + $0x450] ss:$8 sps:$4 sm:$0xff]   ;;  %v10725_v53 = vld [vmem:[#allocation5 + $0x464] ss:$8 sps:$4 sm:$0xff]   ;;  %v9820_v26 = vld [vmem:[#allocation5 + $0x3c0] ss:$8 sps:$4 sm:$0xff]  }
 0x23f   :  { %2960 = vmatpush1.bf16.msra.mxu1 %v9793_v56  ;;  %v9821_v27 = vld [vmem:[#allocation5 + $0x3d4] ss:$8 sps:$4 sm:$0xff]   ;;  %v10729_v28 = vld [vmem:[#allocation5 + $0x460] ss:$8 sps:$4 sm:$0xff]   ;;  %v9823_v31 = vld [vmem:[#allocation5 + $0x3d0] ss:$8 sps:$4 sm:$0xff]  }
 0x240   :  { %2961 = vmatprep.subr.bf16.mxu1 %v9794_v43  ;;  %v10731_v30 = vld [vmem:[#allocation5 + $0x474] ss:$8 sps:$4 sm:$0xff]   ;;  %v9824_v32 = vld [vmem:[#allocation5 + $0x3e4] ss:$8 sps:$4 sm:$0xff]   ;;  %v10734_v33 = vld [vmem:[#allocation5 + $0x470] ss:$8 sps:$4 sm:$0xff]  }
 0x241   :  { %3872 = vmatpush1.bf16.msra.mxu0 %v10705_v48  ;;  %v10736_v44 = vld [vmem:[#allocation5 + $0x484] ss:$8 sps:$4 sm:$0xff]   ;;  %v9826_v29 = vld [vmem:[#allocation5 + $0x3e0] ss:$8 sps:$4 sm:$0xff]   ;;  %v9827_v34 = vld [vmem:[#allocation5 + $0x3f4] ss:$8 sps:$4 sm:$0xff]  }
 0x242   :  { %3873 = vmatprep.subr.bf16.mxu0 %v10707_v16  ;;  %v10739_v35 = vld [vmem:[#allocation5 + $0x480] ss:$8 sps:$4 sm:$0xff]   ;;  %v10742_v57 = vld [vmem:[#allocation5 + $0x494] ss:$8 sps:$4 sm:$0xff]   ;;  %v9829_v36 = vld [vmem:[#allocation5 + $0x3f0] ss:$8 sps:$4 sm:$0xff]  }
 0x243   :  { %2962 = vmatpush1.bf16.msra.mxu1 %v9796_v60  ;;  %v2570_v39 = vld [vmem:[#allocation2 + $0x198] sm:$0xff]  ;;  %v10745_v40 = vld [vmem:[#allocation2 + $0x1a0] sm:$0xff]  ;;  %v2572_v47 = vld [vmem:[#allocation2 + $0x1b0] sm:$0xff] }
 0x244   :  { %2963 = vmatprep.subr.bf16.mxu1 %v9797_v58  ;;  %v10747_v41 = vld [vmem:[#allocation5 + $0x490] ss:$8 sps:$4 sm:$0xff]   ;;  %v10750_v42 = vld [vmem:[#allocation5 + $0x4a4] ss:$8 sps:$4 sm:$0xff]   ;;  %v8537_v38 = vcombine.high %v2570_v39, %v10745_v40  ;;  %v10759_v52 = vld [vmem:[#allocation5 + $0x4a0] ss:$8 sps:$4 sm:$0xff]   ;;  %v8536_v51 = vcombine.low %v2570_v39, %v10745_v40 }
 0x245   :  { %3874 = vmatpush1.bf16.msra.mxu0 %v10711_v18  ;;  %v10761_v46 = vld [vmem:[#allocation5 + $0x4b4] ss:$8 sps:$4 sm:$0xff]   ;;  %v10768_v62 = vld [vmem:[#allocation5 + $0x4b0] ss:$8 sps:$4 sm:$0xff]   ;;  %v10771_v50 = vld [vmem:[#allocation5 + $0x4c4] ss:$8 sps:$4 sm:$0xff]  }
 0x246   :  { %3875 = vmatprep.subr.bf16.mxu0 %v10713_v19  ;;  %v10766_v49 = vld [vmem:[#allocation2 + $0x1b8] sm:$0xff]  ;;  %v10779_v55 = vld [vmem:[#allocation5 + $0x4c0] ss:$8 sps:$4 sm:$0xff]   ;;  %v10785_v60 = vld [vmem:[#allocation2 + $0x1d0] sm:$0xff] }
 0x247   :  { %2964 = vmatpush1.bf16.msra.mxu1 %v9799_v59  ;;  %v8539_v54 = vcombine.high %v2572_v47, %v10766_v49  ;;  %v10781_v56 = vld [vmem:[#allocation5 + $0x4d4] ss:$8 sps:$4 sm:$0xff]   ;;  %v2574_v43 = vld [vmem:[#allocation2 + $0x1c8] sm:$0xff]  ;;  %v10788_v58 = vld [vmem:[#allocation5 + $0x4d0] ss:$8 sps:$4 sm:$0xff]  }
 0x248   :  { %2965 = vmatprep.subr.bf16.mxu1 %v9800_v61  ;;  %v9904_v59 = vld [vmem:[#allocation5 + $0x4e4] ss:$8 sps:$4 sm:$0xff]   ;;  %v8538_v61 = vcombine.low %v2572_v47, %v10766_v49  ;;  %v8541_v63 = vcombine.high %v2574_v43, %v10785_v60  ;;  %v9902_v2 = vld [vmem:[#allocation5 + $0x4e0] ss:$8 sps:$4 sm:$0xff]  }
 0x249   :  { %3876 = vmatpush1.bf16.msra.mxu0 %v10717_v23 }
 0x24a   :  { %3877 = vmatprep.subr.bf16.mxu0 %v10719_v24 }
 0x24b   :  { %2966 = vmatpush1.bf16.msra.mxu1 %v9802_v1  ;;  %v9909_v1 = vld [vmem:[#allocation5 + $0x4f4] ss:$8 sps:$4 sm:$0xff]  }
 0x24c   :  { %2967 = vmatprep.subr.bf16.mxu1 %v9803_v3  ;;  %v2576_v3 = vld [vmem:[#allocation2 + $0x1e0] sm:$0xff] }
 0x24d   :  { %3878 = vmatpush1.bf16.msra.mxu0 %v10723_v21 }
 0x24e   :  { %3879 = vmatprep.subr.bf16.mxu0 %v10725_v53 }
 0x24f   :  { %2968 = vmatpush1.bf16.msra.mxu1 %v9805_v8 }
 0x250   :  { %2969 = vmatprep.subr.bf16.mxu1 %v9806_v9  ;;  %v2578_v9 = vld [vmem:[#allocation2 + $0x1f8] sm:$0xff] }
 0x251   :  { %3880 = vmatpush1.bf16.msra.mxu0 %v10729_v28 }
 0x252   :  { %3881 = vmatprep.subr.bf16.mxu0 %v10731_v30 }
 0x253   :  { %2970 = vmatpush1.bf16.msra.mxu1 %v9808_v14 }
 0x254   :  { %2971 = vmatprep.subr.bf16.mxu1 %v9809_v15  ;;  %v2580_v15 = vld [vmem:[#allocation2 + $0x210] sm:$0xff] }
 0x255   :  { %3882 = vmatpush1.bf16.msra.mxu0 %v10734_v33 }
 0x256   :  { %3883 = vmatprep.subr.bf16.mxu0 %v10736_v44 }
 0x257   :  { %2972 = vmatpush1.bf16.msra.mxu1 %v9811_v12 }
 0x258   :  { %2973 = vmatprep.subr.bf16.mxu1 %v9812_v17  ;;  %v2582_v17 = vld [vmem:[#allocation2 + $0x228] sm:$0xff] }
 0x259   :  { %3884 = vmatpush1.bf16.msra.mxu0 %v10739_v35 }
 0x25a   :  { %3885 = vmatprep.subr.bf16.mxu0 %v10742_v57 }
 0x25b   :  { %2974 = vmatpush1.bf16.msra.mxu1 %v9814_v20 }
 0x25c   :  { %2975 = vmatprep.subr.bf16.mxu1 %v9815_v22  ;;  %v2584_v22 = vld [vmem:[#allocation2 + $0x240] sm:$0xff] }
 0x25d   :  { %3886 = vmatpush1.bf16.msra.mxu0 %v10747_v41 }
 0x25e   :  { %3887 = vmatprep.subr.bf16.mxu0 %v10750_v42 }
 0x25f   :  { %2976 = vmatpush1.bf16.msra.mxu1 %v9817_v37 }
 0x260   :  { %2977 = vmatprep.subr.bf16.mxu1 %v9818_v25  ;;  %v2586_v25 = vld [vmem:[#allocation2 + $0x258] sm:$0xff] }
 0x261   :  { %3888 = vmatpush1.bf16.msra.mxu0 %v10759_v52 }
 0x262   :  { %3889 = vmatprep.subr.bf16.mxu0 %v10761_v46 }
 0x263   :  { %2978 = vmatpush1.bf16.msra.mxu1 %v9820_v26 }
 0x264   :  { %2979 = vmatprep.subr.bf16.mxu1 %v9821_v27  ;;  %v2588_v27 = vld [vmem:[#allocation2 + $0x270] sm:$0xff] }
 0x265   :  { %3890 = vmatpush1.bf16.msra.mxu0 %v10768_v62 }
 0x266   :  { %3891 = vmatprep.subr.bf16.mxu0 %v10771_v50 }
 0x267   :  { %2980 = vmatpush1.bf16.msra.mxu1 %v9823_v31 }
 0x268   :  { %2981 = vmatprep.subr.bf16.mxu1 %v9824_v32  ;;  %v2590_v32 = vld [vmem:[#allocation2 + $0x288] sm:$0xff] }
 0x269   :  { %3892 = vmatpush1.bf16.msra.mxu0 %v10779_v55 }
 0x26a   :  { %3893 = vmatprep.subr.bf16.mxu0 %v10781_v56 }
 0x26b   :  { %2982 = vmatpush1.bf16.msra.mxu1 %v9826_v29 }
 0x26c   :  { %2983 = vmatprep.subr.bf16.mxu1 %v9827_v34  ;;  %v3436_v34 = vrot.slane %v10686_v0, 5 }
 0x26d   :  { %3894 = vmatpush1.bf16.msra.mxu0 %v10788_v58 }
 0x26e   :  { %3895 = vmatprep.subr.bf16.mxu0 %v9904_v59  ;;  %v3438_v39 = vrot.slane %v3436_v34, 4 }
 0x26f   :  { %2984 = vmatpush1.bf16.msra.mxu1 %v9829_v36 }
 0x270   :  { %9049 = vmatprep.subr.bf16.mxu1 %v10690_v5  ;;  %v10797_v5 = vld [vmem:[#allocation2 + $0x1e8] sm:$0xff] }
 0x271   :  { %3896 = vmatpush1.bf16.msra.mxu0 %v9902_v2  ;;  %v8543_v8 = vcombine.high %v2576_v3, %v10797_v5 }
 0x272   :  { %2986 = vmatmul.mubr.bf16.vlgmr.msra.gmra.mrb[0].mxu1 %v8534_v45  ;;  %3897 = vmatprep.subr.bf16.mxu0 %v9909_v1  ;;  %v10848_v45 = vld [vmem:[#allocation2 + $0x2a8] sm:$0xff] }
 0x273   :  { %9065 = vmatpush1.bf16.msra.mxu1 %v10692_v4  ;;  %2995 = vmatprep.mubr.bf16.mxu1 %v8537_v38  ;;  %v9907_v4 = vld [vmem:[#allocation5 + $0x4f0] ss:$8 sps:$4 sm:$0xff]  }
 0x274   :  { %9050 = vmatprep.subr.bf16.mxu1 %v10694_v6  ;;  %v8540_v6 = vcombine.low %v2574_v43, %v10785_v60  ;;  %v3341_v43 = vld [vmem:[#allocation2 + $0x198] sm:$0xee] }
 0x275   :  { %3898 = vmatpush1.bf16.msra.mxu0 %v9907_v4 }
 0x277   :  { %9066 = vmatpush1.bf16.msra.mxu1 %v10699_v10  ;;  %v10805_v10 = vld [vmem:[#allocation2 + $0x200] sm:$0xff] }
 0x278   :  { %9051 = vmatprep.subr.bf16.mxu1 %v10701_v11  ;;  %v8542_v11 = vcombine.low %v2576_v3, %v10797_v5  ;;  %v8545_v14 = vcombine.high %v2578_v9, %v10805_v10 }
 0x27a   :  { %2996 = vmatmul.mubr.bf16.gmra.mrb[4].mxu1 %v8536_v51  ;;  %v9910_v51 = vld [vmem:[#allocation5 + $0x500] ss:$8 sps:$4 sm:$0xff]  }
 0x27b   :  { %3005 = vmatprep.mubr.bf16.mxu1 %v8539_v54  ;;  %9067 = vmatpush1.bf16.msra.mxu1 %v10705_v48  ;;  %v10813_v48 = vld [vmem:[#allocation2 + $0x218] sm:$0xff] }
 0x27c   :  { %9052 = vmatprep.subr.bf16.mxu1 %v10707_v16  ;;  %v8544_v16 = vcombine.low %v2578_v9, %v10805_v10  ;;  %v8547_v12 = vcombine.high %v2580_v15, %v10813_v48  ;;  %v9915_v54 = vld [vmem:[#allocation5 + $0x514] ss:$8 sps:$4 sm:$0xff]  }
 0x27f   :  { %9068 = vmatpush1.bf16.msra.mxu1 %v10711_v18  ;;  %v10821_v18 = vld [vmem:[#allocation2 + $0x230] sm:$0xff] }
 0x280   :  { %9053 = vmatprep.subr.bf16.mxu1 %v10713_v19  ;;  %v8546_v19 = vcombine.low %v2580_v15, %v10813_v48  ;;  %v8549_v20 = vcombine.high %v2582_v17, %v10821_v18  ;;  %v9921_v15 = vld [vmem:[#allocation5 + $0x534] ss:$8 sps:$4 sm:$0xff]  }
 0x282   :  { %3006 = vmatmul.mubr.bf16.gmra.mrb[8].mxu1 %v8538_v61 }
 0x283   :  { %3015 = vmatprep.mubr.bf16.mxu1 %v8541_v63  ;;  %9069 = vmatpush1.bf16.msra.mxu1 %v10717_v23  ;;  %v10829_v23 = vld [vmem:[#allocation2 + $0x248] sm:$0xff] }
 0x284   :  { %9054 = vmatprep.subr.bf16.mxu1 %v10719_v24  ;;  %v8548_v24 = vcombine.low %v2582_v17, %v10821_v18  ;;  %v8551_v37 = vcombine.high %v2584_v22, %v10829_v23  ;;  %v3344_v17 = vld [vmem:[#allocation2 + $0x1b0] sm:$0xee] }
 0x287   :  { %9070 = vmatpush1.bf16.msra.mxu1 %v10723_v21  ;;  %v10835_v21 = vld [vmem:[#allocation2 + $0x260] sm:$0xff] }
 0x288   :  { %9055 = vmatprep.subr.bf16.mxu1 %v10725_v53  ;;  %v8550_v53 = vcombine.low %v2584_v22, %v10829_v23  ;;  %v8553_v26 = vcombine.high %v2586_v25, %v10835_v21 }
 0x28a   :  { %3016 = vmatmul.mubr.bf16.gmra.mrb[12].mxu1 %v8540_v6 }
 0x28b   :  { %3025 = vmatprep.mubr.bf16.mxu1 %v8543_v8  ;;  %9071 = vmatpush1.bf16.msra.mxu1 %v10729_v28  ;;  %v10839_v28 = vld [vmem:[#allocation2 + $0x278] sm:$0xff]  ;;  %v9918_v8 = vld [vmem:[#allocation5 + $0x524] ss:$8 sps:$4 sm:$0xff]  }
 0x28c   :  { %9056 = vmatprep.subr.bf16.mxu1 %v10731_v30  ;;  %v8552_v30 = vcombine.low %v2586_v25, %v10835_v21  ;;  %v8555_v31 = vcombine.high %v2588_v27, %v10839_v28  ;;  %v10866_v25 = vld [vmem:[#allocation2 + $0x2d8] sm:$0xff] }
 0x28f   :  { %9072 = vmatpush1.bf16.msra.mxu1 %v10734_v33  ;;  %v10843_v33 = vld [vmem:[#allocation2 + $0x290] sm:$0xff] }
 0x290   :  { %9057 = vmatprep.subr.bf16.mxu1 %v10736_v44  ;;  %v8554_v44 = vcombine.low %v2588_v27, %v10839_v28  ;;  %v8557_v29 = vcombine.high %v2590_v32, %v10843_v33  ;;  %v8556_v47 = vcombine.low %v2590_v32, %v10843_v33 }
 0x292   :  { %3026 = vmatmul.mubr.bf16.gmra.mrb[16].mxu1 %v8542_v11 }
 0x293   :  { %3035 = vmatprep.mubr.bf16.mxu1 %v8545_v14  ;;  %9073 = vmatpush1.bf16.msra.mxu1 %v10739_v35  ;;  %v3338_v35 = vld [vmem:[#allocation2 + $0x180] sm:$0xee] }
 0x294   :  { %9058 = vmatprep.subr.bf16.mxu1 %v10742_v57  ;;  %v3340_v57 = vld [vmem:[#allocation2 + $0x190] sm:$0x11]  ;;  %v8598_v36 = vrot.slane %v3338_v35, 9  ;;  %v9916_v14 = vld [vmem:[#allocation5 + $0x520] ss:$8 sps:$4 sm:$0xff]  }
 0x295   :  { %v9925_v35 = vld [vmem:[#allocation5 + $0x550] ss:$8 sps:$4 sm:$0xff]  }
 0x296   :  { %v3437_v38 = vsel %vm10522_vm2, %v8598_v36, %v3436_v34  ;;  %v3457_v34 = vrot.slane %v10785_v60, 5  ;;  %v3349_v36 = vld [vmem:[#allocation2 + $0x1d8] sm:$0x11] }
 0x297   :  { %9074 = vmatpush1.bf16.msra.mxu1 %v10747_v41  ;;  %v3439_v41 = vrot.slane %v3340_v57, 5  ;;  %v3347_v57 = vld [vmem:[#allocation2 + $0x1c8] sm:$0xee] }
 0x298   :  { %9059 = vmatprep.subr.bf16.mxu1 %v10750_v42  ;;  %v2592_v42 = vld [vmem:[#allocation2 + $0x2a0] sm:$0xff] }
 0x299   :  { %v8558_v6 = vcombine.low %v2592_v42, %v10848_v45 }
 0x29a   :  { %3036 = vmatmul.mubr.bf16.gmra.mrb[20].mxu1 %v8544_v16  ;;  %v3450_v16 = vrot.slane %v10766_v49, 5 }
 0x29b   :  { %3045 = vmatprep.mubr.bf16.mxu1 %v8547_v12  ;;  %9075 = vmatpush1.bf16.msra.mxu1 %v10759_v52  ;;  %v3440_v52 = vsel %vm10522_vm2, %v3438_v39, %v3439_v41  ;;  %v9919_v12 = vld [vmem:[#allocation5 + $0x530] ss:$8 sps:$4 sm:$0xff]   ;;  %v8601_v39 = vrot.slane %v3347_v57, 9  ;;  %v3459_v41 = vrot.slane %v3457_v34, 4 }
 0x29c   :  { %9060 = vmatprep.subr.bf16.mxu1 %v10761_v46  ;;  %v8615_v46 = vcombine.high %v3437_v38, %v3440_v52  ;;  %v8614_v0 = vcombine.low %v3437_v38, %v3440_v52  ;;  %v3452_v22 = vrot.slane %v3450_v16, 4  ;;  %v2598_v38 = vld [vmem:[#allocation2 + $0x2e8] sm:$0xff]  ;;  %v10875_v52 = vld [vmem:[#allocation2 + $0x2f0] sm:$0xff] }
 0x29e   :  { %3899 = vmatprep.mubr.bf16.mxu0 %v8615_v46  ;;  %v3362_v46 = vld [vmem:[#allocation2 + $0x240] sm:$0xee] }
 0x29f   :  { %9076 = vmatpush1.bf16.msra.mxu1 %v10768_v62  ;;  %v9912_v62 = vld [vmem:[#allocation5 + $0x504] ss:$8 sps:$4 sm:$0xff]   ;;  %3900 = vmatmul.mubr.bf16.vlgmr.msra.gmra.mrb[0].mxu0 %v8614_v0  ;;  %v3458_v0 = vsel %vm10522_vm2, %v8601_v39, %v3457_v34  ;;  %v3506_v39 = vrot.slane %v10839_v28, 5  ;;  %v9945_v28 = vld [vmem:[#allocation5 + $0x5b4] ss:$8 sps:$4 sm:$0xff]  }
 0x2a0   :  { %9061 = vmatprep.subr.bf16.mxu1 %v10771_v50  ;;  %v8559_v50 = vcombine.high %v2592_v42, %v10848_v45  ;;  %4781 = vmatprep.subr.bf16.mxu0 %v9912_v62  ;;  %v3460_v42 = vrot.slane %v3349_v36, 5  ;;  %v3364_v62 = vld [vmem:[#allocation2 + $0x250] sm:$0x11]  ;;  %v3368_v36 = vld [vmem:[#allocation2 + $0x270] sm:$0xee] }
 0x2a1   :  { %4782 = vmatpush1.bf16.msra.mxu0 %v9910_v51 }
 0x2a2   :  { %3046 = vmatmul.mubr.bf16.gmra.mrb[24].mxu1 %v8546_v19  ;;  %4783 = vmatprep.subr.bf16.mxu0 %v9915_v54  ;;  %v3346_v19 = vld [vmem:[#allocation2 + $0x1c0] sm:$0x11]  ;;  %v3461_v60 = vsel %vm10522_vm2, %v3459_v41, %v3460_v42 }
 0x2a3   :  { %3055 = vmatprep.mubr.bf16.mxu1 %v8549_v20  ;;  %9077 = vmatpush1.bf16.msra.mxu1 %v10779_v55  ;;  %v3443_v55 = vrot.slane %v10745_v40, 5  ;;  %v8600_v20 = vrot.slane %v3344_v17, 9  ;;  %v9930_v54 = vld [vmem:[#allocation5 + $0x564] ss:$8 sps:$4 sm:$0xff]  }
 0x2a4   :  { %9062 = vmatprep.subr.bf16.mxu1 %v10781_v56  ;;  %v9913_v56 = vld [vmem:[#allocation5 + $0x510] ss:$8 sps:$4 sm:$0xff]   ;;  %v3370_v42 = vld [vmem:[#allocation2 + $0x280] sm:$0x11] }
 0x2a5   :  { %v3445_v61 = vrot.slane %v3443_v55, 4  ;;  %4784 = vmatpush1.bf16.msra.mxu0 %v9913_v56  ;;  %v8565_v56 = vcombine.high %v2598_v38, %v10875_v52 }
 0x2a6   :  { %4785 = vmatprep.subr.bf16.mxu0 %v9918_v8 }
 0x2a7   :  { %9078 = vmatpush1.bf16.msra.mxu1 %v10788_v58  ;;  %v3343_v58 = vld [vmem:[#allocation2 + $0x1a8] sm:$0x11] }
 0x2a8   :  { %9063 = vmatprep.subr.bf16.mxu1 %v9904_v59  ;;  %v8599_v59 = vrot.slane %v3341_v43, 9  ;;  %v3446_v63 = vrot.slane %v3343_v58, 5  ;;  %v8606_v43 = vrot.slane %v3362_v46, 9  ;;  %v9928_v58 = vld [vmem:[#allocation5 + $0x560] ss:$8 sps:$4 sm:$0xff]  }
 0x2a9   :  { %4786 = vmatpush1.bf16.msra.mxu0 %v9916_v14  ;;  %v3365_v14 = vld [vmem:[#allocation2 + $0x258] sm:$0xee] }
 0x2aa   :  { %3056 = vmatmul.mubr.bf16.gmra.mrb[28].mxu1 %v8548_v24  ;;  %v3444_v3 = vsel %vm10522_vm2, %v8599_v59, %v3443_v55  ;;  %4787 = vmatprep.subr.bf16.mxu0 %v9921_v15  ;;  %v3453_v24 = vrot.slane %v3346_v19, 5  ;;  %v8620_v55 = vcombine.low %v3458_v0, %v3461_v60  ;;  %v3499_v15 = vrot.slane %v10835_v21, 5  ;;  %v9939_v21 = vld [vmem:[#allocation5 + $0x594] ss:$8 sps:$4 sm:$0xff]  }
 0x2ab   :  { %3065 = vmatprep.mubr.bf16.mxu1 %v8551_v37  ;;  %9079 = vmatpush1.bf16.msra.mxu1 %v9902_v2  ;;  %v2594_v2 = vld [vmem:[#allocation2 + $0x2b8] sm:$0xff]  ;;  %v2596_v37 = vld [vmem:[#allocation2 + $0x2d0] sm:$0xff]  ;;  %v8564_v19 = vcombine.low %v2598_v38, %v10875_v52 }
 0x2ac   :  { %9064 = vmatprep.subr.bf16.mxu1 %v9909_v1  ;;  %v10857_v1 = vld [vmem:[#allocation2 + $0x2c0] sm:$0xff]  ;;  %v8563_v32 = vcombine.high %v2596_v37, %v10866_v25  ;;  %v8562_v51 = vcombine.low %v2596_v37, %v10866_v25  ;;  %v8607_v37 = vrot.slane %v3365_v14, 9 }
 0x2ad   :  { %v8561_v11 = vcombine.high %v2594_v2, %v10857_v1  ;;  %4788 = vmatpush1.bf16.msra.mxu0 %v9919_v12  ;;  %v8560_v27 = vcombine.low %v2594_v2, %v10857_v1  ;;  %v9931_v2 = vld [vmem:[#allocation5 + $0x570] ss:$8 sps:$4 sm:$0xff]   ;;  %v3367_v12 = vld [vmem:[#allocation2 + $0x268] sm:$0x11] }
 0x2af   :  { %9080 = vmatpush1.bf16.msra.mxu1 %v9907_v4  ;;  %v3447_v4 = vsel %vm10522_vm2, %v3445_v61, %v3446_v63  ;;  %v9933_v61 = vld [vmem:[#allocation5 + $0x574] ss:$8 sps:$4 sm:$0xff]   ;;  %v3464_v63 = vrot.slane %v10797_v5, 5 }
 0x2b0   :  { %v8617_v40 = vcombine.high %v3444_v3, %v3447_v4  ;;  %v8616_v9 = vcombine.low %v3444_v3, %v3447_v4  ;;  %v3350_v3 = vld [vmem:[#allocation2 + $0x1e0] sm:$0xee]  ;;  %v3352_v4 = vld [vmem:[#allocation2 + $0x1f0] sm:$0x11] }
 0x2b1   :  { %v3467_v8 = vrot.slane %v3352_v4, 5 }
 0x2b2   :  { %3066 = vmatmul.mubr.bf16.gmra.mrb[32].mxu1 %v8550_v53  ;;  %3909 = vmatprep.mubr.bf16.mxu0 %v8617_v40  ;;  %v3451_v53 = vsel %vm10522_vm2, %v8600_v20, %v3450_v16  ;;  %v8602_v40 = vrot.slane %v3350_v3, 9  ;;  %v9936_v20 = vld [vmem:[#allocation5 + $0x584] ss:$8 sps:$4 sm:$0xff]   ;;  %v3513_v3 = vrot.slane %v10843_v33, 5  ;;  %v9951_v33 = vld [vmem:[#allocation5 + $0x5d4] ss:$8 sps:$4 sm:$0xff]  }
 0x2b3   :  { %3075 = vmatprep.mubr.bf16.mxu1 %v8553_v26  ;;  %3910 = vmatmul.mubr.bf16.gmra.mrb[4].mxu0 %v8616_v9  ;;  %v3454_v26 = vsel %vm10522_vm2, %v3452_v22, %v3453_v24 }
 0x2b4   :  { %v8619_v49 = vcombine.high %v3451_v53, %v3454_v26  ;;  %v3465_v5 = vsel %vm10522_vm2, %v8602_v40, %v3464_v63  ;;  %v3371_v40 = vld [vmem:[#allocation2 + $0x288] sm:$0xee] }
 0x2b6   :  { %3919 = vmatprep.mubr.bf16.mxu0 %v8619_v49  ;;  %v3502_v49 = vrot.slane %v3367_v12, 5  ;;  %v3515_v12 = vrot.slane %v3513_v3, 4 }
 0x2ba   :  { %3076 = vmatmul.mubr.bf16.gmra.mrb[36].mxu1 %v8552_v30  ;;  %v9924_v30 = vld [vmem:[#allocation5 + $0x544] ss:$8 sps:$4 sm:$0xff]  }
 0x2bb   :  { %3085 = vmatprep.mubr.bf16.mxu1 %v8555_v31  ;;  %v8618_v31 = vcombine.low %v3451_v53, %v3454_v26  ;;  %4789 = vmatprep.subr.bf16.mxu0 %v9924_v30  ;;  %v9934_v53 = vld [vmem:[#allocation5 + $0x580] ss:$8 sps:$4 sm:$0xff]   ;;  %v3501_v26 = vrot.slane %v3499_v15, 4  ;;  %v9937_v30 = vld [vmem:[#allocation5 + $0x590] ss:$8 sps:$4 sm:$0xff]  }
 0x2bd   :  { %3920 = vmatmul.mubr.bf16.gmra.mrb[8].mxu0 %v8618_v31  ;;  %v3353_v31 = vld [vmem:[#allocation2 + $0x1f8] sm:$0xee]  ;;  %v3503_v57 = vsel %vm10522_vm2, %v3501_v26, %v3502_v49 }
 0x2c2   :  { %3086 = vmatmul.mubr.bf16.gmra.mrb[40].mxu1 %v8554_v44  ;;  %v9922_v44 = vld [vmem:[#allocation5 + $0x540] ss:$8 sps:$4 sm:$0xff]  }
 0x2c3   :  { %3095 = vmatprep.mubr.bf16.mxu1 %v8557_v29  ;;  %v9927_v29 = vld [vmem:[#allocation5 + $0x554] ss:$8 sps:$4 sm:$0xff]   ;;  %4790 = vmatpush1.bf16.msra.mxu0 %v9922_v44  ;;  %v8603_v44 = vrot.slane %v3353_v31, 9 }
 0x2c4   :  { %4791 = vmatprep.subr.bf16.mxu0 %v9927_v29 }
 0x2c7   :  { %4792 = vmatpush1.bf16.msra.mxu0 %v9925_v35  ;;  %v3500_v35 = vsel %vm10522_vm2, %v8607_v37, %v3499_v15  ;;  %v3520_v37 = vrot.slane %v10848_v45, 5 }
 0x2c8   :  { %4793 = vmatprep.subr.bf16.mxu0 %v9930_v54  ;;  %v3509_v54 = vrot.slane %v3370_v42, 5  ;;  %v9955_v42 = vld [vmem:[#allocation5 + $0x5f0] ss:$8 sps:$4 sm:$0xff]  }
 0x2ca   :  { %3096 = vmatmul.mubr.bf16.gmra.mrb[44].mxu1 %v8556_v47  ;;  %v3492_v47 = vrot.slane %v10829_v23, 5  ;;  %v3495_v23 = vrot.slane %v3364_v62, 5  ;;  %v8608_v62 = vrot.slane %v3368_v36, 9 }
 0x2cb   :  { %3105 = vmatprep.mubr.bf16.mxu1 %v8559_v50  ;;  %v8621_v50 = vcombine.high %v3458_v0, %v3461_v60  ;;  %4794 = vmatpush1.bf16.msra.mxu0 %v9928_v58  ;;  %v8633_v60 = vcombine.high %v3500_v35, %v3503_v57  ;;  %v3358_v58 = vld [vmem:[#allocation2 + $0x220] sm:$0x11] }
 0x2cc   :  { %v3494_v59 = vrot.slane %v3492_v47, 4  ;;  %4795 = vmatprep.subr.bf16.mxu0 %v9933_v61  ;;  %v3493_v9 = vsel %vm10522_vm2, %v8606_v43, %v3492_v47  ;;  %v9942_v47 = vld [vmem:[#allocation5 + $0x5a4] ss:$8 sps:$4 sm:$0xff]   ;;  %v3356_v43 = vld [vmem:[#allocation2 + $0x210] sm:$0xee]  ;;  %v3481_v61 = vrot.slane %v3358_v58, 5 }
 0x2cd   :  { %3929 = vmatprep.mubr.bf16.mxu0 %v8621_v50  ;;  %v9940_v50 = vld [vmem:[#allocation5 + $0x5a0] ss:$8 sps:$4 sm:$0xff]  }
 0x2ce   :  { %3930 = vmatmul.mubr.bf16.gmra.mrb[12].mxu0 %v8620_v55  ;;  %v3478_v55 = vrot.slane %v10813_v48, 5 }
 0x2cf   :  { %4796 = vmatpush1.bf16.msra.mxu0 %v9931_v2 }
 0x2d0   :  { %4797 = vmatprep.subr.bf16.mxu0 %v9936_v20  ;;  %v9949_v20 = vld [vmem:[#allocation5 + $0x5d0] ss:$8 sps:$4 sm:$0xff]  }
 0x2d2   :  { %3106 = vmatmul.mubr.bf16.gmra.mrb[48].mxu1 %v8558_v6  ;;  %v3466_v6 = vrot.slane %v3464_v63, 4  ;;  %v3507_v63 = vsel %vm10522_vm2, %v8608_v62, %v3506_v39  ;;  %v4255_v62 = vld [vmem:[#allocation2 + $0x198] sm:$0xcc] }
 0x2d3   :  { %3115 = vmatprep.mubr.bf16.mxu1 %v8561_v11  ;;  %v3496_v11 = vsel %vm10522_vm2, %v3494_v59, %v3495_v23  ;;  %4798 = vmatpush1.bf16.msra.mxu0 %v9934_v53  ;;  %v8604_v59 = vrot.slane %v3356_v43, 9  ;;  %v3480_v23 = vrot.slane %v3478_v55, 4  ;;  %v4259_v43 = vld [vmem:[#allocation2 + $0x1b8] sm:$0xff] }
 0x2d4   :  { %v3468_v16 = vsel %vm10522_vm2, %v3466_v6, %v3467_v8  ;;  %v8631_v24 = vcombine.high %v3493_v9, %v3496_v11  ;;  %4799 = vmatprep.subr.bf16.mxu0 %v9939_v21  ;;  %v8630_v46 = vcombine.low %v3493_v9, %v3496_v11  ;;  %v3373_v6 = vld [vmem:[#allocation2 + $0x298] sm:$0x11]  ;;  %v8632_v9 = vcombine.low %v3500_v35, %v3503_v57  ;;  %v9948_v11 = vld [vmem:[#allocation5 + $0x5c4] ss:$8 sps:$4 sm:$0xff]  }
 0x2d5   :  { %v8623_v17 = vcombine.high %v3465_v5, %v3468_v16  ;;  %v8622_v22 = vcombine.low %v3465_v5, %v3468_v16  ;;  %v3479_v48 = vsel %vm10522_vm2, %v8604_v59, %v3478_v55  ;;  %v3482_v4 = vsel %vm10522_vm2, %v3480_v23, %v3481_v61  ;;  %v9946_v5 = vld [vmem:[#allocation5 + $0x5c0] ss:$8 sps:$4 sm:$0xff]   ;;  %v9954_v57 = vld [vmem:[#allocation5 + $0x5e4] ss:$8 sps:$4 sm:$0xff]  }
 0x2d6   :  { %v8627_v8 = vcombine.high %v3479_v48, %v3482_v4  ;;  %v8626_v14 = vcombine.low %v3479_v48, %v3482_v4  ;;  %v8609_v16 = vrot.slane %v3371_v40, 9  ;;  %v3374_v21 = vld [vmem:[#allocation2 + $0x2a0] sm:$0xee]  ;;  %v4257_v55 = vld [vmem:[#allocation2 + $0x1a8] sm:$0x33]  ;;  %v4364_v48 = vrot.slane %v4259_v43, 6 }
 0x2d7   :  { %3939 = vmatprep.mubr.bf16.mxu0 %v8623_v17  ;;  %4800 = vmatpush1.bf16.msra.mxu0 %v9937_v30  ;;  %v3516_v17 = vrot.slane %v3373_v6, 5  ;;  %v4360_v61 = vrot.slane %v4257_v55, 6  ;;  %v3377_v4 = vld [vmem:[#allocation2 + $0x2b8] sm:$0xee]  ;;  %v3379_v40 = vld [vmem:[#allocation2 + $0x2c8] sm:$0x11] }
 0x2d8   :  { %3940 = vmatmul.mubr.bf16.gmra.mrb[16].mxu0 %v8622_v22  ;;  %4801 = vmatprep.subr.bf16.mxu0 %v9942_v47  ;;  %v3359_v22 = vld [vmem:[#allocation2 + $0x228] sm:$0xee]  ;;  %v10919_v30 = vsel %vm10522_vm2, %v8609_v16, %v3513_v3  ;;  %v4254_v47 = vld [vmem:[#allocation2 + $0x190] sm:$0x33]  ;;  %v4260_v3 = vld [vmem:[#allocation2 + $0x1c0] sm:$0x33] }
 0x2d9   :  { %v8605_v53 = vrot.slane %v3359_v22, 9 }
 0x2da   :  { %3116 = vmatmul.mubr.bf16.gmra.mrb[52].mxu1 %v8560_v27  ;;  %v3471_v27 = vrot.slane %v10805_v10, 5 }
 0x2db   :  { %3125 = vmatprep.mubr.bf16.mxu1 %v8563_v32  ;;  %v3355_v32 = vld [vmem:[#allocation2 + $0x208] sm:$0x11]  ;;  %4802 = vmatpush1.bf16.msra.mxu0 %v9940_v50 }
 0x2dc   :  { %v3473_v29 = vrot.slane %v3471_v27, 4  ;;  %v3474_v34 = vrot.slane %v3355_v32, 5  ;;  %v3472_v10 = vsel %vm10522_vm2, %v8603_v44, %v3471_v27  ;;  %4803 = vmatprep.subr.bf16.mxu0 %v9945_v28  ;;  %v3376_v27 = vld [vmem:[#allocation2 + $0x2b0] sm:$0x11]  ;;  %v4256_v28 = vld [vmem:[#allocation2 + $0x1a0] sm:$0xff] }
 0x2dd   :  { %v3523_v35 = vrot.slane %v3376_v27, 5  ;;  %v4357_v23 = vrot.slane %v4256_v28, 6  ;;  %v3534_v27 = vrot.slane %v10866_v25, 5 }
 0x2de   :  { %v3475_v41 = vsel %vm10522_vm2, %v3473_v29, %v3474_v34  ;;  %v8610_v29 = vrot.slane %v3374_v21, 9  ;;  %v3522_v34 = vrot.slane %v3520_v37, 4 }
 0x2df   :  { %v8625_v38 = vcombine.high %v3472_v10, %v3475_v41  ;;  %v8624_v0 = vcombine.low %v3472_v10, %v3475_v41  ;;  %v9952_v10 = vld [vmem:[#allocation5 + $0x5e0] ss:$8 sps:$4 sm:$0xff]  }
 0x2e0   :  { %v4253_v41 = vld [vmem:[#allocation2 + $0x188] sm:$0xff]  ;;  %v10933_v50 = vsel %vm10522_vm2, %v8610_v29, %v3520_v37 }
 0x2e1   :  { %3949 = vmatprep.mubr.bf16.mxu0 %v8625_v38  ;;  %v9957_v38 = vld [vmem:[#allocation5 + $0x5f4] ss:$8 sps:$4 sm:$0xff]  }
 0x2e2   :  { %3126 = vmatmul.mubr.bf16.gmra.mrb[56].mxu1 %v8562_v51  ;;  %v3508_v51 = vrot.slane %v3506_v39, 4  ;;  %3950 = vmatmul.mubr.bf16.gmra.mrb[20].mxu0 %v8624_v0 }
 0x2e3   :  { %3135 = vmatprep.mubr.bf16.mxu1 %v8565_v56  ;;  %v9943_v56 = vld [vmem:[#allocation5 + $0x5b0] ss:$8 sps:$4 sm:$0xff]   ;;  %3959 = vmatprep.mubr.bf16.mxu0 %v8627_v8 }
 0x2e4   :  { %v3510_v2 = vsel %vm10522_vm2, %v3508_v51, %v3509_v54  ;;  %4804 = vmatpush1.bf16.msra.mxu0 %v9943_v56  ;;  %v3524_v51 = vsel %vm10522_vm2, %v3522_v34, %v3523_v35  ;;  %v4353_v54 = vrot.slane %v4254_v47, 6  ;;  %v8679_v56 = vrot.slane %v4255_v62, 10  ;;  %v4264_v62 = vld [vmem:[#allocation2 + $0x1e0] sm:$0xcc] }
 0x2e5   :  { %v8635_v15 = vcombine.high %v3507_v63, %v3510_v2  ;;  %4805 = vmatprep.subr.bf16.mxu0 %v9948_v11  ;;  %v8634_v32 = vcombine.low %v3507_v63, %v3510_v2  ;;  %v3527_v63 = vrot.slane %v10857_v1, 5  ;;  %v4258_v2 = vld [vmem:[#allocation2 + $0x1b0] sm:$0xcc] }
 0x2e6   :  { %v4358_v8 = vsel %vm10606_vm5, %v8679_v56, %v4357_v23  ;;  %v8680_v16 = vrot.slane %v4258_v2, 10 }
 0x2e8   :  { %4806 = vmatpush1.bf16.msra.mxu0 %v9946_v5  ;;  %v4365_v37 = vsel %vm10606_vm5, %v8680_v16, %v4364_v48 }
 0x2e9   :  { %4807 = vmatprep.subr.bf16.mxu0 %v9951_v33  ;;  %v8611_v33 = vrot.slane %v3377_v4, 9 }
 0x2ea   :  { %3136 = vmatmul.mubr.bf16.gmra.mrb[60].mxu1 %v8564_v19  ;;  %3960 = vmatmul.mubr.bf16.gmra.mrb[24].mxu0 %v8626_v14  ;;  %v3485_v19 = vrot.slane %v10821_v18, 5  ;;  %v10923_v18 = vsel %vm10522_vm2, %v3515_v12, %v3516_v17  ;;  %v8639_v14 = vcombine.high %v10933_v50, %v3524_v51  ;;  %v4366_v12 = vrot.slane %v4364_v48, 4 }
 0x2eb   :  { %3979 = vmatprep.mubr.bf16.mxu1 %v8631_v24  ;;  %v3361_v24 = vld [vmem:[#allocation2 + $0x238] sm:$0x11]  ;;  %v8637_v39 = vcombine.high %v10919_v30, %v10923_v18  ;;  %v8636_v11 = vcombine.low %v10919_v30, %v10923_v18  ;;  %v4367_v17 = vrot.slane %v4260_v3, 6  ;;  %v4261_v30 = vld [vmem:[#allocation2 + $0x1c8] sm:$0xcc]  ;;  %v4268_v3 = vld [vmem:[#allocation2 + $0x200] sm:$0xff] }
 0x2ec   :  { %v3487_v26 = vrot.slane %v3485_v19, 4  ;;  %v3488_v49 = vrot.slane %v3361_v24, 5  ;;  %v3486_v31 = vsel %vm10522_vm2, %v8605_v53, %v3485_v19  ;;  %4808 = vmatpush1.bf16.msra.mxu0 %v9949_v20  ;;  %v3529_v19 = vrot.slane %v3527_v63, 4  ;;  %v4262_v24 = vld [vmem:[#allocation2 + $0x1d0] sm:$0xff]  ;;  %v4263_v18 = vld [vmem:[#allocation2 + $0x1d8] sm:$0x33] }
 0x2ed   :  { %4809 = vmatprep.subr.bf16.mxu0 %v9954_v57  ;;  %v3530_v20 = vrot.slane %v3379_v40, 5  ;;  %v4368_v53 = vsel %vm10606_vm5, %v4366_v12, %v4367_v17  ;;  %v8681_v35 = vrot.slane %v4261_v30, 10  ;;  %v4385_v4 = vrot.slane %v4268_v3, 6  ;;  %v4271_v17 = vld [vmem:[#allocation2 + $0x218] sm:$0xff]  ;;  %v4274_v30 = vld [vmem:[#allocation2 + $0x230] sm:$0xff] }
 0x2ee   :  { %v3489_v45 = vsel %vm10522_vm2, %v3487_v26, %v3488_v49  ;;  %v4371_v26 = vrot.slane %v4262_v24, 6  ;;  %v3528_v49 = vsel %vm10522_vm2, %v8611_v33, %v3527_v63  ;;  %v8699_v29 = vcombine.high %v4365_v37, %v4368_v53  ;;  %v4272_v24 = vld [vmem:[#allocation2 + $0x220] sm:$0x33] }
 0x2ef   :  { %v8629_v44 = vcombine.high %v3486_v31, %v3489_v45  ;;  %v8628_v36 = vcombine.low %v3486_v31, %v3489_v45  ;;  %v3531_v21 = vsel %vm10522_vm2, %v3529_v19, %v3530_v20  ;;  %v3380_v31 = vld [vmem:[#allocation2 + $0x2d0] sm:$0xee]  ;;  %v3382_v45 = vld [vmem:[#allocation2 + $0x2e0] sm:$0x11]  ;;  %v8698_v28 = vcombine.low %v4365_v37, %v4368_v53 }
 0x2f0   :  { %4810 = vmatpush1.bf16.msra.mxu0 %v9952_v10  ;;  %v8641_v34 = vcombine.high %v3528_v49, %v3531_v21  ;;  %v4373_v57 = vrot.slane %v4371_v26, 4  ;;  %v3536_v10 = vrot.slane %v3534_v27, 4  ;;  %v4372_v25 = vsel %vm10606_vm5, %v8681_v35, %v4371_v26 }
 0x2f1   :  { %3969 = vmatprep.mubr.bf16.mxu0 %v8629_v44  ;;  %4811 = vmatprep.subr.bf16.mxu0 %v9957_v38  ;;  %v8638_v44 = vcombine.low %v10933_v50, %v3524_v51  ;;  %v4266_v50 = vld [vmem:[#allocation2 + $0x1f0] sm:$0x33]  ;;  %v3383_v51 = vld [vmem:[#allocation2 + $0x2e8] sm:$0xee]  ;;  %v8640_v55 = vcombine.low %v3528_v49, %v3531_v21  ;;  %v4387_v16 = vrot.slane %v4385_v4, 4  ;;  %v4392_v20 = vrot.slane %v4271_v17, 6 }
 0x2f2   :  { %3980 = vmatmul.mubr.bf16.vlgmr.msra.gmra.mrb[32].mxu1 %v8630_v46  ;;  %3970 = vmatmul.mubr.bf16.gmra.mrb[28].mxu0 %v8628_v36  ;;  %v4252_v46 = vld [vmem:[#allocation2 + $0x180] sm:$0xcc]  ;;  %v4374_v36 = vrot.slane %v4263_v18, 6 }
 0x2f3   :  { %3989 = vmatprep.mubr.bf16.mxu1 %v8633_v60  ;;  %v8678_v0 = vrot.slane %v4252_v46, 10  ;;  %v4350_v60 = vrot.slane %v4253_v41, 6  ;;  %v3537_v41 = vrot.slane %v3382_v45, 5  ;;  %v4394_v21 = vrot.slane %v4392_v20, 4 }
 0x2f4   :  { %4812 = vmatpush1.bf16.msra.mxu0 %v9955_v42  ;;  %v4265_v42 = vld [vmem:[#allocation2 + $0x1e8] sm:$0xff]  ;;  %v4375_v38 = vsel %vm10606_vm5, %v4373_v57, %v4374_v36  ;;  %v4399_v45 = vrot.slane %v4274_v30, 6 }
 0x2f5   :  { %v4351_v58 = vsel %vm10606_vm5, %v8678_v0, %v4350_v60  ;;  %v4352_v59 = vrot.slane %v4350_v60, 4  ;;  %v4378_v46 = vrot.slane %v4265_v42, 6  ;;  %v3538_v0 = vsel %vm10522_vm2, %v3536_v10, %v3537_v41 }
 0x2f6   :  { %v3541_v60 = vrot.slane %v10875_v52, 5  ;;  %v8701_v56 = vcombine.high %v4372_v25, %v4375_v38  ;;  %v4401_v57 = vrot.slane %v4399_v45, 4 }
 0x2f7   :  { %v4354_v6 = vsel %vm10606_vm5, %v4352_v59, %v4353_v54  ;;  %v3385_v54 = vld [vmem:[#allocation2 + $0x2f8] sm:$0x11]  ;;  %v4380_v59 = vrot.slane %v4378_v46, 4 }
 0x2f8   :  { %v8695_v1 = vcombine.high %v4351_v58, %v4354_v6  ;;  %v3543_v63 = vrot.slane %v3541_v60, 4  ;;  %v3544_v2 = vrot.slane %v3385_v54, 5 }
 0x2fa   :  { %3990 = vmatmul.mubr.bf16.gmra.mrb[36].mxu1 %v8632_v9  ;;  %v4359_v9 = vrot.slane %v4357_v23, 4  ;;  %4813 = vmatprep.mubr.bf16.mxu0 %v8695_v1  ;;  %v4381_v23 = vrot.slane %v4266_v50, 6 }
 0x2fb   :  { %3999 = vmatprep.mubr.bf16.mxu1 %v8635_v15  ;;  %v8694_v15 = vcombine.low %v4351_v58, %v4354_v6  ;;  %v8682_v58 = vrot.slane %v4264_v62, 10  ;;  %v3545_v6 = vsel %vm10522_vm2, %v3543_v63, %v3544_v2  ;;  %v4279_v63 = vld [vmem:[#allocation2 + $0x258] sm:$0xcc]  ;;  %v4281_v2 = vld [vmem:[#allocation2 + $0x268] sm:$0x33] }
 0x2fc   :  { %v4361_v5 = vsel %vm10606_vm5, %v4359_v9, %v4360_v61  ;;  %v8613_v61 = vrot.slane %v3383_v51, 9  ;;  %v4382_v48 = vsel %vm10606_vm5, %v4380_v59, %v4381_v23  ;;  %v4269_v9 = vld [vmem:[#allocation2 + $0x208] sm:$0x33]  ;;  %v4280_v59 = vld [vmem:[#allocation2 + $0x260] sm:$0xff]  ;;  %v8687_v3 = vrot.slane %v4279_v63, 10 }
 0x2fd   :  { %v8697_v22 = vcombine.high %v4358_v8, %v4361_v5  ;;  %4814 = vmatmul.mubr.bf16.vlgmr.msra.gmra.mrb[0].mxu0 %v8694_v15  ;;  %v4379_v52 = vsel %vm10606_vm5, %v8682_v58, %v4378_v46  ;;  %v4388_v12 = vrot.slane %v4269_v9, 6 }
 0x2fe   :  { %v3542_v40 = vsel %vm10522_vm2, %v8613_v61, %v3541_v60  ;;  %v8703_v15 = vcombine.high %v4379_v52, %v4382_v48  ;;  %v8702_v37 = vcombine.low %v4379_v52, %v4382_v48  ;;  %v4413_v61 = vrot.slane %v4280_v59, 6 }
 0x2ff   :  { %4823 = vmatprep.mubr.bf16.mxu0 %v8697_v22  ;;  %v8645_v1 = vcombine.high %v3542_v40, %v3545_v6  ;;  %v4389_v19 = vsel %vm10606_vm5, %v4387_v16, %v4388_v12  ;;  %v4270_v22 = vld [vmem:[#allocation2 + $0x210] sm:$0xcc]  ;;  %v8644_v53 = vcombine.low %v3542_v40, %v3545_v6  ;;  %v4416_v48 = vrot.slane %v4281_v2, 6  ;;  %v4284_v12 = vld [vmem:[#allocation2 + $0x280] sm:$0x33] }
 0x300   :  { %v8684_v49 = vrot.slane %v4270_v22, 10  ;;  %v4415_v52 = vrot.slane %v4413_v61, 4  ;;  %v4282_v16 = vld [vmem:[#allocation2 + $0x270] sm:$0xcc] }
 0x301   :  { %v8688_v17 = vrot.slane %v4282_v16, 10 }
 0x302   :  { %4000 = vmatmul.mubr.bf16.gmra.mrb[40].mxu1 %v8634_v32  ;;  %v8696_v32 = vcombine.low %v4358_v8, %v4361_v5  ;;  %v4267_v8 = vld [vmem:[#allocation2 + $0x1f8] sm:$0xcc]  ;;  %v4393_v18 = vsel %vm10606_vm5, %v8684_v49, %v4392_v20  ;;  %v4417_v40 = vsel %vm10606_vm5, %v4415_v52, %v4416_v48  ;;  %v4293_v52 = vld [vmem:[#allocation2 + $0x2c8] sm:$0x33] }
 0x303   :  { %4009 = vmatprep.mubr.bf16.mxu1 %v8637_v39  ;;  %v8612_v39 = vrot.slane %v3380_v31, 9  ;;  %v8683_v5 = vrot.slane %v4267_v8, 10 }
 0x305   :  { %4824 = vmatmul.mubr.bf16.gmra.mrb[4].mxu0 %v8696_v32  ;;  %v3535_v47 = vsel %vm10522_vm2, %v8612_v39, %v3534_v27  ;;  %v4386_v33 = vsel %vm10606_vm5, %v8683_v5, %v4385_v4  ;;  %v4395_v27 = vrot.slane %v4272_v24, 6  ;;  %v4273_v32 = vld [vmem:[#allocation2 + $0x228] sm:$0xcc]  ;;  %v4414_v4 = vsel %vm10606_vm5, %v8687_v3, %v4413_v61  ;;  %v4292_v61 = vld [vmem:[#allocation2 + $0x2c0] sm:$0xff]  ;;  %v4291_v3 = vld [vmem:[#allocation2 + $0x2b8] sm:$0xcc] }
 0x306   :  { %4833 = vmatprep.mubr.bf16.mxu0 %v8699_v29  ;;  %v8643_v43 = vcombine.high %v3535_v47, %v3538_v0  ;;  %v8705_v26 = vcombine.high %v4386_v33, %v4389_v19  ;;  %v8704_v29 = vcombine.low %v4386_v33, %v4389_v19  ;;  %v8685_v35 = vrot.slane %v4273_v32, 10 }
 0x307   :  { %v4396_v31 = vsel %vm10606_vm5, %v4394_v21, %v4395_v27  ;;  %v8713_v8 = vcombine.high %v4414_v4, %v4417_v40  ;;  %v4423_v19 = vrot.slane %v4284_v12, 6  ;;  %v4286_v21 = vld [vmem:[#allocation2 + $0x290] sm:$0xff]  ;;  %v4441_v2 = vrot.slane %v4292_v61, 6 }
 0x308   :  { %v4400_v39 = vsel %vm10606_vm5, %v8685_v35, %v4399_v45  ;;  %v8706_v41 = vcombine.low %v4393_v18, %v4396_v31  ;;  %v4427_v30 = vrot.slane %v4286_v21, 6  ;;  %v8691_v48 = vrot.slane %v4291_v3, 10 }
 0x30a   :  { %4010 = vmatmul.mubr.bf16.gmra.mrb[44].mxu1 %v8636_v11  ;;  %v8700_v11 = vcombine.low %v4372_v25, %v4375_v38  ;;  %v4277_v38 = vld [vmem:[#allocation2 + $0x248] sm:$0xff]  ;;  %v4429_v32 = vrot.slane %v4427_v30, 4 }
 0x30b   :  { %4019 = vmatprep.mubr.bf16.mxu1 %v8639_v14  ;;  %v8642_v14 = vcombine.low %v3535_v47, %v3538_v0  ;;  %v4406_v46 = vrot.slane %v4277_v38, 6  ;;  %v4276_v47 = vld [vmem:[#allocation2 + $0x240] sm:$0xcc]  ;;  %v4278_v0 = vld [vmem:[#allocation2 + $0x250] sm:$0x33] }
 0x30c   :  { %v8686_v60 = vrot.slane %v4276_v47, 10  ;;  %v4409_v50 = vrot.slane %v4278_v0, 6  ;;  %v4288_v38 = vld [vmem:[#allocation2 + $0x2a0] sm:$0xcc] }
 0x30d   :  { %4834 = vmatmul.mubr.bf16.gmra.mrb[8].mxu0 %v8698_v28  ;;  %v4408_v62 = vrot.slane %v4406_v46, 4  ;;  %v8690_v47 = vrot.slane %v4288_v38, 10  ;;  %v4299_v38 = vld [vmem:[#allocation2 + $0x2f8] sm:$0x33] }
 0x30e   :  { %4843 = vmatprep.mubr.bf16.mxu0 %v8701_v56  ;;  %v4407_v51 = vsel %vm10606_vm5, %v8686_v60, %v4406_v46  ;;  %v4290_v46 = vld [vmem:[#allocation2 + $0x2b0] sm:$0x33] }
 0x30f   :  { %v4410_v54 = vsel %vm10606_vm5, %v4408_v62, %v4409_v50  ;;  %v4437_v60 = vrot.slane %v4290_v46, 6 }
 0x312   :  { %4020 = vmatmul.mubr.bf16.gmra.mrb[48].mxu1 %v8638_v44  ;;  %v4275_v44 = vld [vmem:[#allocation2 + $0x238] sm:$0x33] }
 0x313   :  { %4029 = vmatprep.mubr.bf16.mxu1 %v8641_v34  ;;  %v8707_v34 = vcombine.high %v4393_v18, %v4396_v31  ;;  %v4402_v36 = vrot.slane %v4275_v44, 6  ;;  %v4285_v18 = vld [vmem:[#allocation2 + $0x288] sm:$0xcc]  ;;  %v4287_v31 = vld [vmem:[#allocation2 + $0x298] sm:$0x33] }
 0x314   :  { %v8689_v45 = vrot.slane %v4285_v18, 10  ;;  %v4430_v44 = vrot.slane %v4287_v31, 6 }
 0x315   :  { %4844 = vmatmul.mubr.bf16.gmra.mrb[12].mxu0 %v8700_v11  ;;  %v4403_v10 = vsel %vm10606_vm5, %v4401_v57, %v4402_v36  ;;  %v8712_v11 = vcombine.low %v4414_v4, %v4417_v40  ;;  %v4443_v4 = vrot.slane %v4441_v2, 4  ;;  %v4444_v40 = vrot.slane %v4293_v52, 6 }
 0x316   :  { %4853 = vmatprep.mubr.bf16.mxu0 %v8703_v15  ;;  %v8709_v42 = vcombine.high %v4400_v39, %v4403_v10  ;;  %v8708_v25 = vcombine.low %v4400_v39, %v4403_v10  ;;  %v4283_v15 = vld [vmem:[#allocation2 + $0x278] sm:$0xff] }
 0x317   :  { %v4420_v5 = vrot.slane %v4283_v15, 6 }
 0x319   :  { %v4422_v33 = vrot.slane %v4420_v5, 4  ;;  %v4421_v20 = vsel %vm10606_vm5, %v8688_v17, %v4420_v5 }
 0x31a   :  { %4030 = vmatmul.mubr.bf16.gmra.mrb[52].mxu1 %v8640_v55  ;;  %v8711_v55 = vcombine.high %v4407_v51, %v4410_v54 }
 0x31b   :  { %4039 = vmatprep.mubr.bf16.mxu1 %v8643_v43  ;;  %v8710_v43 = vcombine.low %v4407_v51, %v4410_v54  ;;  %v4424_v22 = vsel %vm10606_vm5, %v4422_v33, %v4423_v19  ;;  %v4295_v33 = vld [vmem:[#allocation2 + $0x2d8] sm:$0xff] }
 0x31d   :  { %4854 = vmatmul.mubr.bf16.gmra.mrb[16].mxu0 %v8702_v37  ;;  %v8715_v37 = vcombine.high %v4421_v20, %v4424_v22 }
 0x31e   :  { %4863 = vmatprep.mubr.bf16.mxu0 %v8705_v26  ;;  %v8714_v26 = vcombine.low %v4421_v20, %v4424_v22  ;;  %v4448_v20 = vrot.slane %v4295_v33, 6  ;;  %v4294_v22 = vld [vmem:[#allocation2 + $0x2d0] sm:$0xcc] }
 0x320   :  { %v4450_v21 = vrot.slane %v4448_v20, 4 }
 0x322   :  { %4040 = vmatmul.mubr.bf16.gmra.mrb[56].mxu1 %v8642_v14 }
 0x323   :  { %4049 = vmatprep.mubr.bf16.mxu1 %v8645_v1 }
 0x325   :  { %4864 = vmatmul.mubr.bf16.gmra.mrb[20].mxu0 %v8704_v29  ;;  %v4428_v29 = vsel %vm10606_vm5, %v8689_v45, %v4427_v30 }
 0x326   :  { %4873 = vmatprep.mubr.bf16.mxu0 %v8707_v34  ;;  %v4431_v34 = vsel %vm10606_vm5, %v4429_v32, %v4430_v44 }
 0x327   :  { %v8717_v57 = vcombine.high %v4428_v29, %v4431_v34  ;;  %v8716_v39 = vcombine.low %v4428_v29, %v4431_v34 }
 0x32a   :  { %4050 = vmatmul.mubr.bf16.gmra.mrb[60].mxu1 %v8644_v53 }
 0x32d   :  { %4874 = vmatmul.mubr.bf16.gmra.mrb[24].mxu0 %v8706_v41  ;;  %v4289_v41 = vld [vmem:[#allocation2 + $0x2a8] sm:$0xff] }
 0x32e   :  { %4883 = vmatprep.mubr.bf16.mxu0 %v8709_v42 }
 0x335   :  { %4884 = vmatmul.mubr.bf16.gmra.mrb[28].mxu0 %v8708_v25  ;;  %v4434_v25 = vrot.slane %v4289_v41, 6 }
 0x336   :  { %4893 = vmatprep.mubr.bf16.mxu0 %v8711_v55 }
 0x337   :  { %v4436_v0 = vrot.slane %v4434_v25, 4  ;;  %v4435_v62 = vsel %vm10606_vm5, %v8690_v47, %v4434_v25  ;;  %v4297_v25 = vld [vmem:[#allocation2 + $0x2e8] sm:$0xcc] }
 0x338   :  { %v8693_v46 = vrot.slane %v4297_v25, 10 }
 0x339   :  { %v4438_v50 = vsel %vm10606_vm5, %v4436_v0, %v4437_v60  ;;  %v4458_v0 = vrot.slane %v4299_v38, 6 }
 0x33a   :  { %v8719_v54 = vcombine.high %v4435_v62, %v4438_v50 }
 0x33d   :  { %4894 = vmatmul.mubr.bf16.gmra.mrb[32].mxu0 %v8710_v43  ;;  %v8718_v43 = vcombine.low %v4435_v62, %v4438_v50 }
 0x33e   :  { %4903 = vmatprep.mubr.bf16.mxu0 %v8713_v8  ;;  %v4442_v8 = vsel %vm10606_vm5, %v8691_v48, %v4441_v2 }
 0x345   :  { %v10992_v28 = vpop.f32.mrb[0].mxu1  ;;  %4904 = vmatmul.mubr.bf16.gmra.mrb[36].mxu0 %v8712_v11  ;;  %v4445_v11 = vsel %vm10606_vm5, %v4443_v4, %v4444_v40 }
 0x346   :  { %v10994_v56 = vpop.f32.mrb[1].mxu1  ;;  %4913 = vmatprep.mubr.bf16.mxu0 %v8715_v37  ;;  %v8721_v5 = vcombine.high %v4442_v8, %v4445_v11  ;;  %v8720_v12 = vcombine.low %v4442_v8, %v4445_v11  ;;  %v4296_v37 = vld [vmem:[#allocation2 + $0x2e0] sm:$0x33] }
 0x347   :  { %v10996_v58 = vpop.f32.mrb[2].mxu1  ;;  %v4451_v30 = vrot.slane %v4296_v37, 6 }
 0x348   :  { %v10998_v23 = vpop.f32.mrb[3].mxu1 }
 0x349   :  { %v4452_v31 = vsel %vm10606_vm5, %v4450_v21, %v4451_v30 }
 0x34d   :  { %v11004_v6 = vpop.f32.mrb[4].mxu1  ;;  %4914 = vmatmul.mubr.bf16.gmra.mrb[40].mxu0 %v8714_v26  ;;  %v8692_v26 = vrot.slane %v4294_v22, 10 }
 0x34e   :  { %v11006_v9 = vpop.f32.mrb[5].mxu1  ;;  %4923 = vmatprep.mubr.bf16.mxu0 %v8717_v57  ;;  %v4298_v57 = vld [vmem:[#allocation2 + $0x2f0] sm:$0xff] }
 0x34f   :  { %v11008_v14 = vpop.f32.mrb[6].mxu1  ;;  %v4449_v18 = vsel %vm10606_vm5, %v8692_v26, %v4448_v20  ;;  %v4455_v41 = vrot.slane %v4298_v57, 6 }
 0x350   :  { %v11010_v1 = vpop.f32.mrb[7].mxu1  ;;  %v8723_v32 = vcombine.high %v4449_v18, %v4452_v31  ;;  %v8722_v29 = vcombine.low %v4449_v18, %v4452_v31 }
 0x351   :  { %v4457_v47 = vrot.slane %v4455_v41, 4  ;;  %v4456_v60 = vsel %vm10606_vm5, %v8693_v46, %v4455_v41 }
 0x353   :  { %v4459_v62 = vsel %vm10606_vm5, %v4457_v47, %v4458_v0 }
 0x354   :  { %v8724_v61 = vcombine.low %v4456_v60, %v4459_v62 }
 0x355   :  { %v11016_v24 = vpop.f32.mrb[8].mxu1  ;;  %4924 = vmatmul.mubr.bf16.gmra.mrb[44].mxu0 %v8716_v39 }
 0x356   :  { %v11018_v53 = vpop.f32.mrb[9].mxu1  ;;  %4933 = vmatprep.mubr.bf16.mxu0 %v8719_v54  ;;  %v8725_v54 = vcombine.high %v4456_v60, %v4459_v62 }
 0x357   :  { %v11020_v49 = vpop.f32.mrb[10].mxu1 }
 0x358   :  { %v11022_v27 = vpop.f32.mrb[11].mxu1 }
 0x35d   :  { %v11028_v35 = vpop.f32.mrb[12].mxu1  ;;  %4934 = vmatmul.mubr.bf16.gmra.mrb[48].mxu0 %v8718_v43 }
 0x35e   :  { %v11030_v36 = vpop.f32.mrb[13].mxu1  ;;  %4943 = vmatprep.mubr.bf16.mxu0 %v8721_v5 }
 0x35f   :  { %v11032_v10 = vpop.f32.mrb[14].mxu1 }
 0x360   :  { %v11034_v42 = vpop.f32.mrb[15].mxu1 }
 0x365   :  { %v11040_v51 = vpop.f32.mrb[16].mxu1  ;;  %4944 = vmatmul.mubr.bf16.gmra.mrb[52].mxu0 %v8720_v12 }
 0x366   :  { %v11042_v55 = vpop.f32.mrb[17].mxu1  ;;  %4953 = vmatprep.mubr.bf16.mxu0 %v8723_v32 }
 0x367   :  { %v11044_v59 = vpop.f32.mrb[18].mxu1 }
 0x368   :  { %v11046_v63 = vpop.f32.mrb[19].mxu1 }
 0x36d   :  { %v11052_v15 = vpop.f32.mrb[20].mxu1  ;;  %4954 = vmatmul.mubr.bf16.gmra.mrb[56].mxu0 %v8722_v29 }
 0x36e   :  { %v11054_v16 = vpop.f32.mrb[21].mxu1  ;;  %4963 = vmatprep.mubr.bf16.mxu0 %v8725_v54 }
 0x36f   :  { %v11056_v17 = vpop.f32.mrb[22].mxu1 }
 0x370   :  { %v11058_v19 = vpop.f32.mrb[23].mxu1 }
 0x375   :  { %v11064_v45 = vpop.f32.mrb[24].mxu1  ;;  %4964 = vmatmul.mubr.bf16.gmra.mrb[60].mxu0 %v8724_v61 }
 0x376   :  { %v11066_v44 = vpop.f32.mrb[25].mxu1 }
 0x377   :  { %v11068_v34 = vpop.f32.mrb[26].mxu1 }
 0x378   :  { %11595 = vst [vmem:[#allocation21_spill] sm:$0xff] %v11068_v34  ;;  %v11070_v39 = vpop.f32.mrb[27].mxu1 }
 0x379   :  { %11596 = vst [vmem:[#allocation22_spill] sm:$0xff] %v11070_v39 }
 0x37d   :  { %v11076_v50 = vpop.f32.mrb[28].mxu1 }
 0x37e   :  { %11597 = vst [vmem:[#allocation23_spill] sm:$0xff] %v11076_v50  ;;  %v11078_v43 = vpop.f32.mrb[29].mxu1 }
 0x37f   :  { %11598 = vst [vmem:[#allocation24_spill] sm:$0xff] %v11078_v43  ;;  %v11080_v2 = vpop.f32.mrb[30].mxu1 }
 0x380   :  { %11599 = vst [vmem:[#allocation25_spill] sm:$0xff] %v11080_v2  ;;  %v11082_v3 = vpop.f32.mrb[31].mxu1 }
 0x381   :  { %11600 = vst [vmem:[#allocation26_spill] sm:$0xff] %v11082_v3 }
 0x3c5   :  { %v11084_v52 = vpop.f32.mrb[32].mxu1 }
 0x3c6   :  { %11601 = vst [vmem:[#allocation27_spill] sm:$0xff] %v11084_v52  ;;  %v11086_v48 = vpop.f32.mrb[33].mxu1 }
 0x3c7   :  { %11602 = vst [vmem:[#allocation28_spill] sm:$0xff] %v11086_v48  ;;  %v11088_v4 = vpop.f32.mrb[34].mxu1 }
 0x3c8   :  { %11603 = vst [vmem:[#allocation29_spill] sm:$0xff] %v11088_v4  ;;  %v11090_v40 = vpop.f32.mrb[35].mxu1 }
 0x3c9   :  { %11604 = vst [vmem:[#allocation30_spill] sm:$0xff] %v11090_v40 }
 0x3cd   :  { %v11092_v8 = vpop.f32.mrb[36].mxu1 }
 0x3ce   :  { %11605 = vst [vmem:[#allocation31_spill] sm:$0xff] %v11092_v8  ;;  %v11094_v11 = vpop.f32.mrb[37].mxu1 }
 0x3cf   :  { %11606 = vst [vmem:[#allocation32_spill] sm:$0xff] %v11094_v11  ;;  %v11096_v5 = vpop.f32.mrb[38].mxu1 }
 0x3d0   :  { %11607 = vst [vmem:[#allocation33_spill] sm:$0xff] %v11096_v5  ;;  %v11098_v12 = vpop.f32.mrb[39].mxu1 }
 0x3d1   :  { %11608 = vst [vmem:[#allocation34_spill] sm:$0xff] %v11098_v12 }
 0x3d5   :  { %v11100_v33 = vpop.f32.mrb[40].mxu1 }
 0x3d6   :  { %11609 = vst [vmem:[#allocation35_spill] sm:$0xff] %v11100_v33  ;;  %v11102_v20 = vpop.f32.mrb[41].mxu1 }
 0x3d7   :  { %11610 = vst [vmem:[#allocation36_spill] sm:$0xff] %v11102_v20  ;;  %v11104_v22 = vpop.f32.mrb[42].mxu1 }
 0x3d8   :  { %11611 = vst [vmem:[#allocation37_spill] sm:$0xff] %v11104_v22  ;;  %v11106_v37 = vpop.f32.mrb[43].mxu1 }
 0x3d9   :  { %11612 = vst [vmem:[#allocation38_spill] sm:$0xff] %v11106_v37 }
 0x3dd   :  { %v11108_v26 = vpop.f32.mrb[44].mxu1 }
 0x3de   :  { %11613 = vst [vmem:[#allocation39_spill] sm:$0xff] %v11108_v26  ;;  %v11110_v21 = vpop.f32.mrb[45].mxu1 }
 0x3df   :  { %11614 = vst [vmem:[#allocation40_spill] sm:$0xff] %v11110_v21  ;;  %v11112_v30 = vpop.f32.mrb[46].mxu1 }
 0x3e0   :  { %11615 = vst [vmem:[#allocation41_spill] sm:$0xff] %v11112_v30  ;;  %v11114_v18 = vpop.f32.mrb[47].mxu1 }
 0x3e1   :  { %11616 = vst [vmem:[#allocation42_spill] sm:$0xff] %v11114_v18 }
 0x3e5   :  { %v11116_v31 = vpop.f32.mrb[48].mxu1 }
 0x3e6   :  { %11617 = vst [vmem:[#allocation43_spill] sm:$0xff] %v11116_v31  ;;  %v11118_v32 = vpop.f32.mrb[49].mxu1 }
 0x3e7   :  { %11618 = vst [vmem:[#allocation44_spill] sm:$0xff] %v11118_v32  ;;  %v11120_v29 = vpop.f32.mrb[50].mxu1 }
 0x3e8   :  { %11619 = vst [vmem:[#allocation45_spill] sm:$0xff] %v11120_v29  ;;  %v11122_v57 = vpop.f32.mrb[51].mxu1 }
 0x3e9   :  { %11620 = vst [vmem:[#allocation46_spill] sm:$0xff] %v11122_v57 }
 0x3ed   :  { %v11124_v41 = vpop.f32.mrb[52].mxu1 }
 0x3ee   :  { %11621 = vst [vmem:[#allocation47_spill] sm:$0xff] %v11124_v41  ;;  %v11126_v25 = vpop.f32.mrb[53].mxu1 }
 0x3ef   :  { %11622 = vst [vmem:[#allocation48_spill] sm:$0xff] %v11126_v25  ;;  %v11128_v38 = vpop.f32.mrb[54].mxu1 }
 0x3f0   :  { %11623 = vst [vmem:[#allocation49_spill] sm:$0xff] %v11128_v38  ;;  %v11130_v46 = vpop.f32.mrb[55].mxu1 }
 0x3f1   :  { %11624 = vst [vmem:[#allocation50_spill] sm:$0xff] %v11130_v46 }
 0x3f5   :  { %v11132_v47 = vpop.f32.mrb[56].mxu1 }
 0x3f6   :  { %11625 = vst [vmem:[#allocation51_spill] sm:$0xff] %v11132_v47  ;;  %v11134_v0 = vpop.f32.mrb[57].mxu1 }
 0x3f7   :  { %11626 = vst [vmem:[#allocation52_spill] sm:$0xff] %v11134_v0  ;;  %v11136_v60 = vpop.f32.mrb[58].mxu1 }
 0x3f8   :  { %11627 = vst [vmem:[#allocation53_spill] sm:$0xff] %v11136_v60  ;;  %v11138_v62 = vpop.f32.mrb[59].mxu1 }
 0x3f9   :  { %11628 = vst [vmem:[#allocation54_spill] sm:$0xff] %v11138_v62 }
 0x3fd   :  { %v11140_v54 = vpop.f32.mrb[60].mxu1 }
 0x3fe   :  { %11629 = vst [vmem:[#allocation55_spill] sm:$0xff] %v11140_v54  ;;  %v11142_v61 = vpop.f32.mrb[61].mxu1 }
 0x3ff   :  { %11630 = vst [vmem:[#allocation56_spill] sm:$0xff] %v11142_v61  ;;  %v11144_v57 = vpop.f32.mrb[62].mxu1 }
 0x400   :  { %11631 = vst [vmem:[#allocation57_spill] sm:$0xff] %v11144_v57  ;;  %v11146_v41 = vpop.f32.mrb[63].mxu1 }
 0x401   :  { %11632 = vst [vmem:[#allocation58_spill] sm:$0xff] %v11146_v41 }
 0x402   :  { %10303 = dma.done.wait [#allocation4 + $0x2], 6144 }
 0x403   :  { %10304 = vsyncadd [#allocation4 + $0x2], 4294961152  ;;  %v9958_v38 = vld [vmem:[#allocation5 + $0x604] ss:$8 sps:$4 sm:$0xff]   ;;  %v9960_v46 = vld [vmem:[#allocation5 + $0x600] ss:$8 sps:$4 sm:$0xff]  }
 0x404   :  { %5553 = vmatprep.subr.bf16.mxu0 %v9958_v38  ;;  %v9961_v47 = vld [vmem:[#allocation5 + $0x614] ss:$8 sps:$4 sm:$0xff]   ;;  %v9963_v0 = vld [vmem:[#allocation5 + $0x610] ss:$8 sps:$4 sm:$0xff]   ;;  %v9964_v60 = vld [vmem:[#allocation5 + $0x624] ss:$8 sps:$4 sm:$0xff]  }
 0x405   :  { %5554 = vmatpush1.bf16.msra.mxu0 %v9960_v46  ;;  %v9966_v62 = vld [vmem:[#allocation5 + $0x620] ss:$8 sps:$4 sm:$0xff]   ;;  %v9967_v54 = vld [vmem:[#allocation5 + $0x634] ss:$8 sps:$4 sm:$0xff]   ;;  %v9969_v61 = vld [vmem:[#allocation5 + $0x630] ss:$8 sps:$4 sm:$0xff]  }
 0x406   :  { %5555 = vmatprep.subr.bf16.mxu0 %v9961_v47  ;;  %v9970_v57 = vld [vmem:[#allocation5 + $0x644] ss:$8 sps:$4 sm:$0xff]   ;;  %v9972_v41 = vld [vmem:[#allocation5 + $0x640] ss:$8 sps:$4 sm:$0xff]   ;;  %v9973_v25 = vld [vmem:[#allocation5 + $0x654] ss:$8 sps:$4 sm:$0xff]  }
 0x407   :  { %v9975_v29 = vld [vmem:[#allocation5 + $0x650] ss:$8 sps:$4 sm:$0xff]   ;;  %v9976_v38 = vld [vmem:[#allocation5 + $0x664] ss:$8 sps:$4 sm:$0xff]   ;;  %v9990_v31 = vld [vmem:[#allocation5 + $0x6a0] ss:$8 sps:$4 sm:$0xff]  }
 0x408   :  { %v5168_v46 = vld [vmem:[#allocation2 + $0x300] sm:$0xff]  ;;  %v11148_v32 = vld [vmem:[#allocation2 + $0x308] sm:$0xff]  ;;  %v10003_v18 = vld [vmem:[#allocation5 + $0x6f4] ss:$8 sps:$4 sm:$0xff]   ;;  %s10318_s0 = smov [#allocation11]  }
 0x409   :  { %5556 = vmatpush1.bf16.msra.mxu0 %v9963_v0  ;;  %v8759_v47 = vcombine.high %v5168_v46, %v11148_v32  ;;  %v9978_v0 = vld [vmem:[#allocation5 + $0x660] ss:$8 sps:$4 sm:$0xff]   ;;  %v6036_v11 = vrot.slane %v11148_v32, 5  ;;  %s8275_s26 = sshll.u32 %s10318_s0, 4  ;;  %s8276_s26 = int_to_ptr.vmem [resolvable:$true] %s8275_s26 }
 0x40a   :  { %5557 = vmatprep.subr.bf16.mxu0 %v9964_v60  ;;  %v9979_v60 = vld [vmem:[#allocation5 + $0x674] ss:$8 sps:$4 sm:$0xff]   ;;  %v5938_v8 = vld [vmem:[#allocation2 + $0x300] sm:$0xee]  ;;  %v5943_v52 = vld [vmem:[#allocation2 + $0x328] sm:$0x11]  ;;  %p10278_p3 = scmp.lt.s32.totalorder %s8276_s26, %s8276_s26 }
 0x40b   :  { %5585 = vmatprep.mubr.bf16.mxu0 %v8759_v47  ;;  %v9994_v47 = vld [vmem:[#allocation5 + $0x6c4] ss:$8 sps:$4 sm:$0xff]   ;;  %v6038_v4 = vrot.slane %v6036_v11, 4  ;;  %s10273_s3 = scalar_lea.vmem %s8276_s26, 4096 }
 0x40c   :  { %p10274_p2 = scmp.ne.s32.totalorder %s8276_s26, %s10273_s3  ;;  %p10279_p4 = scmp.lt.s32.totalorder %s10273_s3, %s10273_s3 }
 0x40d   :  { %5558 = vmatpush1.bf16.msra.mxu0 %v9966_v62  ;;  %v9981_v62 = vld [vmem:[#allocation5 + $0x670] ss:$8 sps:$4 sm:$0xff]  }
 0x40e   :  { %5559 = vmatprep.subr.bf16.mxu0 %v9967_v54  ;;  %v9982_v54 = vld [vmem:[#allocation5 + $0x684] ss:$8 sps:$4 sm:$0xff]   ;;  %p10280_p5 = por %p10279_p4, %p10278_p3 }
 0x410   :  { %p10281_p6 = pnand %p10280_p5, %p10274_p2 }
 0x411   :  { %5560 = vmatpush1.bf16.msra.mxu0 %v9969_v61  ;;  %v9988_v61 = vld [vmem:[#allocation5 + $0x6a4] ss:$8 sps:$4 sm:$0xff]  }
 0x412   :  { %5561 = vmatprep.subr.bf16.mxu0 %v9970_v57  ;;  %v9984_v57 = vld [vmem:[#allocation5 + $0x680] ss:$8 sps:$4 sm:$0xff]  }
 0x415   :  { %5562 = vmatpush1.bf16.msra.mxu0 %v9972_v41  ;;  %v9985_v41 = vld [vmem:[#allocation5 + $0x694] ss:$8 sps:$4 sm:$0xff]  }
 0x416   :  { %5563 = vmatprep.subr.bf16.mxu0 %v9973_v25  ;;  %v9987_v25 = vld [vmem:[#allocation5 + $0x690] ss:$8 sps:$4 sm:$0xff]  }
 0x419   :  { %5564 = vmatpush1.bf16.msra.mxu0 %v9975_v29  ;;  %v9991_v29 = vld [vmem:[#allocation5 + $0x6b4] ss:$8 sps:$4 sm:$0xff]  }
 0x41a   :  { %5565 = vmatprep.subr.bf16.mxu0 %v9976_v38  ;;  %v9993_v38 = vld [vmem:[#allocation5 + $0x6b0] ss:$8 sps:$4 sm:$0xff]  }
 0x41d   :  { %5566 = vmatpush1.bf16.msra.mxu0 %v9978_v0  ;;  %v9996_v0 = vld [vmem:[#allocation5 + $0x6c0] ss:$8 sps:$4 sm:$0xff]  }
 0x41e   :  { %5567 = vmatprep.subr.bf16.mxu0 %v9979_v60  ;;  %v9997_v60 = vld [vmem:[#allocation5 + $0x6d4] ss:$8 sps:$4 sm:$0xff]  }
 0x421   :  { %5568 = vmatpush1.bf16.msra.mxu0 %v9981_v62  ;;  %v9999_v62 = vld [vmem:[#allocation5 + $0x6d0] ss:$8 sps:$4 sm:$0xff]  }
 0x422   :  { %5569 = vmatprep.subr.bf16.mxu0 %v9982_v54  ;;  %v10000_v54 = vld [vmem:[#allocation5 + $0x6e4] ss:$8 sps:$4 sm:$0xff]  }
 0x425   :  { %5570 = vmatpush1.bf16.msra.mxu0 %v9984_v57  ;;  %v10002_v57 = vld [vmem:[#allocation5 + $0x6e0] ss:$8 sps:$4 sm:$0xff]  }
 0x426   :  { %5571 = vmatprep.subr.bf16.mxu0 %v9985_v41  ;;  %v10005_v41 = vld [vmem:[#allocation5 + $0x6f0] ss:$8 sps:$4 sm:$0xff]  }
 0x429   :  { %5572 = vmatpush1.bf16.msra.mxu0 %v9987_v25  ;;  %v10010_v25 = vld [vmem:[#allocation5 + $0x704] ss:$8 sps:$4 sm:$0xff]  }
 0x42a   :  { %5573 = vmatprep.subr.bf16.mxu0 %v9988_v61  ;;  %v5170_v61 = vld [vmem:[#allocation2 + $0x318] sm:$0xff] }
 0x42d   :  { %5574 = vmatpush1.bf16.msra.mxu0 %v9990_v31  ;;  %v11151_v31 = vld [vmem:[#allocation2 + $0x320] sm:$0xff] }
 0x42e   :  { %5575 = vmatprep.subr.bf16.mxu0 %v9991_v29  ;;  %v10008_v29 = vld [vmem:[#allocation5 + $0x700] ss:$8 sps:$4 sm:$0xff]   ;;  %v8760_v30 = vcombine.low %v5170_v61, %v11151_v31  ;;  %v6957_v13 = vrot.slane %v11151_v31, 6 }
 0x431   :  { %5576 = vmatpush1.bf16.msra.mxu0 %v9993_v38  ;;  %v8758_v38 = vcombine.low %v5168_v46, %v11148_v32  ;;  %v10018_v46 = vld [vmem:[#allocation5 + $0x720] ss:$8 sps:$4 sm:$0xff]   ;;  %v5941_v32 = vld [vmem:[#allocation2 + $0x318] sm:$0xee] }
 0x432   :  { %5577 = vmatprep.subr.bf16.mxu0 %v9994_v47  ;;  %v8761_v47 = vcombine.high %v5170_v61, %v11151_v31  ;;  %v10028_v61 = vld [vmem:[#allocation5 + $0x740] ss:$8 sps:$4 sm:$0xff]   ;;  %v8823_v2 = vrot.slane %v5941_v32, 9 }
 0x435   :  { %5578 = vmatpush1.bf16.msra.mxu0 %v9996_v0  ;;  %v10015_v0 = vld [vmem:[#allocation5 + $0x714] ss:$8 sps:$4 sm:$0xff]  }
 0x436   :  { %5579 = vmatprep.subr.bf16.mxu0 %v9997_v60  ;;  %v10013_v60 = vld [vmem:[#allocation5 + $0x710] ss:$8 sps:$4 sm:$0xff]  }
 0x439   :  { %5580 = vmatpush1.bf16.msra.mxu0 %v9999_v62  ;;  %v5172_v62 = vld [vmem:[#allocation2 + $0x330] sm:$0xff] }
 0x43a   :  { %5581 = vmatprep.subr.bf16.mxu0 %v10000_v54  ;;  %v11155_v54 = vld [vmem:[#allocation2 + $0x338] sm:$0xff] }
 0x43d   :  { %5582 = vmatpush1.bf16.msra.mxu0 %v10002_v57  ;;  %v10020_v57 = vld [vmem:[#allocation5 + $0x724] ss:$8 sps:$4 sm:$0xff]  }
 0x43e   :  { %5583 = vmatprep.subr.bf16.mxu0 %v10003_v18  ;;  %v8763_v18 = vcombine.high %v5172_v62, %v11155_v54 }
 0x441   :  { %5584 = vmatpush1.bf16.msra.mxu0 %v10005_v41  ;;  %v10025_v41 = vld [vmem:[#allocation5 + $0x734] ss:$8 sps:$4 sm:$0xff]  }
 0x442   :  { %6467 = vmatprep.subr.bf16.mxu0 %v10010_v25  ;;  %v10023_v25 = vld [vmem:[#allocation5 + $0x730] ss:$8 sps:$4 sm:$0xff]  }
 0x444   :  { %5586 = vmatmul.mubr.bf16.vlgmr.msra.gmra.mrb[0].mxu0 %v8758_v38  ;;  %v11159_v38 = vld [vmem:[#allocation2 + $0x350] sm:$0xff] }
 0x445   :  { %6468 = vmatpush1.bf16.msra.mxu0 %v10008_v29  ;;  %5595 = vmatprep.mubr.bf16.mxu0 %v8761_v47  ;;  %v5174_v29 = vld [vmem:[#allocation2 + $0x348] sm:$0xff] }
 0x446   :  { %6469 = vmatprep.subr.bf16.mxu0 %v10015_v0  ;;  %v10030_v47 = vld [vmem:[#allocation5 + $0x744] ss:$8 sps:$4 sm:$0xff]   ;;  %v8762_v0 = vcombine.low %v5172_v62, %v11155_v54  ;;  %v8765_v21 = vcombine.high %v5174_v29, %v11159_v38  ;;  %v10038_v62 = vld [vmem:[#allocation5 + $0x760] ss:$8 sps:$4 sm:$0xff]  }
 0x449   :  { %6470 = vmatpush1.bf16.msra.mxu0 %v10013_v60  ;;  %v10035_v60 = vld [vmem:[#allocation5 + $0x754] ss:$8 sps:$4 sm:$0xff]  }
 0x44a   :  { %6471 = vmatprep.subr.bf16.mxu0 %v10020_v57  ;;  %v5176_v57 = vld [vmem:[#allocation2 + $0x360] sm:$0xff] }
 0x44c   :  { %5596 = vmatmul.mubr.bf16.gmra.mrb[4].mxu0 %v8760_v30  ;;  %v10033_v30 = vld [vmem:[#allocation5 + $0x750] ss:$8 sps:$4 sm:$0xff]  }
 0x44d   :  { %5605 = vmatprep.mubr.bf16.mxu0 %v8763_v18  ;;  %6472 = vmatpush1.bf16.msra.mxu0 %v10018_v46  ;;  %v11163_v18 = vld [vmem:[#allocation2 + $0x368] sm:$0xff] }
 0x44e   :  { %6473 = vmatprep.subr.bf16.mxu0 %v10025_v41  ;;  %v10040_v46 = vld [vmem:[#allocation5 + $0x764] ss:$8 sps:$4 sm:$0xff]   ;;  %v8764_v41 = vcombine.low %v5174_v29, %v11159_v38  ;;  %v8767_v26 = vcombine.high %v5176_v57, %v11163_v18  ;;  %v10048_v29 = vld [vmem:[#allocation5 + $0x780] ss:$8 sps:$4 sm:$0xff]  }
 0x451   :  { %6474 = vmatpush1.bf16.msra.mxu0 %v10023_v25  ;;  %v10045_v25 = vld [vmem:[#allocation5 + $0x774] ss:$8 sps:$4 sm:$0xff]  }
 0x452   :  { %6475 = vmatprep.subr.bf16.mxu0 %v10030_v47  ;;  %v10043_v47 = vld [vmem:[#allocation5 + $0x770] ss:$8 sps:$4 sm:$0xff]  }
 0x454   :  { %5606 = vmatmul.mubr.bf16.gmra.mrb[8].mxu0 %v8762_v0  ;;  %v11167_v0 = vld [vmem:[#allocation2 + $0x380] sm:$0xff] }
 0x455   :  { %5615 = vmatprep.mubr.bf16.mxu0 %v8765_v21  ;;  %6476 = vmatpush1.bf16.msra.mxu0 %v10028_v61  ;;  %v5178_v21 = vld [vmem:[#allocation2 + $0x378] sm:$0xff]  ;;  %v10050_v61 = vld [vmem:[#allocation5 + $0x784] ss:$8 sps:$4 sm:$0xff]  }
 0x456   :  { %6477 = vmatprep.subr.bf16.mxu0 %v10035_v60  ;;  %v8766_v60 = vcombine.low %v5176_v57, %v11163_v18  ;;  %v8769_v37 = vcombine.high %v5178_v21, %v11167_v0  ;;  %v10058_v57 = vld [vmem:[#allocation5 + $0x7a0] ss:$8 sps:$4 sm:$0xff]  }
 0x459   :  { %6478 = vmatpush1.bf16.msra.mxu0 %v10033_v30  ;;  %v10055_v30 = vld [vmem:[#allocation5 + $0x794] ss:$8 sps:$4 sm:$0xff]  }
 0x45a   :  { %6479 = vmatprep.subr.bf16.mxu0 %v10040_v46  ;;  %v10053_v46 = vld [vmem:[#allocation5 + $0x790] ss:$8 sps:$4 sm:$0xff]  }
 0x45c   :  { %5616 = vmatmul.mubr.bf16.gmra.mrb[12].mxu0 %v8764_v41  ;;  %v11171_v41 = vld [vmem:[#allocation2 + $0x398] sm:$0xff] }
 0x45d   :  { %5625 = vmatprep.mubr.bf16.mxu0 %v8767_v26  ;;  %6480 = vmatpush1.bf16.msra.mxu0 %v10038_v62  ;;  %v5180_v26 = vld [vmem:[#allocation2 + $0x390] sm:$0xff]  ;;  %v10060_v62 = vld [vmem:[#allocation5 + $0x7a4] ss:$8 sps:$4 sm:$0xff]  }
 0x45e   :  { %6481 = vmatprep.subr.bf16.mxu0 %v10045_v25  ;;  %v8768_v25 = vcombine.low %v5178_v21, %v11167_v0  ;;  %v8771_v22 = vcombine.high %v5180_v26, %v11171_v41  ;;  %v10068_v21 = vld [vmem:[#allocation5 + $0x7c0] ss:$8 sps:$4 sm:$0xff]  }
 0x461   :  { %6482 = vmatpush1.bf16.msra.mxu0 %v10043_v47  ;;  %v10065_v47 = vld [vmem:[#allocation5 + $0x7b4] ss:$8 sps:$4 sm:$0xff]  }
 0x462   :  { %6483 = vmatprep.subr.bf16.mxu0 %v10050_v61  ;;  %v10063_v61 = vld [vmem:[#allocation5 + $0x7b0] ss:$8 sps:$4 sm:$0xff]  }
 0x464   :  { %5626 = vmatmul.mubr.bf16.gmra.mrb[16].mxu0 %v8766_v60  ;;  %v11175_v60 = vld [vmem:[#allocation2 + $0x3b0] sm:$0xff] }
 0x465   :  { %5635 = vmatprep.mubr.bf16.mxu0 %v8769_v37  ;;  %6484 = vmatpush1.bf16.msra.mxu0 %v10048_v29  ;;  %v5182_v37 = vld [vmem:[#allocation2 + $0x3a8] sm:$0xff] }
 0x466   :  { %6485 = vmatprep.subr.bf16.mxu0 %v10055_v30  ;;  %v10070_v29 = vld [vmem:[#allocation5 + $0x7c4] ss:$8 sps:$4 sm:$0xff]   ;;  %v8770_v30 = vcombine.low %v5180_v26, %v11171_v41  ;;  %v8773_v20 = vcombine.high %v5182_v37, %v11175_v60  ;;  %v10078_v26 = vld [vmem:[#allocation5 + $0x7e0] ss:$8 sps:$4 sm:$0xff]  }
 0x469   :  { %6486 = vmatpush1.bf16.msra.mxu0 %v10053_v46  ;;  %v10075_v46 = vld [vmem:[#allocation5 + $0x7d4] ss:$8 sps:$4 sm:$0xff]  }
 0x46a   :  { %6487 = vmatprep.subr.bf16.mxu0 %v10060_v62  ;;  %v10073_v62 = vld [vmem:[#allocation5 + $0x7d0] ss:$8 sps:$4 sm:$0xff]  }
 0x46c   :  { %5636 = vmatmul.mubr.bf16.gmra.mrb[20].mxu0 %v8768_v25  ;;  %v11179_v25 = vld [vmem:[#allocation2 + $0x3c8] sm:$0xff] }
 0x46d   :  { %5645 = vmatprep.mubr.bf16.mxu0 %v8771_v22  ;;  %6488 = vmatpush1.bf16.msra.mxu0 %v10058_v57  ;;  %v5184_v22 = vld [vmem:[#allocation2 + $0x3c0] sm:$0xff] }
 0x46e   :  { %6489 = vmatprep.subr.bf16.mxu0 %v10065_v47  ;;  %v10080_v57 = vld [vmem:[#allocation5 + $0x7e4] ss:$8 sps:$4 sm:$0xff]   ;;  %v8772_v47 = vcombine.low %v5182_v37, %v11175_v60  ;;  %v8775_v33 = vcombine.high %v5184_v22, %v11179_v25  ;;  %v5188_v37 = vld [vmem:[#allocation2 + $0x3f0] sm:$0xff] }
 0x471   :  { %6490 = vmatpush1.bf16.msra.mxu0 %v10063_v61  ;;  %v10085_v61 = vld [vmem:[#allocation5 + $0x7f4] ss:$8 sps:$4 sm:$0xff]  }
 0x472   :  { %6491 = vmatprep.subr.bf16.mxu0 %v10070_v29  ;;  %v10083_v29 = vld [vmem:[#allocation5 + $0x7f0] ss:$8 sps:$4 sm:$0xff]  }
 0x474   :  { %5646 = vmatmul.mubr.bf16.gmra.mrb[24].mxu0 %v8770_v30  ;;  %v11183_v30 = vld [vmem:[#allocation2 + $0x3e0] sm:$0xff] }
 0x475   :  { %5655 = vmatprep.mubr.bf16.mxu0 %v8773_v20  ;;  %6492 = vmatpush1.bf16.msra.mxu0 %v10068_v21  ;;  %v5186_v20 = vld [vmem:[#allocation2 + $0x3d8] sm:$0xff]  ;;  %v10088_v21 = vld [vmem:[#allocation5 + $0x804] ss:$8 sps:$4 sm:$0xff]  }
 0x476   :  { %6493 = vmatprep.subr.bf16.mxu0 %v10075_v46  ;;  %v8774_v46 = vcombine.low %v5184_v22, %v11179_v25  ;;  %v8777_v12 = vcombine.high %v5186_v20, %v11183_v30 }
 0x479   :  { %6494 = vmatpush1.bf16.msra.mxu0 %v10073_v62  ;;  %v11187_v62 = vld [vmem:[#allocation2 + $0x3f8] sm:$0xff] }
 0x47a   :  { %6495 = vmatprep.subr.bf16.mxu0 %v10080_v57  ;;  %v8779_v57 = vcombine.high %v5188_v37, %v11187_v62  ;;  %v8778_v22 = vcombine.low %v5188_v37, %v11187_v62 }
 0x47c   :  { %5656 = vmatmul.mubr.bf16.gmra.mrb[28].mxu0 %v8772_v47  ;;  %v5190_v47 = vld [vmem:[#allocation2 + $0x408] sm:$0xff] }
 0x47d   :  { %5665 = vmatprep.mubr.bf16.mxu0 %v8775_v33  ;;  %6496 = vmatpush1.bf16.msra.mxu0 %v10078_v26  ;;  %v8776_v33 = vcombine.low %v5186_v20, %v11183_v30  ;;  %v11191_v26 = vld [vmem:[#allocation2 + $0x410] sm:$0xff] }
 0x47e   :  { %6497 = vmatprep.subr.bf16.mxu0 %v10085_v61  ;;  %v8781_v61 = vcombine.high %v5190_v47, %v11191_v26 }
 0x481   :  { %6498 = vmatpush1.bf16.msra.mxu0 %v10083_v29  ;;  %v5192_v29 = vld [vmem:[#allocation2 + $0x420] sm:$0xff] }
 0x482   :  { %7381 = vmatprep.subr.bf16.mxu0 %v10088_v21  ;;  %v8780_v21 = vcombine.low %v5190_v47, %v11191_v26 }
 0x484   :  { %5666 = vmatmul.mubr.bf16.gmra.mrb[32].mxu0 %v8774_v46  ;;  %v5194_v46 = vld [vmem:[#allocation2 + $0x438] sm:$0xff] }
 0x485   :  { %5675 = vmatprep.mubr.bf16.mxu0 %v8777_v12  ;;  %v11195_v12 = vld [vmem:[#allocation2 + $0x428] sm:$0xff] }
 0x486   :  { %v8783_v20 = vcombine.high %v5192_v29, %v11195_v12 }
 0x48c   :  { %5676 = vmatmul.mubr.bf16.gmra.mrb[36].mxu0 %v8776_v33  ;;  %v11199_v33 = vld [vmem:[#allocation2 + $0x440] sm:$0xff] }
 0x48d   :  { %5685 = vmatprep.mubr.bf16.mxu0 %v8779_v57  ;;  %v8782_v57 = vcombine.low %v5192_v29, %v11195_v12  ;;  %v8785_v37 = vcombine.high %v5194_v46, %v11199_v33  ;;  %v8784_v5 = vcombine.low %v5194_v46, %v11199_v33  ;;  %v5940_v29 = vld [vmem:[#allocation2 + $0x310] sm:$0x11] }
 0x48e   :  { %v6039_v48 = vrot.slane %v5940_v29, 5  ;;  %v5946_v29 = vld [vmem:[#allocation2 + $0x340] sm:$0x11] }
 0x48f   :  { %v6053_v34 = vrot.slane %v5946_v29, 5 }
 0x490   :  { %v6040_v46 = vsel %vm10522_vm2, %v6038_v4, %v6039_v48  ;;  %v6050_v48 = vrot.slane %v11155_v54, 5  ;;  %v5944_v4 = vld [vmem:[#allocation2 + $0x330] sm:$0xee] }
 0x491   :  { %v8824_v39 = vrot.slane %v5944_v4, 9  ;;  %v10092_v4 = vld [vmem:[#allocation5 + $0x820] ss:$8 sps:$4 sm:$0xff]  }
 0x492   :  { %v6052_v32 = vrot.slane %v6050_v48, 4 }
 0x494   :  { %5686 = vmatmul.mubr.bf16.gmra.mrb[40].mxu0 %v8778_v22  ;;  %v5196_v22 = vld [vmem:[#allocation2 + $0x450] sm:$0xff] }
 0x495   :  { %5695 = vmatprep.mubr.bf16.mxu0 %v8781_v61  ;;  %v11203_v61 = vld [vmem:[#allocation2 + $0x458] sm:$0xff] }
 0x496   :  { %v8787_v47 = vcombine.high %v5196_v22, %v11203_v61  ;;  %v8786_v40 = vcombine.low %v5196_v22, %v11203_v61 }
 0x49c   :  { %5696 = vmatmul.mubr.bf16.gmra.mrb[44].mxu0 %v8780_v21  ;;  %v5198_v21 = vld [vmem:[#allocation2 + $0x468] sm:$0xff] }
 0x49d   :  { %5705 = vmatprep.mubr.bf16.mxu0 %v8783_v20  ;;  %v11207_v20 = vld [vmem:[#allocation2 + $0x470] sm:$0xff] }
 0x49e   :  { %v8788_v3 = vcombine.low %v5198_v21, %v11207_v20 }
 0x4a4   :  { %5706 = vmatmul.mubr.bf16.gmra.mrb[48].mxu0 %v8782_v57  ;;  %v8789_v57 = vcombine.high %v5198_v21, %v11207_v20  ;;  %v10091_v21 = vld [vmem:[#allocation5 + $0x814] ss:$8 sps:$4 sm:$0xff]  }
 0x4a5   :  { %5715 = vmatprep.mubr.bf16.mxu0 %v8785_v37  ;;  %v8822_v37 = vrot.slane %v5938_v8, 9  ;;  %v6046_v8 = vrot.slane %v5943_v52, 5  ;;  %v10094_v52 = vld [vmem:[#allocation5 + $0x824] ss:$8 sps:$4 sm:$0xff]  }
 0x4ac   :  { %5716 = vmatmul.mubr.bf16.gmra.mrb[52].mxu0 %v8784_v5  ;;  %v6037_v5 = vsel %vm10522_vm2, %v8822_v37, %v6036_v11  ;;  %v10086_v37 = vld [vmem:[#allocation5 + $0x800] ss:$8 sps:$4 sm:$0xff]  }
 0x4ad   :  { %5725 = vmatprep.mubr.bf16.mxu0 %v8787_v47  ;;  %v6043_v47 = vrot.slane %v11151_v31, 5  ;;  %v8839_v22 = vcombine.high %v6037_v5, %v6040_v46 }
 0x4af   :  { %v6045_v43 = vrot.slane %v6043_v47, 4 }
 0x4b1   :  { %v6047_v11 = vsel %vm10522_vm2, %v6045_v43, %v6046_v8  ;;  %v6054_v43 = vsel %vm10522_vm2, %v6052_v32, %v6053_v34  ;;  %v5952_v32 = vld [vmem:[#allocation2 + $0x370] sm:$0x11] }
 0x4b4   :  { %5726 = vmatmul.mubr.bf16.gmra.mrb[56].mxu0 %v8786_v40  ;;  %v6044_v40 = vsel %vm10522_vm2, %v8823_v2, %v6043_v47  ;;  %v6051_v2 = vsel %vm10522_vm2, %v8824_v39, %v6050_v48  ;;  %v5949_v47 = vld [vmem:[#allocation2 + $0x358] sm:$0x11] }
 0x4b5   :  { %5735 = vmatprep.mubr.bf16.mxu0 %v8789_v57  ;;  %v8838_v57 = vcombine.low %v6037_v5, %v6040_v46  ;;  %v8841_v50 = vcombine.high %v6044_v40, %v6047_v11  ;;  %v6057_v5 = vrot.slane %v11159_v38, 5  ;;  %v5947_v46 = vld [vmem:[#allocation2 + $0x348] sm:$0xee]  ;;  %v8843_v8 = vcombine.high %v6051_v2, %v6054_v43  ;;  %v10095_v39 = vld [vmem:[#allocation5 + $0x830] ss:$8 sps:$4 sm:$0xff]  }
 0x4b6   :  { %v8825_v29 = vrot.slane %v5947_v46, 9  ;;  %v10098_v46 = vld [vmem:[#allocation5 + $0x840] ss:$8 sps:$4 sm:$0xff]  }
 0x4b8   :  { %v6058_v34 = vsel %vm10522_vm2, %v8825_v29, %v6057_v5 }
 0x4bc   :  { %5736 = vmatmul.mubr.bf16.gmra.mrb[60].mxu0 %v8788_v3  ;;  %v10089_v3 = vld [vmem:[#allocation5 + $0x810] ss:$8 sps:$4 sm:$0xff]  }
 0x4bd   :  { %6499 = vmatprep.mubr.bf16.mxu0 %v8839_v22  ;;  %v8840_v22 = vcombine.low %v6044_v40, %v6047_v11  ;;  %v6064_v40 = vrot.slane %v11163_v18, 5  ;;  %v10100_v11 = vld [vmem:[#allocation5 + $0x844] ss:$8 sps:$4 sm:$0xff]  }
 0x4c4   :  { %6500 = vmatmul.mubr.bf16.vlgmr.msra.gmra.mrb[0].mxu0 %v8838_v57  ;;  %v6060_v57 = vrot.slane %v5949_v47, 5 }
 0x4c5   :  { %7382 = vmatpush1.bf16.msra.mxu0 %v10086_v37  ;;  %6509 = vmatprep.mubr.bf16.mxu0 %v8841_v50  ;;  %v6059_v50 = vrot.slane %v6057_v5, 4  ;;  %v10097_v37 = vld [vmem:[#allocation5 + $0x834] ss:$8 sps:$4 sm:$0xff]   ;;  %v10101_v5 = vld [vmem:[#allocation5 + $0x850] ss:$8 sps:$4 sm:$0xff]  }
 0x4c6   :  { %7383 = vmatprep.subr.bf16.mxu0 %v10091_v21  ;;  %v5950_v21 = vld [vmem:[#allocation2 + $0x360] sm:$0xee] }
 0x4c7   :  { %v6061_v48 = vsel %vm10522_vm2, %v6059_v50, %v6060_v57  ;;  %v8826_v47 = vrot.slane %v5950_v21, 9  ;;  %v5953_v57 = vld [vmem:[#allocation2 + $0x378] sm:$0xee] }
 0x4c9   :  { %7384 = vmatpush1.bf16.msra.mxu0 %v10089_v3  ;;  %v8842_v3 = vcombine.low %v6051_v2, %v6054_v43  ;;  %v6065_v29 = vsel %vm10522_vm2, %v8826_v47, %v6064_v40  ;;  %v6071_v2 = vrot.slane %v11167_v0, 5  ;;  %v10106_v43 = vld [vmem:[#allocation5 + $0x864] ss:$8 sps:$4 sm:$0xff]  }
 0x4ca   :  { %7385 = vmatprep.subr.bf16.mxu0 %v10094_v52  ;;  %v8845_v52 = vcombine.high %v6058_v34, %v6061_v48 }
 0x4cc   :  { %6510 = vmatmul.mubr.bf16.gmra.mrb[4].mxu0 %v8840_v22  ;;  %v6066_v22 = vrot.slane %v6064_v40, 4  ;;  %v10107_v40 = vld [vmem:[#allocation5 + $0x870] ss:$8 sps:$4 sm:$0xff]  }
 0x4cd   :  { %6519 = vmatprep.mubr.bf16.mxu0 %v8843_v8  ;;  %7386 = vmatpush1.bf16.msra.mxu0 %v10092_v4  ;;  %v6067_v8 = vrot.slane %v5952_v32, 5  ;;  %v10103_v4 = vld [vmem:[#allocation5 + $0x854] ss:$8 sps:$4 sm:$0xff]   ;;  %v8827_v32 = vrot.slane %v5953_v57, 9 }
 0x4ce   :  { %7387 = vmatprep.subr.bf16.mxu0 %v10097_v37  ;;  %v5955_v37 = vld [vmem:[#allocation2 + $0x388] sm:$0x11] }
 0x4cf   :  { %v6068_v50 = vsel %vm10522_vm2, %v6066_v22, %v6067_v8  ;;  %v6072_v47 = vsel %vm10522_vm2, %v8827_v32, %v6071_v2  ;;  %v5956_v8 = vld [vmem:[#allocation2 + $0x390] sm:$0xee] }
 0x4d0   :  { %v8847_v21 = vcombine.high %v6065_v29, %v6068_v50 }
 0x4d1   :  { %7388 = vmatpush1.bf16.msra.mxu0 %v10095_v39  ;;  %v8844_v39 = vcombine.low %v6058_v34, %v6061_v48  ;;  %v6078_v34 = vrot.slane %v11171_v41, 5  ;;  %v10112_v48 = vld [vmem:[#allocation5 + $0x884] ss:$8 sps:$4 sm:$0xff]  }
 0x4d2   :  { %7389 = vmatprep.subr.bf16.mxu0 %v10100_v11  ;;  %v10104_v11 = vld [vmem:[#allocation5 + $0x860] ss:$8 sps:$4 sm:$0xff]  }
 0x4d4   :  { %6520 = vmatmul.mubr.bf16.gmra.mrb[8].mxu0 %v8842_v3  ;;  %v6073_v3 = vrot.slane %v6071_v2, 4  ;;  %v10113_v2 = vld [vmem:[#allocation5 + $0x890] ss:$8 sps:$4 sm:$0xff]  }
 0x4d5   :  { %6529 = vmatprep.mubr.bf16.mxu0 %v8845_v52  ;;  %7390 = vmatpush1.bf16.msra.mxu0 %v10098_v46  ;;  %v6074_v52 = vrot.slane %v5955_v37, 5  ;;  %v10109_v46 = vld [vmem:[#allocation5 + $0x874] ss:$8 sps:$4 sm:$0xff]   ;;  %v8828_v37 = vrot.slane %v5956_v8, 9 }
 0x4d6   :  { %7391 = vmatprep.subr.bf16.mxu0 %v10103_v4  ;;  %v5958_v4 = vld [vmem:[#allocation2 + $0x3a0] sm:$0x11] }
 0x4d7   :  { %v6075_v22 = vsel %vm10522_vm2, %v6073_v3, %v6074_v52  ;;  %v6079_v32 = vsel %vm10522_vm2, %v8828_v37, %v6078_v34  ;;  %v5959_v52 = vld [vmem:[#allocation2 + $0x3a8] sm:$0xee] }
 0x4d8   :  { %v8849_v57 = vcombine.high %v6072_v47, %v6075_v22 }
 0x4d9   :  { %7392 = vmatpush1.bf16.msra.mxu0 %v10101_v5  ;;  %v8846_v5 = vcombine.low %v6065_v29, %v6068_v50  ;;  %v6085_v29 = vrot.slane %v11175_v60, 5  ;;  %v10118_v50 = vld [vmem:[#allocation5 + $0x8a4] ss:$8 sps:$4 sm:$0xff]  }
 0x4da   :  { %7393 = vmatprep.subr.bf16.mxu0 %v10106_v43  ;;  %v10110_v43 = vld [vmem:[#allocation5 + $0x880] ss:$8 sps:$4 sm:$0xff]  }
 0x4dc   :  { %6530 = vmatmul.mubr.bf16.gmra.mrb[12].mxu0 %v8844_v39  ;;  %v6080_v39 = vrot.slane %v6078_v34, 4  ;;  %v10119_v34 = vld [vmem:[#allocation5 + $0x8b0] ss:$8 sps:$4 sm:$0xff]  }
 0x4dd   :  { %6539 = vmatprep.mubr.bf16.mxu0 %v8847_v21  ;;  %7394 = vmatpush1.bf16.msra.mxu0 %v10104_v11  ;;  %v6081_v21 = vrot.slane %v5958_v4, 5  ;;  %v10115_v11 = vld [vmem:[#allocation5 + $0x894] ss:$8 sps:$4 sm:$0xff]   ;;  %v8829_v4 = vrot.slane %v5959_v52, 9 }
 0x4de   :  { %7395 = vmatprep.subr.bf16.mxu0 %v10109_v46  ;;  %v5961_v46 = vld [vmem:[#allocation2 + $0x3b8] sm:$0x11] }
 0x4df   :  { %v6082_v3 = vsel %vm10522_vm2, %v6080_v39, %v6081_v21  ;;  %v6086_v37 = vsel %vm10522_vm2, %v8829_v4, %v6085_v29  ;;  %v5962_v21 = vld [vmem:[#allocation2 + $0x3c0] sm:$0xee] }
 0x4e0   :  { %v8851_v8 = vcombine.high %v6079_v32, %v6082_v3 }
 0x4e1   :  { %7396 = vmatpush1.bf16.msra.mxu0 %v10107_v40  ;;  %v8848_v40 = vcombine.low %v6072_v47, %v6075_v22  ;;  %v6092_v47 = vrot.slane %v11179_v25, 5  ;;  %v10124_v22 = vld [vmem:[#allocation5 + $0x8c4] ss:$8 sps:$4 sm:$0xff]  }
 0x4e2   :  { %7397 = vmatprep.subr.bf16.mxu0 %v10112_v48  ;;  %v10116_v48 = vld [vmem:[#allocation5 + $0x8a0] ss:$8 sps:$4 sm:$0xff]  }
 0x4e4   :  { %6540 = vmatmul.mubr.bf16.gmra.mrb[16].mxu0 %v8846_v5  ;;  %v6087_v5 = vrot.slane %v6085_v29, 4  ;;  %v10125_v29 = vld [vmem:[#allocation5 + $0x8d0] ss:$8 sps:$4 sm:$0xff]  }
 0x4e5   :  { %6549 = vmatprep.mubr.bf16.mxu0 %v8849_v57  ;;  %7398 = vmatpush1.bf16.msra.mxu0 %v10110_v43  ;;  %v6088_v57 = vrot.slane %v5961_v46, 5  ;;  %v10121_v43 = vld [vmem:[#allocation5 + $0x8b4] ss:$8 sps:$4 sm:$0xff]   ;;  %v8830_v46 = vrot.slane %v5962_v21, 9 }
 0x4e6   :  { %7399 = vmatprep.subr.bf16.mxu0 %v10115_v11  ;;  %v5964_v11 = vld [vmem:[#allocation2 + $0x3d0] sm:$0x11] }
 0x4e7   :  { %v6089_v39 = vsel %vm10522_vm2, %v6087_v5, %v6088_v57  ;;  %v6093_v4 = vsel %vm10522_vm2, %v8830_v46, %v6092_v47  ;;  %v5965_v57 = vld [vmem:[#allocation2 + $0x3d8] sm:$0xee] }
 0x4e8   :  { %v8853_v52 = vcombine.high %v6086_v37, %v6089_v39 }
 0x4e9   :  { %7400 = vmatpush1.bf16.msra.mxu0 %v10113_v2  ;;  %v8850_v2 = vcombine.low %v6079_v32, %v6082_v3  ;;  %v6099_v32 = vrot.slane %v11183_v30, 5  ;;  %v10130_v3 = vld [vmem:[#allocation5 + $0x8e4] ss:$8 sps:$4 sm:$0xff]  }
 0x4ea   :  { %7401 = vmatprep.subr.bf16.mxu0 %v10118_v50  ;;  %v10122_v50 = vld [vmem:[#allocation5 + $0x8c0] ss:$8 sps:$4 sm:$0xff]  }
 0x4ec   :  { %6550 = vmatmul.mubr.bf16.gmra.mrb[20].mxu0 %v8848_v40  ;;  %v6094_v40 = vrot.slane %v6092_v47, 4  ;;  %v10131_v47 = vld [vmem:[#allocation5 + $0x8f0] ss:$8 sps:$4 sm:$0xff]  }
 0x4ed   :  { %6559 = vmatprep.mubr.bf16.mxu0 %v8851_v8  ;;  %7402 = vmatpush1.bf16.msra.mxu0 %v10116_v48  ;;  %v6095_v8 = vrot.slane %v5964_v11, 5  ;;  %v10127_v48 = vld [vmem:[#allocation5 + $0x8d4] ss:$8 sps:$4 sm:$0xff]   ;;  %v8831_v11 = vrot.slane %v5965_v57, 9 }
 0x4ee   :  { %7403 = vmatprep.subr.bf16.mxu0 %v10121_v43  ;;  %v5967_v43 = vld [vmem:[#allocation2 + $0x3e8] sm:$0x11] }
 0x4ef   :  { %v6096_v5 = vsel %vm10522_vm2, %v6094_v40, %v6095_v8  ;;  %v6100_v46 = vsel %vm10522_vm2, %v8831_v11, %v6099_v32  ;;  %v5970_v8 = vld [vmem:[#allocation2 + $0x400] sm:$0x11]  ;;  %v5973_v11 = vld [vmem:[#allocation2 + $0x418] sm:$0x11] }
 0x4f0   :  { %v8855_v21 = vcombine.high %v6093_v4, %v6096_v5 }
 0x4f1   :  { %7404 = vmatpush1.bf16.msra.mxu0 %v10119_v34  ;;  %v8852_v34 = vcombine.low %v6086_v37, %v6089_v39  ;;  %v6106_v37 = vrot.slane %v11187_v62, 5  ;;  %v5968_v39 = vld [vmem:[#allocation2 + $0x3f0] sm:$0xee] }
 0x4f2   :  { %7405 = vmatprep.subr.bf16.mxu0 %v10124_v22  ;;  %v10128_v22 = vld [vmem:[#allocation5 + $0x8e0] ss:$8 sps:$4 sm:$0xff]  }
 0x4f3   :  { %v6108_v57 = vrot.slane %v6106_v37, 4 }
 0x4f4   :  { %6560 = vmatmul.mubr.bf16.gmra.mrb[24].mxu0 %v8850_v2  ;;  %v6101_v2 = vrot.slane %v6099_v32, 4 }
 0x4f5   :  { %6569 = vmatprep.mubr.bf16.mxu0 %v8853_v52  ;;  %7406 = vmatpush1.bf16.msra.mxu0 %v10122_v50  ;;  %v6102_v52 = vrot.slane %v5967_v43, 5  ;;  %v10133_v50 = vld [vmem:[#allocation5 + $0x8f4] ss:$8 sps:$4 sm:$0xff]   ;;  %v6109_v43 = vrot.slane %v5970_v8, 5  ;;  %v5974_v8 = vld [vmem:[#allocation2 + $0x420] sm:$0xee] }
 0x4f6   :  { %7407 = vmatprep.subr.bf16.mxu0 %v10127_v48  ;;  %v8854_v48 = vcombine.low %v6093_v4, %v6096_v5 }
 0x4f7   :  { %v6103_v40 = vsel %vm10522_vm2, %v6101_v2, %v6102_v52  ;;  %v6110_v32 = vsel %vm10522_vm2, %v6108_v57, %v6109_v43  ;;  %v8834_v57 = vrot.slane %v5974_v8, 9  ;;  %v6134_v8 = vrot.slane %v11203_v61, 5 }
 0x4f8   :  { %v8856_v2 = vcombine.low %v6100_v46, %v6103_v40 }
 0x4f9   :  { %7408 = vmatpush1.bf16.msra.mxu0 %v10125_v29  ;;  %v8857_v29 = vcombine.high %v6100_v46, %v6103_v40 }
 0x4fa   :  { %7409 = vmatprep.subr.bf16.mxu0 %v10130_v3  ;;  %v8832_v3 = vrot.slane %v5968_v39, 9  ;;  %v6120_v39 = vrot.slane %v11195_v12, 5 }
 0x4fc   :  { %6570 = vmatmul.mubr.bf16.gmra.mrb[28].mxu0 %v8852_v34  ;;  %v6107_v34 = vsel %vm10522_vm2, %v8832_v3, %v6106_v37  ;;  %v6122_v46 = vrot.slane %v6120_v39, 4  ;;  %v6121_v43 = vsel %vm10522_vm2, %v8834_v57, %v6120_v39 }
 0x4fd   :  { %6579 = vmatprep.mubr.bf16.mxu0 %v8855_v21  ;;  %7410 = vmatpush1.bf16.msra.mxu0 %v10128_v22  ;;  %v6113_v21 = vrot.slane %v11191_v26, 5  ;;  %v5971_v22 = vld [vmem:[#allocation2 + $0x408] sm:$0xee]  ;;  %v8859_v52 = vcombine.high %v6107_v34, %v6110_v32 }
 0x4fe   :  { %7411 = vmatprep.subr.bf16.mxu0 %v10133_v50  ;;  %v8833_v4 = vrot.slane %v5971_v22, 9  ;;  %v6116_v50 = vrot.slane %v5973_v11, 5  ;;  %v6127_v22 = vrot.slane %v11199_v33, 5  ;;  %v5977_v11 = vld [vmem:[#allocation2 + $0x438] sm:$0xee] }
 0x4ff   :  { %v6115_v5 = vrot.slane %v6113_v21, 4 }
 0x501   :  { %7412 = vmatpush1.bf16.msra.mxu0 %v10131_v47  ;;  %v6114_v47 = vsel %vm10522_vm2, %v8833_v4, %v6113_v21  ;;  %v6117_v37 = vsel %vm10522_vm2, %v6115_v5, %v6116_v50  ;;  %v8835_v5 = vrot.slane %v5977_v11, 9  ;;  %v6141_v11 = vrot.slane %v11207_v20, 5 }
 0x502   :  { %v8861_v3 = vcombine.high %v6114_v47, %v6117_v37 }
 0x503   :  { %v6128_v50 = vsel %vm10522_vm2, %v8835_v5, %v6127_v22 }
 0x504   :  { %6580 = vmatmul.mubr.bf16.gmra.mrb[32].mxu0 %v8854_v48  ;;  %v5976_v48 = vld [vmem:[#allocation2 + $0x430] sm:$0x11] }
 0x505   :  { %6589 = vmatprep.mubr.bf16.mxu0 %v8857_v29  ;;  %v8858_v29 = vcombine.low %v6107_v34, %v6110_v32  ;;  %v6123_v40 = vrot.slane %v5976_v48, 5  ;;  %v6129_v34 = vrot.slane %v6127_v22, 4  ;;  %v5980_v48 = vld [vmem:[#allocation2 + $0x450] sm:$0xee] }
 0x507   :  { %v6124_v21 = vsel %vm10522_vm2, %v6122_v46, %v6123_v40  ;;  %v8836_v46 = vrot.slane %v5980_v48, 9  ;;  %v10134_v48 = vld [vmem:[#allocation2 + $0x308] sm:$0xff] }
 0x508   :  { %v8863_v4 = vcombine.high %v6121_v43, %v6124_v21 }
 0x509   :  { %v6135_v40 = vsel %vm10522_vm2, %v8836_v46, %v6134_v8 }
 0x50c   :  { %6590 = vmatmul.mubr.bf16.gmra.mrb[36].mxu0 %v8856_v2  ;;  %v5979_v2 = vld [vmem:[#allocation2 + $0x448] sm:$0x11] }
 0x50d   :  { %6599 = vmatprep.mubr.bf16.mxu0 %v8859_v52  ;;  %v8860_v52 = vcombine.low %v6114_v47, %v6117_v37  ;;  %v6130_v32 = vrot.slane %v5979_v2, 5  ;;  %v6136_v47 = vrot.slane %v6134_v8, 4  ;;  %v5983_v2 = vld [vmem:[#allocation2 + $0x468] sm:$0xee] }
 0x50f   :  { %v6131_v39 = vsel %vm10522_vm2, %v6129_v34, %v6130_v32  ;;  %v8837_v34 = vrot.slane %v5983_v2, 9 }
 0x510   :  { %v8865_v57 = vcombine.high %v6128_v50, %v6131_v39 }
 0x511   :  { %v6142_v32 = vsel %vm10522_vm2, %v8837_v34, %v6141_v11 }
 0x514   :  { %6600 = vmatmul.mubr.bf16.gmra.mrb[40].mxu0 %v8858_v29  ;;  %v5982_v29 = vld [vmem:[#allocation2 + $0x460] sm:$0x11] }
 0x515   :  { %6609 = vmatprep.mubr.bf16.mxu0 %v8861_v3  ;;  %v8862_v3 = vcombine.low %v6121_v43, %v6124_v21  ;;  %v6137_v37 = vrot.slane %v5982_v29, 5  ;;  %v6143_v43 = vrot.slane %v6141_v11, 4  ;;  %v6950_v29 = vrot.slane %v10134_v48, 6 }
 0x517   :  { %v6138_v22 = vsel %vm10522_vm2, %v6136_v47, %v6137_v37 }
 0x518   :  { %v8867_v5 = vcombine.high %v6135_v40, %v6138_v22  ;;  %v8866_v46 = vcombine.low %v6135_v40, %v6138_v22  ;;  %v6959_v40 = vrot.slane %v6957_v13, 4 }
 0x51c   :  { %6610 = vmatmul.mubr.bf16.gmra.mrb[44].mxu0 %v8860_v52  ;;  %v5985_v52 = vld [vmem:[#allocation2 + $0x478] sm:$0x11] }
 0x51d   :  { %6619 = vmatprep.mubr.bf16.mxu0 %v8863_v4  ;;  %v8864_v4 = vcombine.low %v6128_v50, %v6131_v39  ;;  %v6144_v21 = vrot.slane %v5985_v52, 5  ;;  %v6952_v50 = vrot.slane %v6950_v29, 4  ;;  %v6855_v52 = vld [vmem:[#allocation2 + $0x318] sm:$0xcc] }
 0x51f   :  { %v6145_v8 = vsel %vm10522_vm2, %v6143_v43, %v6144_v21  ;;  %v8903_v43 = vrot.slane %v6855_v52, 10  ;;  %v6863_v52 = vld [vmem:[#allocation2 + $0x358] sm:$0x33] }
 0x520   :  { %v8869_v47 = vcombine.high %v6142_v32, %v6145_v8 }
 0x521   :  { %v6958_v21 = vsel %vm10606_vm5, %v8903_v43, %v6957_v13  ;;  %v6861_v13 = vld [vmem:[#allocation2 + $0x348] sm:$0xcc] }
 0x524   :  { %6620 = vmatmul.mubr.bf16.gmra.mrb[48].mxu0 %v8862_v3  ;;  %v6852_v3 = vld [vmem:[#allocation2 + $0x300] sm:$0xcc] }
 0x525   :  { %6629 = vmatprep.mubr.bf16.mxu0 %v8865_v57  ;;  %v6854_v57 = vld [vmem:[#allocation2 + $0x310] sm:$0x33]  ;;  %v8902_v37 = vrot.slane %v6852_v3, 10  ;;  %v6858_v3 = vld [vmem:[#allocation2 + $0x330] sm:$0xcc] }
 0x526   :  { %v6953_v39 = vrot.slane %v6854_v57, 6  ;;  %v6860_v57 = vld [vmem:[#allocation2 + $0x340] sm:$0x33] }
 0x527   :  { %v6951_v2 = vsel %vm10606_vm5, %v8902_v37, %v6950_v29  ;;  %v6964_v29 = vrot.slane %v11155_v54, 6 }
 0x528   :  { %v6954_v11 = vsel %vm10606_vm5, %v6952_v50, %v6953_v39  ;;  %v6971_v39 = vrot.slane %v11159_v38, 6 }
 0x529   :  { %v8919_v34 = vcombine.high %v6951_v2, %v6954_v11  ;;  %v8918_v31 = vcombine.low %v6951_v2, %v6954_v11  ;;  %v6974_v11 = vrot.slane %v6863_v52, 6 }
 0x52a   :  { %v6973_v2 = vrot.slane %v6971_v39, 4 }
 0x52c   :  { %6630 = vmatmul.mubr.bf16.gmra.mrb[52].mxu0 %v8864_v4  ;;  %v6857_v4 = vld [vmem:[#allocation2 + $0x328] sm:$0x33]  ;;  %v6975_v43 = vsel %vm10606_vm5, %v6973_v2, %v6974_v11  ;;  %v6872_v2 = vld [vmem:[#allocation2 + $0x3a0] sm:$0x33] }
 0x52d   :  { %6639 = vmatprep.mubr.bf16.mxu0 %v8867_v5  ;;  %v8868_v5 = vcombine.low %v6142_v32, %v6145_v8  ;;  %v6960_v22 = vrot.slane %v6857_v4, 6  ;;  %v6966_v32 = vrot.slane %v6964_v29, 4  ;;  %v6967_v8 = vrot.slane %v6860_v57, 6 }
 0x52f   :  { %v6961_v48 = vsel %vm10606_vm5, %v6959_v40, %v6960_v22  ;;  %v6968_v50 = vsel %vm10606_vm5, %v6966_v32, %v6967_v8  ;;  %v6978_v40 = vrot.slane %v11163_v18, 6  ;;  %v6864_v22 = vld [vmem:[#allocation2 + $0x360] sm:$0xcc]  ;;  %v6867_v32 = vld [vmem:[#allocation2 + $0x378] sm:$0xcc] }
 0x530   :  { %v8920_v54 = vcombine.low %v6958_v21, %v6961_v48  ;;  %v8906_v57 = vrot.slane %v6864_v22, 10  ;;  %v6869_v8 = vld [vmem:[#allocation2 + $0x388] sm:$0x33] }
 0x534   :  { %6640 = vmatmul.mubr.bf16.gmra.mrb[56].mxu0 %v8866_v46  ;;  %v8921_v46 = vcombine.high %v6958_v21, %v6961_v48  ;;  %v6980_v21 = vrot.slane %v6978_v40, 4 }
 0x535   :  { %6649 = vmatprep.mubr.bf16.mxu0 %v8869_v47  ;;  %v8904_v47 = vrot.slane %v6858_v3, 10 }
 0x537   :  { %v6965_v37 = vsel %vm10606_vm5, %v8904_v47, %v6964_v29  ;;  %v6866_v29 = vld [vmem:[#allocation2 + $0x370] sm:$0x33]  ;;  %v6985_v47 = vrot.slane %v11167_v0, 6 }
 0x538   :  { %v8923_v4 = vcombine.high %v6965_v37, %v6968_v50  ;;  %v8922_v38 = vcombine.low %v6965_v37, %v6968_v50  ;;  %v6981_v48 = vrot.slane %v6866_v29, 6  ;;  %v6988_v50 = vrot.slane %v6869_v8, 6 }
 0x539   :  { %v6987_v37 = vrot.slane %v6985_v47, 4  ;;  %v7006_v8 = vrot.slane %v11179_v25, 6 }
 0x53c   :  { %6650 = vmatmul.mubr.bf16.gmra.mrb[60].mxu0 %v8868_v5  ;;  %v8905_v5 = vrot.slane %v6861_v13, 10  ;;  %v8907_v13 = vrot.slane %v6867_v32, 10 }
 0x53d   :  { %7413 = vmatprep.mubr.bf16.mxu0 %v8919_v34 }
 0x53e   :  { %v6972_v34 = vsel %vm10606_vm5, %v8905_v5, %v6971_v39  ;;  %v6986_v52 = vsel %vm10606_vm5, %v8907_v13, %v6985_v47  ;;  %v6870_v5 = vld [vmem:[#allocation2 + $0x390] sm:$0xcc] }
 0x53f   :  { %v8925_v3 = vcombine.high %v6972_v34, %v6975_v43  ;;  %v8924_v18 = vcombine.low %v6972_v34, %v6975_v43  ;;  %v6995_v43 = vrot.slane %v6872_v2, 6  ;;  %v6879_v2 = vld [vmem:[#allocation2 + $0x3d8] sm:$0xcc] }
 0x544   :  { %7414 = vmatmul.mubr.bf16.vlgmr.msra.gmra.mrb[0].mxu0 %v8918_v31  ;;  %v6979_v31 = vsel %vm10606_vm5, %v8906_v57, %v6978_v40  ;;  %v8908_v40 = vrot.slane %v6870_v5, 10  ;;  %v6875_v57 = vld [vmem:[#allocation2 + $0x3b8] sm:$0x33]  ;;  %v7013_v5 = vrot.slane %v11183_v30, 6 }
 0x545   :  { %7423 = vmatprep.mubr.bf16.mxu0 %v8921_v46  ;;  %v6982_v46 = vsel %vm10606_vm5, %v6980_v21, %v6981_v48 }
 0x546   :  { %v8927_v39 = vcombine.high %v6979_v31, %v6982_v46  ;;  %v8926_v0 = vcombine.low %v6979_v31, %v6982_v46  ;;  %v7002_v46 = vrot.slane %v6875_v57, 6  ;;  %v6884_v57 = vld [vmem:[#allocation2 + $0x400] sm:$0x33] }
 0x54c   :  { %7424 = vmatmul.mubr.bf16.gmra.mrb[4].mxu0 %v8920_v54  ;;  %v6989_v54 = vsel %vm10606_vm5, %v6987_v37, %v6988_v50  ;;  %v7008_v50 = vrot.slane %v7006_v8, 4 }
 0x54d   :  { %7433 = vmatprep.mubr.bf16.mxu0 %v8923_v4  ;;  %v6992_v4 = vrot.slane %v11171_v41, 6  ;;  %v8929_v11 = vcombine.high %v6986_v52, %v6989_v54  ;;  %v8928_v41 = vcombine.low %v6986_v52, %v6989_v54 }
 0x54f   :  { %v6994_v34 = vrot.slane %v6992_v4, 4  ;;  %v6993_v22 = vsel %vm10606_vm5, %v8908_v40, %v6992_v4  ;;  %v8911_v40 = vrot.slane %v6879_v2, 10 }
 0x551   :  { %v6996_v29 = vsel %vm10606_vm5, %v6994_v34, %v6995_v43  ;;  %v7015_v34 = vrot.slane %v7013_v5, 4 }
 0x552   :  { %v8931_v21 = vcombine.high %v6993_v22, %v6996_v29 }
 0x554   :  { %7434 = vmatmul.mubr.bf16.gmra.mrb[8].mxu0 %v8922_v38  ;;  %v6999_v38 = vrot.slane %v11175_v60, 6  ;;  %v8930_v60 = vcombine.low %v6993_v22, %v6996_v29  ;;  %v7014_v22 = vsel %vm10606_vm5, %v8911_v40, %v7013_v5  ;;  %v6890_v5 = vld [vmem:[#allocation2 + $0x430] sm:$0x33] }
 0x555   :  { %7443 = vmatprep.mubr.bf16.mxu0 %v8925_v3  ;;  %v6873_v3 = vld [vmem:[#allocation2 + $0x3a8] sm:$0xcc] }
 0x556   :  { %v8909_v48 = vrot.slane %v6873_v3, 10  ;;  %v7001_v31 = vrot.slane %v6999_v38, 4  ;;  %v6882_v3 = vld [vmem:[#allocation2 + $0x3f0] sm:$0xcc] }
 0x558   :  { %v7000_v47 = vsel %vm10606_vm5, %v8909_v48, %v6999_v38  ;;  %v7003_v32 = vsel %vm10606_vm5, %v7001_v31, %v7002_v46  ;;  %v7020_v38 = vrot.slane %v11187_v62, 6  ;;  %v7023_v31 = vrot.slane %v6884_v57, 6 }
 0x559   :  { %v8933_v13 = vcombine.high %v7000_v47, %v7003_v32  ;;  %v8932_v25 = vcombine.low %v7000_v47, %v7003_v32  ;;  %v7027_v32 = vrot.slane %v11191_v26, 6 }
 0x55a   :  { %v7022_v48 = vrot.slane %v7020_v38, 4 }
 0x55c   :  { %7444 = vmatmul.mubr.bf16.gmra.mrb[12].mxu0 %v8924_v18  ;;  %v6876_v18 = vld [vmem:[#allocation2 + $0x3c0] sm:$0xcc]  ;;  %v7024_v47 = vsel %vm10606_vm5, %v7022_v48, %v7023_v31  ;;  %v7048_v48 = vrot.slane %v11203_v61, 6  ;;  %v6894_v31 = vld [vmem:[#allocation2 + $0x450] sm:$0xcc] }
 0x55d   :  { %7453 = vmatprep.mubr.bf16.mxu0 %v8927_v39  ;;  %v6878_v39 = vld [vmem:[#allocation2 + $0x3d0] sm:$0x33]  ;;  %v8910_v37 = vrot.slane %v6876_v18, 10  ;;  %v6887_v18 = vld [vmem:[#allocation2 + $0x418] sm:$0x33] }
 0x55e   :  { %v7009_v52 = vrot.slane %v6878_v39, 6 }
 0x55f   :  { %v7007_v54 = vsel %vm10606_vm5, %v8910_v37, %v7006_v8  ;;  %v6885_v8 = vld [vmem:[#allocation2 + $0x408] sm:$0xcc]  ;;  %v7030_v37 = vrot.slane %v6887_v18, 6 }
 0x560   :  { %v7010_v4 = vsel %vm10606_vm5, %v7008_v50, %v7009_v52 }
 0x561   :  { %v8934_v30 = vcombine.low %v7007_v54, %v7010_v4 }
 0x564   :  { %7454 = vmatmul.mubr.bf16.gmra.mrb[16].mxu0 %v8926_v0  ;;  %v6881_v0 = vld [vmem:[#allocation2 + $0x3e8] sm:$0x33] }
 0x565   :  { %7463 = vmatprep.mubr.bf16.mxu0 %v8929_v11  ;;  %v8935_v11 = vcombine.high %v7007_v54, %v7010_v4  ;;  %v7016_v43 = vrot.slane %v6881_v0, 6  ;;  %v7034_v54 = vrot.slane %v11195_v12, 6  ;;  %v6888_v4 = vld [vmem:[#allocation2 + $0x420] sm:$0xcc] }
 0x566   :  { %v8914_v0 = vrot.slane %v6888_v4, 10 }
 0x567   :  { %v7017_v29 = vsel %vm10606_vm5, %v7015_v34, %v7016_v43  ;;  %v7041_v43 = vrot.slane %v11199_v33, 6 }
 0x568   :  { %v8936_v62 = vcombine.low %v7014_v22, %v7017_v29  ;;  %v7035_v40 = vsel %vm10606_vm5, %v8914_v0, %v7034_v54 }
 0x569   :  { %v7043_v57 = vrot.slane %v7041_v43, 4 }
 0x56c   :  { %7464 = vmatmul.mubr.bf16.gmra.mrb[20].mxu0 %v8928_v41  ;;  %v8937_v41 = vcombine.high %v7014_v22, %v7017_v29  ;;  %v6891_v22 = vld [vmem:[#allocation2 + $0x438] sm:$0xcc]  ;;  %v6893_v29 = vld [vmem:[#allocation2 + $0x448] sm:$0x33] }
 0x56d   :  { %7473 = vmatprep.mubr.bf16.mxu0 %v8931_v21  ;;  %v8912_v21 = vrot.slane %v6882_v3, 10  ;;  %v8915_v3 = vrot.slane %v6891_v22, 10  ;;  %v7906_v22 = vld [vmem:[#allocation10] sm:$0x3] }
 0x56f   :  { %v7021_v46 = vsel %vm10606_vm5, %v8912_v21, %v7020_v38 }
 0x570   :  { %v8939_v39 = vcombine.high %v7021_v46, %v7024_v47  ;;  %v8938_v26 = vcombine.low %v7021_v46, %v7024_v47  ;;  %v6896_v46 = vld [vmem:[#allocation2 + $0x460] sm:$0x33] }
 0x571   :  { %v7051_v18 = vrot.slane %v6896_v46, 6 }
 0x574   :  { %7474 = vmatmul.mubr.bf16.gmra.mrb[24].mxu0 %v8930_v60  ;;  %v8913_v60 = vrot.slane %v6885_v8, 10  ;;  %v7050_v8 = vrot.slane %v7048_v48, 4 }
 0x575   :  { %7483 = vmatprep.mubr.bf16.mxu0 %v8933_v13  ;;  %v7029_v13 = vrot.slane %v7027_v32, 4 }
 0x576   :  { %v7028_v50 = vsel %vm10606_vm5, %v8913_v60, %v7027_v32  ;;  %v8916_v32 = vrot.slane %v6894_v31, 10  ;;  %v7055_v60 = vrot.slane %v11207_v20, 6 }
 0x577   :  { %v7031_v52 = vsel %vm10606_vm5, %v7029_v13, %v7030_v37  ;;  %v6897_v13 = vld [vmem:[#allocation2 + $0x468] sm:$0xcc]  ;;  %v6899_v37 = vld [vmem:[#allocation2 + $0x478] sm:$0x33] }
 0x578   :  { %v8941_v2 = vcombine.high %v7028_v50, %v7031_v52  ;;  %v8940_v12 = vcombine.low %v7028_v50, %v7031_v52  ;;  %v8917_v52 = vrot.slane %v6897_v13, 10  ;;  %v7058_v4 = vrot.slane %v6899_v37, 6 }
 0x57c   :  { %7484 = vmatmul.mubr.bf16.gmra.mrb[28].mxu0 %v8932_v25  ;;  %v7036_v25 = vrot.slane %v7034_v54, 4  ;;  %v7057_v54 = vrot.slane %v7055_v60, 4 }
 0x57d   :  { %7493 = vmatprep.mubr.bf16.mxu0 %v8935_v11  ;;  %v7037_v11 = vrot.slane %v6890_v5, 6  ;;  %v7056_v5 = vsel %vm10606_vm5, %v8917_v52, %v7055_v60 }
 0x57f   :  { %v7038_v34 = vsel %vm10606_vm5, %v7036_v25, %v7037_v11  ;;  %v7832_v25 = vlaneseq }
 0x580   :  { %v8943_v38 = vcombine.high %v7035_v40, %v7038_v34  ;;  %v8942_v33 = vcombine.low %v7035_v40, %v7038_v34  ;;  %v7830_v34 = vld [vmem:[#allocation8] sm:$0x3] }
 0x581   :  { %v7833_v11 = vshrl.u32 %v7832_v25, 7 }
 0x583   :  { %v7834_v40 = vsub.s32 0, %v7833_v11 }
 0x584   :  { %7494 = vmatmul.mubr.bf16.gmra.mrb[32].mxu0 %v8934_v30  ;;  %v7044_v30 = vrot.slane %v6893_v29, 6 }
 0x585   :  { %7503 = vmatprep.mubr.bf16.mxu0 %v8937_v41  ;;  %v7042_v41 = vsel %vm10606_vm5, %v8915_v3, %v7041_v43  ;;  %v7838_v43 = vsub.s32 1, %v7833_v11  ;;  %v11371_v29 = vrot.slane %v7830_v34, %v7834_v40  ;;  %v11376_v3 = vrot.slane %v7906_v22, %v7834_v40 }
 0x586   :  { %v7045_v21 = vsel %vm10606_vm5, %v7043_v57, %v7044_v30 }
 0x587   :  { %v8945_v47 = vcombine.high %v7042_v41, %v7045_v21  ;;  %v8944_v61 = vcombine.low %v7042_v41, %v7045_v21  ;;  %v11379_v41 = vrot.slane %v7906_v22, %v7838_v43 }
 0x58c   :  { %7504 = vmatmul.mubr.bf16.gmra.mrb[36].mxu0 %v8936_v62  ;;  %v7049_v62 = vsel %vm10606_vm5, %v8916_v32, %v7048_v48 }
 0x58d   :  { %7513 = vmatprep.mubr.bf16.mxu0 %v8939_v39  ;;  %v7052_v39 = vsel %vm10606_vm5, %v7050_v8, %v7051_v18 }
 0x58e   :  { %v8947_v50 = vcombine.high %v7049_v62, %v7052_v39 }
 0x594   :  { %7514 = vmatmul.mubr.bf16.gmra.mrb[40].mxu0 %v8938_v26  ;;  %v7059_v26 = vsel %vm10606_vm5, %v7057_v54, %v7058_v4 }
 0x595   :  { %7523 = vmatprep.mubr.bf16.mxu0 %v8941_v2  ;;  %v8946_v2 = vcombine.low %v7049_v62, %v7052_v39  ;;  %v8949_v0 = vcombine.high %v7056_v5, %v7059_v26  ;;  %v8948_v20 = vcombine.low %v7056_v5, %v7059_v26 }
 0x59c   :  { %7524 = vmatmul.mubr.bf16.gmra.mrb[44].mxu0 %v8940_v12 }
 0x59d   :  { %7533 = vmatprep.mubr.bf16.mxu0 %v8943_v38  ;;  %v11373_v38 = vrot.slane %v7830_v34, %v7838_v43 }
 0x5a4   :  { %7534 = vmatmul.mubr.bf16.gmra.mrb[48].mxu0 %v8942_v33 }
 0x5a5   :  { %7543 = vmatprep.mubr.bf16.mxu0 %v8945_v47 }
 0x5ac   :  { %7544 = vmatmul.mubr.bf16.gmra.mrb[52].mxu0 %v8944_v61 }
 0x5ad   :  { %7553 = vmatprep.mubr.bf16.mxu0 %v8947_v50 }
 0x5b4   :  { %7554 = vmatmul.mubr.bf16.gmra.mrb[56].mxu0 %v8946_v2 }
 0x5b5   :  { %7563 = vmatprep.mubr.bf16.mxu0 %v8949_v0 }
 0x5bc   :  { %7564 = vmatmul.mubr.bf16.gmra.mrb[60].mxu0 %v8948_v20 }
 0x617   :  { %v7415_v12 = vpop.f32.mrb[0].mxu0 }
 0x618   :  { %v9081_v7 = vadd.f32 %v7415_v12, %v10992_v28  ;;  %v7417_v57 = vpop.f32.mrb[1].mxu0 }
 0x619   :  { %v9082_v30 = vadd.f32 %v7417_v57, %v10994_v56  ;;  %v7419_v21 = vpop.f32.mrb[2].mxu0 }
 0x61a   :  { %v7842_v48 = vmul.f32 %v9081_v7, %v11371_v29  ;;  %v9083_v31 = vadd.f32 %v7419_v21, %v10996_v58  ;;  %v7421_v46 = vpop.f32.mrb[3].mxu0 }
 0x61b   :  { %v7843_v33 = vmul.f32 %v9082_v30, %v11373_v38  ;;  %v9084_v47 = vadd.f32 %v7421_v46, %v10998_v23 }
 0x61c   :  { %v7918_v32 = vadd.f32 %v11376_v3, %v7842_v48  ;;  %v7844_v28 = vmul.f32 %v9083_v31, %v11371_v29 }
 0x61d   :  { %v7919_v8 = vadd.f32 %v11379_v41, %v7843_v33  ;;  %v7845_v56 = vmul.f32 %v9084_v47, %v11373_v38 }
 0x61e   :  { %v7982_v18 = vmax.f32 %v7918_v32, 0.0  ;;  %v7920_v62 = vadd.f32 %v11376_v3, %v7844_v28 }
 0x61f   :  { %v7983_v39 = vmax.f32 %v7919_v8, 0.0  ;;  %v7921_v60 = vadd.f32 %v11379_v41, %v7845_v56  ;;  %v7425_v58 = vpop.f32.mrb[4].mxu0 }
 0x620   :  { %v7984_v13 = vmax.f32 %v7920_v62, 0.0  ;;  %v9085_v37 = vadd.f32 %v7425_v58, %v11004_v6  ;;  %v7427_v61 = vpop.f32.mrb[5].mxu0 }
 0x621   :  { %v9017_v23 = vpack.c.bf16 %v7983_v39, %v7982_v18  ;;  %v7985_v50 = vmax.f32 %v7921_v60, 0.0  ;;  %v9086_v52 = vadd.f32 %v7427_v61, %v11006_v9  ;;  %v7429_v54 = vpop.f32.mrb[6].mxu0 }
 0x622   :  { %v7846_v4 = vmul.f32 %v9085_v37, %v11371_v29  ;;  %v9087_v5 = vadd.f32 %v7429_v54, %v11008_v14  ;;  %v7431_v26 = vpop.f32.mrb[7].mxu0 }
 0x623   :  { %8238 = vst [vmem:[#allocation11] sm:$0xff] %v9017_v23  ;;  %v9018_v2 = vpack.c.bf16 %v7985_v50, %v7984_v13  ;;  %v7847_v0 = vmul.f32 %v9086_v52, %v11373_v38  ;;  %v9088_v20 = vadd.f32 %v7431_v26, %v11010_v1 }
 0x624   :  { %v7922_v25 = vadd.f32 %v11376_v3, %v7846_v4  ;;  %v7848_v6 = vmul.f32 %v9087_v5, %v11371_v29 }
 0x625   :  { %8239 = vst [vmem:[#allocation11 + $0x8] sm:$0xff] %v9018_v2  ;;  %v7923_v11 = vadd.f32 %v11379_v41, %v7847_v0  ;;  %v7849_v9 = vmul.f32 %v9088_v20, %v11373_v38 }
 0x626   :  { %v7986_v40 = vmax.f32 %v7922_v25, 0.0  ;;  %v7924_v34 = vadd.f32 %v11376_v3, %v7848_v6 }
 0x627   :  { %v7987_v14 = vmax.f32 %v7923_v11, 0.0  ;;  %v7925_v43 = vadd.f32 %v11379_v41, %v7849_v9  ;;  %v7435_v22 = vpop.f32.mrb[8].mxu0 }
 0x628   :  { %v7988_v12 = vmax.f32 %v7924_v34, 0.0  ;;  %v9089_v7 = vadd.f32 %v7435_v22, %v11016_v24  ;;  %v7437_v1 = vpop.f32.mrb[9].mxu0 }
 0x629   :  { %v9019_v57 = vpack.c.bf16 %v7987_v14, %v7986_v40  ;;  %v7989_v30 = vmax.f32 %v7925_v43, 0.0  ;;  %v9090_v21 = vadd.f32 %v7437_v1, %v11018_v53  ;;  %v7439_v48 = vpop.f32.mrb[10].mxu0 }
 0x62a   :  { %v7850_v31 = vmul.f32 %v9089_v7, %v11371_v29  ;;  %v9091_v46 = vadd.f32 %v7439_v48, %v11020_v49  ;;  %v7441_v33 = vpop.f32.mrb[11].mxu0 }
 0x62b   :  { %8240 = vst [vmem:[#allocation11 + $0x10] sm:$0xff] %v9019_v57  ;;  %v9020_v47 = vpack.c.bf16 %v7989_v30, %v7988_v12  ;;  %v7851_v32 = vmul.f32 %v9090_v21, %v11373_v38  ;;  %v9092_v28 = vadd.f32 %v7441_v33, %v11022_v27 }
 0x62c   :  { %v7926_v8 = vadd.f32 %v11376_v3, %v7850_v31  ;;  %v7852_v24 = vmul.f32 %v9091_v46, %v11371_v29 }
 0x62d   :  { %8241 = vst [vmem:[#allocation11 + $0x18] sm:$0xff] %v9020_v47  ;;  %v7927_v56 = vadd.f32 %v11379_v41, %v7851_v32  ;;  %v7853_v53 = vmul.f32 %v9092_v28, %v11373_v38 }
 0x62e   :  { %v7990_v18 = vmax.f32 %v7926_v8, 0.0  ;;  %v7928_v62 = vadd.f32 %v11376_v3, %v7852_v24 }
 0x62f   :  { %v7991_v49 = vmax.f32 %v7927_v56, 0.0  ;;  %v7929_v39 = vadd.f32 %v11379_v41, %v7853_v53  ;;  %v7445_v60 = vpop.f32.mrb[12].mxu0 }
 0x630   :  { %v7992_v58 = vmax.f32 %v7928_v62, 0.0  ;;  %v9093_v13 = vadd.f32 %v7445_v60, %v11028_v35  ;;  %v7447_v27 = vpop.f32.mrb[13].mxu0 }
 0x631   :  { %v9021_v37 = vpack.c.bf16 %v7991_v49, %v7990_v18  ;;  %v7993_v61 = vmax.f32 %v7929_v39, 0.0  ;;  %v9094_v23 = vadd.f32 %v7447_v27, %v11030_v36  ;;  %v7449_v50 = vpop.f32.mrb[14].mxu0 }
 0x632   :  { %v7854_v52 = vmul.f32 %v9093_v13, %v11371_v29  ;;  %v9095_v54 = vadd.f32 %v7449_v50, %v11032_v10  ;;  %v7451_v4 = vpop.f32.mrb[15].mxu0 }
 0x633   :  { %8242 = vst [vmem:[#allocation11 + $0x20] sm:$0xff] %v9021_v37  ;;  %v9022_v5 = vpack.c.bf16 %v7993_v61, %v7992_v58  ;;  %v7855_v26 = vmul.f32 %v9094_v23, %v11373_v38  ;;  %v9096_v2 = vadd.f32 %v7451_v4, %v11034_v42 }
 0x634   :  { %v7930_v0 = vadd.f32 %v11376_v3, %v7854_v52  ;;  %v7856_v35 = vmul.f32 %v9095_v54, %v11371_v29 }
 0x635   :  { %8243 = vst [vmem:[#allocation11 + $0x28] sm:$0xff] %v9022_v5  ;;  %v7931_v20 = vadd.f32 %v11379_v41, %v7855_v26  ;;  %v7857_v36 = vmul.f32 %v9096_v2, %v11373_v38 }
 0x636   :  { %v7994_v25 = vmax.f32 %v7930_v0, 0.0  ;;  %v7932_v6 = vadd.f32 %v11376_v3, %v7856_v35 }
 0x637   :  { %v7995_v10 = vmax.f32 %v7931_v20, 0.0  ;;  %v7933_v11 = vadd.f32 %v11379_v41, %v7857_v36  ;;  %v7455_v9 = vpop.f32.mrb[16].mxu0  ;;  %v11633_v36 = vld [vmem:[#allocation21_spill] sm:$0xff] }
 0x638   :  { %v7996_v40 = vmax.f32 %v7932_v6, 0.0  ;;  %v9097_v34 = vadd.f32 %v7455_v9, %v11040_v51  ;;  %v7457_v42 = vpop.f32.mrb[17].mxu0  ;;  %v11634_v9 = vld [vmem:[#allocation22_spill] sm:$0xff] }
 0x639   :  { %v9023_v14 = vpack.c.bf16 %v7995_v10, %v7994_v25  ;;  %v7997_v43 = vmax.f32 %v7933_v11, 0.0  ;;  %v9098_v22 = vadd.f32 %v7457_v42, %v11042_v55  ;;  %v7459_v12 = vpop.f32.mrb[18].mxu0 }
 0x63a   :  { %v7858_v7 = vmul.f32 %v9097_v34, %v11371_v29  ;;  %v9099_v1 = vadd.f32 %v7459_v12, %v11044_v59  ;;  %v7461_v57 = vpop.f32.mrb[19].mxu0 }
 0x63b   :  { %8244 = vst [vmem:[#allocation11 + $0x30] sm:$0xff] %v9023_v14  ;;  %v9024_v30 = vpack.c.bf16 %v7997_v43, %v7996_v40  ;;  %v7859_v21 = vmul.f32 %v9098_v22, %v11373_v38  ;;  %v9100_v48 = vadd.f32 %v7461_v57, %v11046_v63  ;;  %v11635_v57 = vld [vmem:[#allocation23_spill] sm:$0xff] }
 0x63c   :  { %v7934_v31 = vadd.f32 %v11376_v3, %v7858_v7  ;;  %v7860_v51 = vmul.f32 %v9099_v1, %v11371_v29 }
 0x63d   :  { %8245 = vst [vmem:[#allocation11 + $0x38] sm:$0xff] %v9024_v30  ;;  %v7935_v46 = vadd.f32 %v11379_v41, %v7859_v21  ;;  %v7861_v55 = vmul.f32 %v9100_v48, %v11373_v38 }
 0x63e   :  { %v7998_v33 = vmax.f32 %v7934_v31, 0.0  ;;  %v7936_v47 = vadd.f32 %v11376_v3, %v7860_v51  ;;  %v11636_v51 = vld [vmem:[#allocation24_spill] sm:$0xff] }
 0x63f   :  { %v7999_v59 = vmax.f32 %v7935_v46, 0.0  ;;  %v7937_v32 = vadd.f32 %v11379_v41, %v7861_v55  ;;  %v7465_v28 = vpop.f32.mrb[20].mxu0 }
 0x640   :  { %v8000_v8 = vmax.f32 %v7936_v47, 0.0  ;;  %v9101_v24 = vadd.f32 %v7465_v28, %v11052_v15  ;;  %v7467_v63 = vpop.f32.mrb[21].mxu0  ;;  %v11637_v47 = vld [vmem:[#allocation25_spill] sm:$0xff] }
 0x641   :  { %v9025_v56 = vpack.c.bf16 %v7999_v59, %v7998_v33  ;;  %v8001_v53 = vmax.f32 %v7937_v32, 0.0  ;;  %v9102_v18 = vadd.f32 %v7467_v63, %v11054_v16  ;;  %v7469_v62 = vpop.f32.mrb[22].mxu0 }
 0x642   :  { %v7862_v49 = vmul.f32 %v9101_v24, %v11371_v29  ;;  %v9103_v39 = vadd.f32 %v7469_v62, %v11056_v17  ;;  %v7471_v60 = vpop.f32.mrb[23].mxu0  ;;  %v11638_v24 = vld [vmem:[#allocation26_spill] sm:$0xff] }
 0x643   :  { %8246 = vst [vmem:[#allocation11 + $0x40] sm:$0xff] %v9025_v56  ;;  %v9026_v58 = vpack.c.bf16 %v8001_v53, %v8000_v8  ;;  %v7863_v13 = vmul.f32 %v9102_v18, %v11373_v38  ;;  %v9104_v27 = vadd.f32 %v7471_v60, %v11058_v19 }
 0x644   :  { %v7938_v37 = vadd.f32 %v11376_v3, %v7862_v49  ;;  %v7864_v15 = vmul.f32 %v9103_v39, %v11371_v29 }
 0x645   :  { %8247 = vst [vmem:[#allocation11 + $0x48] sm:$0xff] %v9026_v58  ;;  %v7939_v61 = vadd.f32 %v11379_v41, %v7863_v13  ;;  %v7865_v16 = vmul.f32 %v9104_v27, %v11373_v38 }
 0x646   :  { %v8002_v23 = vmax.f32 %v7938_v37, 0.0  ;;  %v7940_v50 = vadd.f32 %v11376_v3, %v7864_v15  ;;  %v11639_v37 = vld [vmem:[#allocation27_spill] sm:$0xff] }
 0x647   :  { %v8003_v17 = vmax.f32 %v7939_v61, 0.0  ;;  %v7941_v52 = vadd.f32 %v11379_v41, %v7865_v16  ;;  %v7475_v54 = vpop.f32.mrb[24].mxu0 }
 0x648   :  { %v8004_v4 = vmax.f32 %v7940_v50, 0.0  ;;  %v9105_v5 = vadd.f32 %v7475_v54, %v11064_v45  ;;  %v7477_v19 = vpop.f32.mrb[25].mxu0  ;;  %v11640_v50 = vld [vmem:[#allocation28_spill] sm:$0xff] }
 0x649   :  { %v9027_v26 = vpack.c.bf16 %v8003_v17, %v8002_v23  ;;  %v8005_v2 = vmax.f32 %v7941_v52, 0.0  ;;  %v9106_v0 = vadd.f32 %v7477_v19, %v11066_v44  ;;  %v7479_v35 = vpop.f32.mrb[26].mxu0 }
 0x64a   :  { %v7866_v20 = vmul.f32 %v9105_v5, %v11371_v29  ;;  %v9107_v25 = vadd.f32 %v7479_v35, %v11633_v36  ;;  %v7481_v6 = vpop.f32.mrb[27].mxu0 }
 0x64b   :  { %8248 = vst [vmem:[#allocation11 + $0x50] sm:$0xff] %v9027_v26  ;;  %v9028_v10 = vpack.c.bf16 %v8005_v2, %v8004_v4  ;;  %v7867_v11 = vmul.f32 %v9106_v0, %v11373_v38  ;;  %v9108_v40 = vadd.f32 %v7481_v6, %v11634_v9  ;;  %v11641_v4 = vld [vmem:[#allocation29_spill] sm:$0xff]  ;;  %v11642_v0 = vld [vmem:[#allocation30_spill] sm:$0xff] }
 0x64c   :  { %v7942_v34 = vadd.f32 %v11376_v3, %v7866_v20  ;;  %v7868_v45 = vmul.f32 %v9107_v25, %v11371_v29 }
 0x64d   :  { %8249 = vst [vmem:[#allocation11 + $0x58] sm:$0xff] %v9028_v10  ;;  %v7943_v42 = vadd.f32 %v11379_v41, %v7867_v11  ;;  %v7869_v44 = vmul.f32 %v9108_v40, %v11373_v38 }
 0x64e   :  { %v8006_v14 = vmax.f32 %v7942_v34, 0.0  ;;  %v7944_v43 = vadd.f32 %v11376_v3, %v7868_v45 }
 0x64f   :  { %v8007_v22 = vmax.f32 %v7943_v42, 0.0  ;;  %v7945_v12 = vadd.f32 %v11379_v41, %v7869_v44  ;;  %v7485_v7 = vpop.f32.mrb[28].mxu0  ;;  %v11643_v42 = vld [vmem:[#allocation31_spill] sm:$0xff] }
 0x650   :  { %v8008_v1 = vmax.f32 %v7944_v43, 0.0  ;;  %v9109_v30 = vadd.f32 %v7485_v7, %v11635_v57  ;;  %v7487_v21 = vpop.f32.mrb[29].mxu0 }
 0x651   :  { %v9029_v48 = vpack.c.bf16 %v8007_v22, %v8006_v14  ;;  %v8009_v31 = vmax.f32 %v7945_v12, 0.0  ;;  %v9110_v46 = vadd.f32 %v7487_v21, %v11636_v51  ;;  %v7489_v55 = vpop.f32.mrb[30].mxu0  ;;  %v11644_v12 = vld [vmem:[#allocation32_spill] sm:$0xff] }
 0x652   :  { %v7870_v33 = vmul.f32 %v9109_v30, %v11371_v29  ;;  %v9111_v59 = vadd.f32 %v7489_v55, %v11637_v47  ;;  %v7491_v32 = vpop.f32.mrb[31].mxu0  ;;  %v11645_v30 = vld [vmem:[#allocation33_spill] sm:$0xff] }
 0x653   :  { %8250 = vst [vmem:[#allocation11 + $0x60] sm:$0xff] %v9029_v48  ;;  %v9030_v28 = vpack.c.bf16 %v8009_v31, %v8008_v1  ;;  %v7871_v8 = vmul.f32 %v9110_v46, %v11373_v38  ;;  %v9112_v63 = vadd.f32 %v7491_v32, %v11638_v24  ;;  %v11646_v46 = vld [vmem:[#allocation34_spill] sm:$0xff] }
 0x654   :  { %v7946_v56 = vadd.f32 %v11376_v3, %v7870_v33  ;;  %v7872_v53 = vmul.f32 %v9111_v59, %v11371_v29 }
 0x655   :  { %8251 = vst [vmem:[#allocation11 + $0x68] sm:$0xff] %v9030_v28  ;;  %v7947_v18 = vadd.f32 %v11379_v41, %v7871_v8  ;;  %v7873_v62 = vmul.f32 %v9112_v63, %v11373_v38 }
 0x656   :  { %v8010_v49 = vmax.f32 %v7946_v56, 0.0  ;;  %v7948_v39 = vadd.f32 %v11376_v3, %v7872_v53 }
 0x657   :  { %v8011_v60 = vmax.f32 %v7947_v18, 0.0  ;;  %v7949_v58 = vadd.f32 %v11379_v41, %v7873_v62  ;;  %v7495_v13 = vpop.f32.mrb[32].mxu0  ;;  %v11647_v18 = vld [vmem:[#allocation35_spill] sm:$0xff] }
 0x658   :  { %v8012_v27 = vmax.f32 %v7948_v39, 0.0  ;;  %v9113_v15 = vadd.f32 %v7495_v13, %v11639_v37  ;;  %v7497_v61 = vpop.f32.mrb[33].mxu0 }
 0x659   :  { %v9031_v16 = vpack.c.bf16 %v8011_v60, %v8010_v49  ;;  %v8013_v23 = vmax.f32 %v7949_v58, 0.0  ;;  %v9114_v17 = vadd.f32 %v7497_v61, %v11640_v50  ;;  %v7499_v52 = vpop.f32.mrb[34].mxu0  ;;  %v11648_v58 = vld [vmem:[#allocation36_spill] sm:$0xff] }
 0x65a   :  { %v7874_v54 = vmul.f32 %v9113_v15, %v11371_v29  ;;  %v9115_v5 = vadd.f32 %v7499_v52, %v11641_v4  ;;  %v7501_v19 = vpop.f32.mrb[35].mxu0  ;;  %v11649_v15 = vld [vmem:[#allocation37_spill] sm:$0xff] }
 0x65b   :  { %8252 = vst [vmem:[#allocation11 + $0x70] sm:$0xff] %v9031_v16  ;;  %v9032_v26 = vpack.c.bf16 %v8013_v23, %v8012_v27  ;;  %v7875_v2 = vmul.f32 %v9114_v17, %v11373_v38  ;;  %v9116_v35 = vadd.f32 %v7501_v19, %v11642_v0  ;;  %v11650_v17 = vld [vmem:[#allocation38_spill] sm:$0xff] }
 0x65c   :  { %v7950_v20 = vadd.f32 %v11376_v3, %v7874_v54  ;;  %v7876_v36 = vmul.f32 %v9115_v5, %v11371_v29 }
 0x65d   :  { %8253 = vst [vmem:[#allocation11 + $0x78] sm:$0xff] %v9032_v26  ;;  %v7951_v25 = vadd.f32 %v11379_v41, %v7875_v2  ;;  %v7877_v6 = vmul.f32 %v9116_v35, %v11373_v38 }
 0x65e   :  { %v8014_v10 = vmax.f32 %v7950_v20, 0.0  ;;  %v7952_v11 = vadd.f32 %v11376_v3, %v7876_v36 }
 0x65f   :  { %v8015_v9 = vmax.f32 %v7951_v25, 0.0  ;;  %v7953_v40 = vadd.f32 %v11379_v41, %v7877_v6  ;;  %v7505_v34 = vpop.f32.mrb[36].mxu0  ;;  %v11651_v25 = vld [vmem:[#allocation39_spill] sm:$0xff] }
 0x660   :  { %v8016_v45 = vmax.f32 %v7952_v11, 0.0  ;;  %v9117_v44 = vadd.f32 %v7505_v34, %v11643_v42  ;;  %v7507_v14 = vpop.f32.mrb[37].mxu0 }
 0x661   :  { %v9033_v43 = vpack.c.bf16 %v8015_v9, %v8014_v10  ;;  %v8017_v22 = vmax.f32 %v7953_v40, 0.0  ;;  %v9118_v7 = vadd.f32 %v7507_v14, %v11644_v12  ;;  %v7509_v1 = vpop.f32.mrb[38].mxu0  ;;  %v11652_v40 = vld [vmem:[#allocation40_spill] sm:$0xff] }
 0x662   :  { %v7878_v57 = vmul.f32 %v9117_v44, %v11371_v29  ;;  %v9119_v21 = vadd.f32 %v7509_v1, %v11645_v30  ;;  %v7511_v48 = vpop.f32.mrb[39].mxu0  ;;  %v11653_v44 = vld [vmem:[#allocation41_spill] sm:$0xff] }
 0x663   :  { %8254 = vst [vmem:[#allocation11 + $0x80] sm:$0xff] %v9033_v43  ;;  %v9034_v31 = vpack.c.bf16 %v8017_v22, %v8016_v45  ;;  %v7879_v51 = vmul.f32 %v9118_v7, %v11373_v38  ;;  %v9120_v55 = vadd.f32 %v7511_v48, %v11646_v46  ;;  %v11654_v7 = vld [vmem:[#allocation42_spill] sm:$0xff] }
 0x664   :  { %v7954_v33 = vadd.f32 %v11376_v3, %v7878_v57  ;;  %v7880_v47 = vmul.f32 %v9119_v21, %v11371_v29 }
 0x665   :  { %8255 = vst [vmem:[#allocation11 + $0x88] sm:$0xff] %v9034_v31  ;;  %v7955_v59 = vadd.f32 %v11379_v41, %v7879_v51  ;;  %v7881_v32 = vmul.f32 %v9120_v55, %v11373_v38 }
 0x666   :  { %v8018_v28 = vmax.f32 %v7954_v33, 0.0  ;;  %v7956_v8 = vadd.f32 %v11376_v3, %v7880_v47 }
 0x667   :  { %v8019_v24 = vmax.f32 %v7955_v59, 0.0  ;;  %v7957_v63 = vadd.f32 %v11379_v41, %v7881_v32  ;;  %v7515_v56 = vpop.f32.mrb[40].mxu0  ;;  %v11655_v59 = vld [vmem:[#allocation43_spill] sm:$0xff] }
 0x668   :  { %v8020_v53 = vmax.f32 %v7956_v8, 0.0  ;;  %v9121_v62 = vadd.f32 %v7515_v56, %v11647_v18  ;;  %v7517_v49 = vpop.f32.mrb[41].mxu0 }
 0x669   :  { %v9035_v39 = vpack.c.bf16 %v8019_v24, %v8018_v28  ;;  %v8021_v60 = vmax.f32 %v7957_v63, 0.0  ;;  %v9122_v13 = vadd.f32 %v7517_v49, %v11648_v58  ;;  %v7519_v27 = vpop.f32.mrb[42].mxu0  ;;  %v11656_v63 = vld [vmem:[#allocation44_spill] sm:$0xff] }
 0x66a   :  { %v7882_v37 = vmul.f32 %v9121_v62, %v11371_v29  ;;  %v9123_v61 = vadd.f32 %v7519_v27, %v11649_v15  ;;  %v7521_v16 = vpop.f32.mrb[43].mxu0  ;;  %v11657_v62 = vld [vmem:[#allocation45_spill] sm:$0xff] }
 0x66b   :  { %8256 = vst [vmem:[#allocation11 + $0x90] sm:$0xff] %v9035_v39  ;;  %v9036_v23 = vpack.c.bf16 %v8021_v60, %v8020_v53  ;;  %v7883_v50 = vmul.f32 %v9122_v13, %v11373_v38  ;;  %v9124_v52 = vadd.f32 %v7521_v16, %v11650_v17  ;;  %v11658_v13 = vld [vmem:[#allocation46_spill] sm:$0xff] }
 0x66c   :  { %v7958_v54 = vadd.f32 %v11376_v3, %v7882_v37  ;;  %v7884_v4 = vmul.f32 %v9123_v61, %v11371_v29 }
 0x66d   :  { %8257 = vst [vmem:[#allocation11 + $0x98] sm:$0xff] %v9036_v23  ;;  %v7959_v5 = vadd.f32 %v11379_v41, %v7883_v50  ;;  %v7885_v19 = vmul.f32 %v9124_v52, %v11373_v38 }
 0x66e   :  { %v8022_v26 = vmax.f32 %v7958_v54, 0.0  ;;  %v7960_v2 = vadd.f32 %v11376_v3, %v7884_v4 }
 0x66f   :  { %v8023_v0 = vmax.f32 %v7959_v5, 0.0  ;;  %v7961_v35 = vadd.f32 %v11379_v41, %v7885_v19  ;;  %v7525_v20 = vpop.f32.mrb[44].mxu0  ;;  %v11659_v5 = vld [vmem:[#allocation47_spill] sm:$0xff] }
 0x670   :  { %v8024_v36 = vmax.f32 %v7960_v2, 0.0  ;;  %v9125_v6 = vadd.f32 %v7525_v20, %v11651_v25  ;;  %v7527_v10 = vpop.f32.mrb[45].mxu0 }
 0x671   :  { %v9037_v11 = vpack.c.bf16 %v8023_v0, %v8022_v26  ;;  %v8025_v9 = vmax.f32 %v7961_v35, 0.0  ;;  %v9126_v34 = vadd.f32 %v7527_v10, %v11652_v40  ;;  %v7529_v45 = vpop.f32.mrb[46].mxu0  ;;  %v11660_v35 = vld [vmem:[#allocation48_spill] sm:$0xff] }
 0x672   :  { %v7886_v42 = vmul.f32 %v9125_v6, %v11371_v29  ;;  %v9127_v14 = vadd.f32 %v7529_v45, %v11653_v44  ;;  %v7531_v43 = vpop.f32.mrb[47].mxu0  ;;  %v11661_v6 = vld [vmem:[#allocation49_spill] sm:$0xff] }
 0x673   :  { %8258 = vst [vmem:[#allocation11 + $0xa0] sm:$0xff] %v9037_v11  ;;  %v9038_v22 = vpack.c.bf16 %v8025_v9, %v8024_v36  ;;  %v7887_v12 = vmul.f32 %v9126_v34, %v11373_v38  ;;  %v9128_v1 = vadd.f32 %v7531_v43, %v11654_v7  ;;  %v11662_v34 = vld [vmem:[#allocation50_spill] sm:$0xff] }
 0x674   :  { %v7962_v57 = vadd.f32 %v11376_v3, %v7886_v42  ;;  %v7888_v30 = vmul.f32 %v9127_v14, %v11371_v29 }
 0x675   :  { %8259 = vst [vmem:[#allocation11 + $0xa8] sm:$0xff] %v9038_v22  ;;  %v7963_v21 = vadd.f32 %v11379_v41, %v7887_v12  ;;  %v7889_v48 = vmul.f32 %v9128_v1, %v11373_v38 }
 0x676   :  { %v8026_v31 = vmax.f32 %v7962_v57, 0.0  ;;  %v7964_v51 = vadd.f32 %v11376_v3, %v7888_v30 }
 0x677   :  { %v8027_v46 = vmax.f32 %v7963_v21, 0.0  ;;  %v7965_v55 = vadd.f32 %v11379_v41, %v7889_v48  ;;  %v7535_v33 = vpop.f32.mrb[48].mxu0  ;;  %v11663_v21 = vld [vmem:[#allocation51_spill] sm:$0xff] }
 0x678   :  { %v8028_v47 = vmax.f32 %v7964_v51, 0.0  ;;  %v9129_v32 = vadd.f32 %v7535_v33, %v11655_v59  ;;  %v7537_v28 = vpop.f32.mrb[49].mxu0 }
 0x679   :  { %v9039_v8 = vpack.c.bf16 %v8027_v46, %v8026_v31  ;;  %v8029_v24 = vmax.f32 %v7965_v55, 0.0  ;;  %v9130_v56 = vadd.f32 %v7537_v28, %v11656_v63  ;;  %v7539_v53 = vpop.f32.mrb[50].mxu0  ;;  %v11664_v55 = vld [vmem:[#allocation52_spill] sm:$0xff] }
 0x67a   :  { %v7890_v18 = vmul.f32 %v9129_v32, %v11371_v29  ;;  %v9131_v49 = vadd.f32 %v7539_v53, %v11657_v62  ;;  %v7541_v39 = vpop.f32.mrb[51].mxu0  ;;  %v11665_v32 = vld [vmem:[#allocation53_spill] sm:$0xff] }
 0x67b   :  { %8260 = vst [vmem:[#allocation11 + $0xb0] sm:$0xff] %v9039_v8  ;;  %v9040_v60 = vpack.c.bf16 %v8029_v24, %v8028_v47  ;;  %v7891_v58 = vmul.f32 %v9130_v56, %v11373_v38  ;;  %v9132_v27 = vadd.f32 %v7541_v39, %v11658_v13  ;;  %v11666_v56 = vld [vmem:[#allocation54_spill] sm:$0xff] }
 0x67c   :  { %v7966_v37 = vadd.f32 %v11376_v3, %v7890_v18  ;;  %v7892_v15 = vmul.f32 %v9131_v49, %v11371_v29 }
 0x67d   :  { %8261 = vst [vmem:[#allocation11 + $0xb8] sm:$0xff] %v9040_v60  ;;  %v7967_v61 = vadd.f32 %v11379_v41, %v7891_v58  ;;  %v7893_v16 = vmul.f32 %v9132_v27, %v11373_v38 }
 0x67e   :  { %v8030_v23 = vmax.f32 %v7966_v37, 0.0  ;;  %v7968_v50 = vadd.f32 %v11376_v3, %v7892_v15 }
 0x67f   :  { %v8031_v17 = vmax.f32 %v7967_v61, 0.0  ;;  %v7969_v52 = vadd.f32 %v11379_v41, %v7893_v16  ;;  %v7545_v54 = vpop.f32.mrb[52].mxu0  ;;  %v11667_v61 = vld [vmem:[#allocation55_spill] sm:$0xff] }
 0x680   :  { %v8032_v4 = vmax.f32 %v7968_v50, 0.0  ;;  %v9133_v19 = vadd.f32 %v7545_v54, %v11659_v5  ;;  %v7547_v26 = vpop.f32.mrb[53].mxu0 }
 0x681   :  { %v9041_v2 = vpack.c.bf16 %v8031_v17, %v8030_v23  ;;  %v8033_v0 = vmax.f32 %v7969_v52, 0.0  ;;  %v9134_v20 = vadd.f32 %v7547_v26, %v11660_v35  ;;  %v7549_v36 = vpop.f32.mrb[54].mxu0  ;;  %v11668_v52 = vld [vmem:[#allocation56_spill] sm:$0xff] }
 0x682   :  { %v7894_v25 = vmul.f32 %v9133_v19, %v11371_v29  ;;  %v9135_v10 = vadd.f32 %v7549_v36, %v11661_v6  ;;  %v7551_v11 = vpop.f32.mrb[55].mxu0  ;;  %v11669_v19 = vld [vmem:[#allocation57_spill] sm:$0xff] }
 0x683   :  { %8262 = vst [vmem:[#allocation11 + $0xc0] sm:$0xff] %v9041_v2  ;;  %v9042_v9 = vpack.c.bf16 %v8033_v0, %v8032_v4  ;;  %v7895_v40 = vmul.f32 %v9134_v20, %v11373_v38  ;;  %v9136_v45 = vadd.f32 %v7551_v11, %v11662_v34  ;;  %v11670_v20 = vld [vmem:[#allocation58_spill] sm:$0xff] }
 0x684   :  { %v7970_v42 = vadd.f32 %v11376_v3, %v7894_v25  ;;  %v7896_v44 = vmul.f32 %v9135_v10, %v11371_v29 }
 0x685   :  { %8263 = vst [vmem:[#allocation11 + $0xc8] sm:$0xff] %v9042_v9  ;;  %v7971_v14 = vadd.f32 %v11379_v41, %v7895_v40  ;;  %v7897_v43 = vmul.f32 %v9136_v45, %v11373_v38 }
 0x686   :  { %v8034_v22 = vmax.f32 %v7970_v42, 0.0  ;;  %v7972_v12 = vadd.f32 %v11376_v3, %v7896_v44 }
 0x687   :  { %v8035_v7 = vmax.f32 %v7971_v14, 0.0  ;;  %v7973_v1 = vadd.f32 %v11379_v41, %v7897_v43  ;;  %v7555_v57 = vpop.f32.mrb[56].mxu0 }
 0x688   :  { %v8036_v30 = vmax.f32 %v7972_v12, 0.0  ;;  %v9137_v48 = vadd.f32 %v7555_v57, %v11663_v21  ;;  %v7557_v31 = vpop.f32.mrb[57].mxu0 }
 0x689   :  { %v9043_v51 = vpack.c.bf16 %v8035_v7, %v8034_v22  ;;  %v8037_v46 = vmax.f32 %v7973_v1, 0.0  ;;  %v9138_v33 = vadd.f32 %v7557_v31, %v11664_v55  ;;  %v7559_v47 = vpop.f32.mrb[58].mxu0 }
 0x68a   :  { %v7898_v59 = vmul.f32 %v9137_v48, %v11371_v29  ;;  %v9139_v28 = vadd.f32 %v7559_v47, %v11665_v32  ;;  %v7561_v8 = vpop.f32.mrb[59].mxu0 }
 0x68b   :  { %8264 = vst [vmem:[#allocation11 + $0xd0] sm:$0xff] %v9043_v51  ;;  %v9044_v24 = vpack.c.bf16 %v8037_v46, %v8036_v30  ;;  %v7899_v63 = vmul.f32 %v9138_v33, %v11373_v38  ;;  %v9140_v53 = vadd.f32 %v7561_v8, %v11666_v56 }
 0x68c   :  { %v7974_v18 = vadd.f32 %v11376_v3, %v7898_v59  ;;  %v7900_v62 = vmul.f32 %v9139_v28, %v11371_v29 }
 0x68d   :  { %8265 = vst [vmem:[#allocation11 + $0xd8] sm:$0xff] %v9044_v24  ;;  %v7975_v49 = vadd.f32 %v11379_v41, %v7899_v63  ;;  %v7901_v39 = vmul.f32 %v9140_v53, %v11373_v38 }
 0x68e   :  { %v8038_v60 = vmax.f32 %v7974_v18, 0.0  ;;  %v7976_v58 = vadd.f32 %v11376_v3, %v7900_v62 }
 0x68f   :  { %v8039_v13 = vmax.f32 %v7975_v49, 0.0  ;;  %v7977_v27 = vadd.f32 %v11379_v41, %v7901_v39  ;;  %v7565_v37 = vpop.f32.mrb[60].mxu0 }
 0x690   :  { %v8040_v15 = vmax.f32 %v7976_v58, 0.0  ;;  %v9141_v16 = vadd.f32 %v7565_v37, %v11667_v61  ;;  %v7567_v23 = vpop.f32.mrb[61].mxu0 }
 0x691   :  { %v9045_v50 = vpack.c.bf16 %v8039_v13, %v8038_v60  ;;  %v8041_v17 = vmax.f32 %v7977_v27, 0.0  ;;  %v9142_v54 = vadd.f32 %v7567_v23, %v11668_v52  ;;  %v7569_v4 = vpop.f32.mrb[62].mxu0 }
 0x692   :  { %v7902_v5 = vmul.f32 %v9141_v16, %v11371_v29  ;;  %v9143_v26 = vadd.f32 %v7569_v4, %v11669_v19  ;;  %v7571_v2 = vpop.f32.mrb[63].mxu0 }
 0x693   :  { %8266 = vst [vmem:[#allocation11 + $0xe0] sm:$0xff] %v9045_v50  ;;  %v9046_v0 = vpack.c.bf16 %v8041_v17, %v8040_v15  ;;  %v7903_v35 = vmul.f32 %v9142_v54, %v11373_v38  ;;  %v9144_v36 = vadd.f32 %v7571_v2, %v11670_v20 }
 0x694   :  { %v7978_v25 = vadd.f32 %v11376_v3, %v7902_v5  ;;  %v7904_v6 = vmul.f32 %v9143_v26, %v11371_v29 }
 0x695   :  { %8267 = vst [vmem:[#allocation11 + $0xe8] sm:$0xff] %v9046_v0  ;;  %v7979_v10 = vadd.f32 %v11379_v41, %v7903_v35  ;;  %v7905_v11 = vmul.f32 %v9144_v36, %v11373_v38 }
 0x696   :  { %v8042_v9 = vmax.f32 %v7978_v25, 0.0  ;;  %v7980_v40 = vadd.f32 %v11376_v3, %v7904_v6 }
 0x697   :  { %v8043_v34 = vmax.f32 %v7979_v10, 0.0  ;;  %v7981_v45 = vadd.f32 %v11379_v41, %v7905_v11 }
 0x698   :  { %v8044_v42 = vmax.f32 %v7980_v40, 0.0 }
 0x699   :  { %v9047_v44 = vpack.c.bf16 %v8043_v34, %v8042_v9  ;;  %v8045_v14 = vmax.f32 %v7981_v45, 0.0 }
 0x69b   :  { %8268 = vst [vmem:[#allocation11 + $0xf0] sm:$0xff] %v9047_v44  ;;  %v9048_v43 = vpack.c.bf16 %v8045_v14, %v8044_v42 }
 0x69d   :  { %8269 = vst [vmem:[#allocation11 + $0xf8] sm:$0xff] %v9048_v43 }
 0x69e   :  { %10284 = shalt.err (!%p10281_p6)
}
 0x69f   :  { %s10285_s14 = scalar_lea.hbm %s11590_s4, 4096 }
 0x6a0   :  { %p10286_p7 = scmp.ne.s32.totalorder %s11590_s4, %s10285_s14  ;;  %p10289_p8 = scmp.lt.u32.totalorder %s10285_s14, %s11590_s4 }
 0x6a2   :  { %p10291_p9 = pnand %p10289_p8, %p10286_p7 }
 0x6a4   :  { %10294 = shalt.err (!%p10291_p9)
}
 0x6a5   :  { %8281 = dma.vmem_to_hbm [thread:$0]  %s8276_s26, 4096, %s11590_s4, [#allocation7], %s10309_s2, %s10309_s2, %s10310_s11  }
 0x6a6   :  { %10305 = dma.done.wait [#allocation7], 4096  }
 0x6a7   :  { %10306 = vsyncadd [#allocation7], 4294963200 }
 0x6a8   :  { %8285 = vsyncpa [#allocation6], 1 }
 0x6a9   :  { %8286 = vsyncpa [#allocation9], 1 }
 0x6aa   :  { %8287 = vsyncpa [#allocation7], 1 }
 0x6ab   :  { %8288 = vsyncmov [#allocation4] }
 0x6ae   :  { %s8289_s1 = vpop.sfrf %8288 }
 0x6af   :  { %p9014_p10 = scmp.ne.s32.totalorder %s8289_s1, 0 }
 0x6b1   :  { %8293 = shalt.err (%p9014_p10)  }
 0x6b2   :  { %8295 = vsyncmov [#allocation4 + $0x1] }
 0x6b5   :  { %s8296_s18 = vpop.sfrf %8295 }
 0x6b6   :  { %p9015_p11 = scmp.ne.s32.totalorder %s8296_s18, 0 }
 0x6b8   :  { %8300 = shalt.err (%p9015_p11)  }
 0x6b9   :  { %8302 = vsyncmov [#allocation4 + $0x2] }
 0x6bc   :  { %s8303_s25 = vpop.sfrf %8302 }
 0x6bd   :  { %p9016_p12 = scmp.ne.s32.totalorder %s8303_s25, 0 }
 0x6bf   :  { %8307 = shalt.err (%p9016_p12)  }

</bundles_post_ra>
